<compile_context>
chip_gen: v5e
topology: v5e:2x2
jax: 0.10.0
libtpu: 0.0.40
codegen_flags: <defaults>
</compile_context>

<pallas_src>
import functools

import jax
import jax.numpy as jnp
from jax import lax
from jax.experimental import pallas as pl
from jax.experimental.pallas import tpu as pltpu


def _round_up(x, m):
    return ((x + m - 1) // m) * m


def _vmem_limit(usage_bytes):
    """Explicit scoped-VMEM limit: 2x actual usage + headroom, clamped to [16, 64] MiB."""
    return int(min(max(2 * usage_bytes + (2 << 20), 16 << 20), 64 << 20))


# ---------------------------------------------------------------------------
# Generic tiled (M,K)@(K,N)+bias kernel — used for gates_x precompute (Stage A)
# and the vocab projection (Stage C).
# ---------------------------------------------------------------------------
def _matmul_bias_kernel(x_ref, w_ref, b_ref, o_ref):
    o_ref[...] = (jnp.dot(x_ref[...], w_ref[...],
                          preferred_element_type=jnp.float32)
                  + b_ref[...]).astype(o_ref.dtype)


def _tiled_matmul_bias(x2d, w, b, out_dtype, *, vmem_budget):
    """x2d: (M, K) bf16, w: (K, N) bf16, b: (1, N) f32 -> (M, N) out_dtype."""
    M, K = x2d.shape
    Kw, N = w.shape
    assert K == Kw and M % 8 == 0 and N % 128 == 0

    # Lane-dense N tile (prefer 512 on 256-wide-MXU chips, fall back to 256/128).
    TN = 512 if N % 512 == 0 else (256 if N % 256 == 0 else 128)

    xb = x2d.dtype.itemsize
    wb = w.dtype.itemsize
    bb = b.dtype.itemsize
    ob = jnp.dtype(out_dtype).itemsize

    # Double-buffered VMEM cost: fixed (W tile + bias tile) + per-M-row part.
    fixed = 2 * (K * TN * wb + TN * bb)
    per_row = 2 * (K * xb + TN * ob)
    tm_max = (vmem_budget - fixed) // per_row if vmem_budget > fixed else 8
    tm_max = int(min(M, max(8, tm_max)))
    TM = (tm_max // 8) * 8
    while TM > 8 and M % TM != 0:   # largest divisor of M (multiple of 8) <= tm_max
        TM -= 8
    TM = max(TM, 8)
    usage = fixed + TM * per_row

    return pl.pallas_call(
        _matmul_bias_kernel,
        out_shape=jax.ShapeDtypeStruct((M, N), out_dtype),
        grid_spec=pltpu.PrefetchScalarGridSpec(
            num_scalar_prefetch=0,
            # i outer, j inner: the x tile stays resident while W streams over j.
            grid=(M // TM, N // TN),
            in_specs=[
                pl.BlockSpec((TM, K), lambda i, j: (i, 0)),
                pl.BlockSpec((K, TN), lambda i, j: (0, j)),
                pl.BlockSpec((1, TN), lambda i, j: (0, j)),
            ],
            out_specs=pl.BlockSpec((TM, TN), lambda i, j: (i, j)),
        ),
        compiler_params=pltpu.CompilerParams(
            dimension_semantics=("parallel", "parallel"),
            vmem_limit_bytes=_vmem_limit(usage),
        ),
    )(x2d, w, b)


# ---------------------------------------------------------------------------
# Kernel 1: LSTM recurrence only (input-side gates precomputed).
# Grid: (batch_blocks, T_pad // TC); time axis is serial ("arbitrary").
# ---------------------------------------------------------------------------
def _lstm_kernel(gx_ref, whh_ref, hs_ref, h_sc, c_sc, *, hidden_size, chunk):
    t_idx = pl.program_id(1)

    @pl.when(t_idx == 0)           # fresh (h, c) at the start of each batch block
    def _():
        h_sc[...] = jnp.zeros_like(h_sc)
        c_sc[...] = jnp.zeros_like(c_sc)

    whh = whh_ref[...]             # (H, 4H) bf16, resident for the whole chunk
    H = hidden_size

    # Static (fully unrolled) chunk loop: static indices keep the lane-sliced
    # hs stores trivially lowerable and give the scheduler full visibility.
    # TODO(synk): partial-unroll fori_loop variant for very large H (vreg pressure).
    for tt in range(chunk):
        # gates_x already contains x@W_ih + (b_ih + b_hh); only the recurrent
        # matmul sits on the serial critical path.
        gates = gx_ref[tt] + jnp.dot(h_sc[...], whh,
                                     preferred_element_type=jnp.float32)
        # PyTorch LSTM gate order: i, f, g, o (H is a multiple of 128 so the
        # slices are lane-aligned).
        i_g = jax.nn.sigmoid(gates[:, 0 * H:1 * H])
        f_g = jax.nn.sigmoid(gates[:, 1 * H:2 * H])
        g_g = jnp.tanh(gates[:, 2 * H:3 * H])
        o_g = jax.nn.sigmoid(gates[:, 3 * H:4 * H])
        c_new = f_g * c_sc[...] + i_g * g_g
        h_new = (o_g * jnp.tanh(c_new)).astype(jnp.bfloat16)
        c_sc[...] = c_new
        h_sc[...] = h_new          # h kept in bf16: feeds both W_hh matmul and hs
        # hs laid out as (BB, TC*H): row b, lanes [tt*H, (tt+1)*H) -> (b, t, h)
        # row order after a free reshape, so no HBM transpose is ever needed.
        hs_ref[:, tt * H:(tt + 1) * H] = h_new


# ---------------------------------------------------------------------------
# Wrapper == DecoderRNN.forward
# ---------------------------------------------------------------------------
def decoder_rnn_forward(params, features, captions, *, time_chunk=16,
                        batch_blocks=1, logits_dtype=jnp.float32,
                        tile_vmem_budget=12 * (1 << 20)):
    """features: (B, E) f32, captions: (B, L) int32 -> logits (B, L, V)."""
    embed_tbl = params["embed"]            # (V, E)
    w_ih_t = params["w_ih_t"]              # (E, 4H)
    w_hh_t = params["w_hh_t"]              # (H, 4H)
    b_ih = params["b_ih"]                  # (1, 4H)
    b_hh = params["b_hh"]                  # (1, 4H)
    w_lin_t = params["w_lin_t"]            # (H, V)
    b_lin = params["b_lin"]                # (1, V)

    B, E = features.shape
    L = captions.shape[1]
    H = w_hh_t.shape[0]
    V = w_lin_t.shape[1]
    T = L                                  # seq fed to LSTM: [features ; emb(captions[:, :-1])]

    # Gate slices / lane alignment assume H is a multiple of 128.
    assert H % 128 == 0, "choose hidden_size as a multiple of 128"
    # TODO(synk): general H would need padded, per-gate-interleaved weight blocks.

    # ---- hardware-friendly padding ----------------------------------------
    B_pad = _round_up(max(B, 8), 8)                      # >= sublane count
    assert B_pad % batch_blocks == 0
    BB = B_pad // batch_blocks                           # rows per batch block
    assert BB % 8 == 0, "batch_blocks must leave >= 8 rows per block"
    TC = time_chunk
    T_pad = _round_up(T, TC)
    if V % 128 == 0:
        V_pad = V                                        # no V pad -> no output slice copy
    elif V >= 512:
        V_pad = _round_up(V, 512)
    else:
        V_pad = _round_up(V, 128)

    # ---- bf16 weights for the MXU; fused f32 bias ---------------------------
    embed_bf = embed_tbl.astype(jnp.bfloat16)
    wih_bf = w_ih_t.astype(jnp.bfloat16)
    whh_bf = w_hh_t.astype(jnp.bfloat16)
    wlin_bf = w_lin_t.astype(jnp.bfloat16)
    blin_f32 = b_lin.astype(jnp.float32)
    if V_pad != V:
        wlin_bf = jnp.pad(wlin_bf, ((0, 0), (0, V_pad - V)))
        blin_f32 = jnp.pad(blin_f32, ((0, 0), (0, V_pad - V)))
    b_lstm = (b_ih + b_hh).astype(jnp.float32)           # (1, 4H)

    # ---- build LSTM input directly in TIME-MAJOR layout ---------------------
    feats = jnp.zeros((B_pad, E), jnp.bfloat16).at[:B].set(
        features.astype(jnp.bfloat16))
    caps = jnp.zeros((B_pad, L - 1), captions.dtype).at[:B].set(captions[:, :-1])
    emb_tm = jnp.take(embed_bf, caps.T, axis=0)          # (L-1, B_pad, E)
    x_tm = jnp.concatenate([feats[None], emb_tm], axis=0)  # (T, B_pad, E) bf16
    if T_pad != T:
        x_tm = jnp.pad(x_tm, ((0, T_pad - T), (0, 0), (0, 0)))

    # ---- Stage A: gates_x = x @ W_ih^T + bias (one big parallel matmul) -----
    gx_2d = _tiled_matmul_bias(
        x_tm.reshape(T_pad * B_pad, E), wih_bf, b_lstm, jnp.float32,
        vmem_budget=tile_vmem_budget)                    # (T_pad*B_pad, 4H) f32
    gx_tm = gx_2d.reshape(T_pad, B_pad, 4 * H)           # free reshape

    # ---- Stage B: recurrence -> hs_flat (B_pad, T_pad*H) bf16 ---------------
    # Kernel-1 VMEM usage (double-buffered blocks + scratch); weights are still
    # double-buffered.  # TODO(synk): pipeline_mode=pl.Buffered(1) on the
    # constant-index W_hh block to halve resident weight VMEM on v7x (64 MiB).
    usage_lstm = (2 * TC * BB * 4 * H * 4                # gx chunk f32
                  + 2 * H * 4 * H * 2                    # W_hh bf16
                  + 2 * BB * TC * H * 2                  # hs out chunk bf16
                  + BB * H * (2 + 4))                    # h (bf16) + c (f32) scratch
    lstm_kernel = functools.partial(_lstm_kernel, hidden_size=H, chunk=TC)
    hs_flat = pl.pallas_call(
        lstm_kernel,
        out_shape=jax.ShapeDtypeStruct((B_pad, T_pad * H), jnp.bfloat16),
        grid_spec=pltpu.PrefetchScalarGridSpec(
            num_scalar_prefetch=0,
            # Leading batch-block axis is "parallel" (exploits v7x's 2 TCs when
            # batch_blocks=2); the time axis is the serial recurrence.
            grid=(batch_blocks, T_pad // TC),
            in_specs=[
                pl.BlockSpec((TC, BB, 4 * H), lambda b, c: (c, b, 0)),  # gates_x chunk
                pl.BlockSpec((H, 4 * H), lambda b, c: (0, 0)),          # W_hh^T (bf16)
            ],
            out_specs=pl.BlockSpec((BB, TC * H), lambda b, c: (b, c)),
            scratch_shapes=[
                pltpu.VMEM((BB, H), jnp.bfloat16),                      # h state
                pltpu.VMEM((BB, H), jnp.float32),                       # c state
            ],
        ),
        compiler_params=pltpu.CompilerParams(
            dimension_semantics=("parallel", "arbitrary"),
            vmem_limit_bytes=_vmem_limit(usage_lstm),
        ),
    )(gx_tm, whh_bf)

    # (B_pad, T_pad*H) -> (B_pad*T_pad, H): free row-major reshape, already in
    # (b, t) row order, so the logits also come out in (B, T, V) order.
    hs_2d = hs_flat.reshape(B_pad * T_pad, H)

    # ---- Stage C: projection -> logits (B_pad*T_pad, V_pad) -----------------
    logits_2d = _tiled_matmul_bias(hs_2d, wlin_bf, blin_f32, logits_dtype,
                                   vmem_budget=tile_vmem_budget)
    logits = logits_2d.reshape(B_pad, T_pad, V_pad)      # free reshape

    # Only slice what is actually padded (keeps V_pad == V slice-free when the
    # vocab is already lane-aligned).
    if B_pad == B and T_pad == T and V_pad == V:
        return logits
    out = logits[:B, :T]
    if V_pad != V:
        out = out[..., :V]
    return out


# ---------------------------------------------------------------------------
# Pure-JAX reference with matching precision / computation order.
# ---------------------------------------------------------------------------
def decoder_rnn_reference(params, features, captions):
    embed_bf = params["embed"].astype(jnp.bfloat16)
    wih_bf = params["w_ih_t"].astype(jnp.bfloat16)
    whh_bf = params["w_hh_t"].astype(jnp.bfloat16)
    wlin_bf = params["w_lin_t"].astype(jnp.bfloat16)
    b = (params["b_ih"] + params["b_hh"]).astype(jnp.float32)
    b_lin = params["b_lin"].astype(jnp.float32)
    H = params["w_hh_t"].shape[0]
    B = features.shape[0]

    caps = captions[:, :-1]
    emb = jnp.take(embed_bf, caps, axis=0)                          # (B, L-1, E)
    x = jnp.concatenate(
        [features.astype(jnp.bfloat16)[:, None, :], emb], axis=1)   # (B, T, E)
    gx = jnp.einsum("bte,eg->btg", x, wih_bf,
                    preferred_element_type=jnp.float32) + b         # (B, T, 4H)

    def step(carry, gx_t):
        h_bf, c = carry
        gates = gx_t + jnp.dot(h_bf, whh_bf, preferred_element_type=jnp.float32)
        i_g = jax.nn.sigmoid(gates[:, 0 * H:1 * H])
        f_g = jax.nn.sigmoid(gates[:, 1 * H:2 * H])
        g_g = jnp.tanh(gates[:, 2 * H:3 * H])
        o_g = jax.nn.sigmoid(gates[:, 3 * H:4 * H])
        c_new = f_g * c + i_g * g_g
        h_new = (o_g * jnp.tanh(c_new)).astype(jnp.bfloat16)
        return (h_new, c_new), h_new

    h0 = jnp.zeros((B, H), jnp.bfloat16)
    c0 = jnp.zeros((B, H), jnp.float32)
    _, hs = lax.scan(step, (h0, c0), jnp.transpose(gx, (1, 0, 2)))   # (T, B, H)
    out = jnp.einsum("tbh,hv->tbv", hs, wlin_bf,
                     preferred_element_type=jnp.float32) + b_lin
    return jnp.transpose(out, (1, 0, 2))                             # (B, T, V)


def init_params(key, embed_size, hidden_size, vocab_size):
    ks = jax.random.split(key, 7)
    scale = 0.1
    return {
        "embed":   scale * jax.random.normal(ks[0], (vocab_size, embed_size), jnp.float32),
        "w_ih_t":  scale * jax.random.normal(ks[1], (embed_size, 4 * hidden_size), jnp.float32),
        "w_hh_t":  scale * jax.random.normal(ks[2], (hidden_size, 4 * hidden_size), jnp.float32),
        "b_ih":    scale * jax.random.normal(ks[3], (1, 4 * hidden_size), jnp.float32),
        "b_hh":    scale * jax.random.normal(ks[4], (1, 4 * hidden_size), jnp.float32),
        "w_lin_t": scale * jax.random.normal(ks[5], (hidden_size, vocab_size), jnp.float32),
        "b_lin":   scale * jax.random.normal(ks[6], (1, vocab_size), jnp.float32),
    }


if __name__ == "__main__":
    # Small shapes consistent with the module's forward (lane/sublane aligned).
    B, L = 2, 16              # batch, caption length (T = L)
    E, H, V = 128, 128, 512   # embed_size, hidden_size, vocab_size

    key = jax.random.PRNGKey(0)
    k_feat, k_cap, k_par = jax.random.split(key, 3)

    params = init_params(k_par, E, H, V)
    features = jax.random.normal(k_feat, (B, E), jnp.float32)
    captions = jax.random.randint(k_cap, (B, L), 0, V, dtype=jnp.int32)

    fwd = jax.jit(decoder_rnn_forward)
    out = jax.block_until_ready(fwd(params, features, captions))

    ref = decoder_rnn_reference(params, features, captions)
    assert out.shape == (B, L, V), out.shape
    max_err = float(jnp.max(jnp.abs(out - ref)))
    assert max_err < 5e-3, max_err

    print("KERNEL_OK")
</pallas_src>

<mosaic_0001>
module attributes {stable_mosaic.version = 11 : i64} {
  func.func @_lstm_kernel(%arg0: i32, %arg1: i32, %arg2: memref<16x8x512xf32, #tpu.memory_space<vmem>>, %arg3: memref<128x512xbf16, #tpu.memory_space<vmem>>, %arg4: memref<8x2048xbf16, #tpu.memory_space<vmem>>, %arg5: memref<8x128xbf16, #tpu.memory_space<vmem>>, %arg6: memref<8x128xf32, #tpu.memory_space<vmem>>) attributes {dimension_semantics = [#tpu.dimension_semantics<parallel>, #tpu.dimension_semantics<arbitrary>], iteration_bounds = array<i64: 1, 1>, scalar_prefetch = 0 : i64, scratch_operands = 2 : i64, tpu.core_type = #tpu.core_type<tc>, window_params = [{transform_indices = @transform_0, window_bounds = array<i64: 16, 8, 512>}, {pipeline_mode = #tpu.pipeline_mode<synchronous>, transform_indices = @transform_1, window_bounds = array<i64: 128, 512>}, {transform_indices = @transform_2, window_bounds = array<i64: 8, 2048>}]} {
    %c0_i32 = arith.constant 0 : i32
    %0 = arith.cmpi eq, %arg1, %c0_i32 : i32
    %1 = arith.extui %0 : i1 to i32
    %c0_i32_0 = arith.constant 0 : i32
    %2 = arith.cmpi ne, %1, %c0_i32_0 : i32
    scf.if %2 {
      %cst_243 = arith.constant 0.000000e+00 : bf16
      %564 = vector.broadcast %cst_243 : bf16 to vector<8x128xbf16>
      %c0_244 = arith.constant 0 : index
      %c0_245 = arith.constant 0 : index
      %565 = vector.load %arg5[%c0_244, %c0_245] : memref<8x128xbf16, #tpu.memory_space<vmem>>, vector<8x128xbf16>
      tpu.vector_store %arg5[%c0_244, %c0_245], %564 {strides = array<i32>} : memref<8x128xbf16, #tpu.memory_space<vmem>>, vector<8x128xbf16>,
      %cst_246 = arith.constant 0.000000e+00 : f32
      %566 = vector.broadcast %cst_246 : f32 to vector<8x128xf32>
      %c0_247 = arith.constant 0 : index
      %c0_248 = arith.constant 0 : index
      %567 = vector.load %arg6[%c0_247, %c0_248] : memref<8x128xf32, #tpu.memory_space<vmem>>, vector<8x128xf32>
      tpu.vector_store %arg6[%c0_247, %c0_248], %566 {strides = array<i32>} : memref<8x128xf32, #tpu.memory_space<vmem>>, vector<8x128xf32>,
    } else {
    }
    %c0 = arith.constant 0 : index
    %c0_1 = arith.constant 0 : index
    %3 = vector.load %arg3[%c0, %c0_1] : memref<128x512xbf16, #tpu.memory_space<vmem>>, vector<128x512xbf16>
    %c0_2 = arith.constant 0 : index
    %c0_3 = arith.constant 0 : index
    %c0_4 = arith.constant 0 : index
    %4 = vector.load %arg2[%c0_2, %c0_3, %c0_4] : memref<16x8x512xf32, #tpu.memory_space<vmem>>, vector<1x8x512xf32>
    %5 = vector.shape_cast %4 : vector<1x8x512xf32> to vector<8x512xf32>
    %c0_5 = arith.constant 0 : index
    %c0_6 = arith.constant 0 : index
    %6 = vector.load %arg5[%c0_5, %c0_6] : memref<8x128xbf16, #tpu.memory_space<vmem>>, vector<8x128xbf16>
    %cst = arith.constant dense<0.000000e+00> : vector<8x512xf32>
    %7 = tpu.matmul %6, %3, %cst {dimension_numbers = #tpu.dot_dimension_numbers<[1], [0], [0], [1], [0, 0, 1, 1], [], []>} : vector<8x128xbf16>, vector<128x512xbf16>, vector<8x512xf32> -> vector<8x512xf32>
    %8 = arith.addf %5, %7 : vector<8x512xf32>
    %9 = vector.extract_strided_slice %8 {offsets = [0, 0], sizes = [8, 128], strides = [1, 1]} : vector<8x512xf32> to vector<8x128xf32>
    %10 = arith.negf %9 : vector<8x128xf32>
    %11 = math.exp %10 : vector<8x128xf32>
    %cst_7 = arith.constant 1.000000e+00 : f32
    %12 = vector.broadcast %cst_7 : f32 to vector<8x128xf32>
    %13 = arith.addf %12, %11 : vector<8x128xf32>
    %14 = arith.divf %12, %13 : vector<8x128xf32>
    %15 = vector.extract_strided_slice %8 {offsets = [0, 128], sizes = [8, 128], strides = [1, 1]} : vector<8x512xf32> to vector<8x128xf32>
    %16 = arith.negf %15 : vector<8x128xf32>
    %17 = math.exp %16 : vector<8x128xf32>
    %cst_8 = arith.constant 1.000000e+00 : f32
    %18 = vector.broadcast %cst_8 : f32 to vector<8x128xf32>
    %19 = arith.addf %18, %17 : vector<8x128xf32>
    %20 = arith.divf %18, %19 : vector<8x128xf32>
    %21 = vector.extract_strided_slice %8 {offsets = [0, 256], sizes = [8, 128], strides = [1, 1]} : vector<8x512xf32> to vector<8x128xf32>
    %22 = math.tanh %21 : vector<8x128xf32>
    %23 = vector.extract_strided_slice %8 {offsets = [0, 384], sizes = [8, 128], strides = [1, 1]} : vector<8x512xf32> to vector<8x128xf32>
    %24 = arith.negf %23 : vector<8x128xf32>
    %25 = math.exp %24 : vector<8x128xf32>
    %cst_9 = arith.constant 1.000000e+00 : f32
    %26 = vector.broadcast %cst_9 : f32 to vector<8x128xf32>
    %27 = arith.addf %26, %25 : vector<8x128xf32>
    %28 = arith.divf %26, %27 : vector<8x128xf32>
    %c0_10 = arith.constant 0 : index
    %c0_11 = arith.constant 0 : index
    %29 = vector.load %arg6[%c0_10, %c0_11] : memref<8x128xf32, #tpu.memory_space<vmem>>, vector<8x128xf32>
    %30 = arith.mulf %20, %29 : vector<8x128xf32>
    %31 = arith.mulf %14, %22 : vector<8x128xf32>
    %32 = arith.addf %30, %31 : vector<8x128xf32>
    %33 = math.tanh %32 : vector<8x128xf32>
    %34 = arith.mulf %28, %33 : vector<8x128xf32>
    %35 = arith.truncf %34 : vector<8x128xf32> to vector<8x128xbf16>
    %c0_12 = arith.constant 0 : index
    %c0_13 = arith.constant 0 : index
    %36 = vector.load %arg6[%c0_12, %c0_13] : memref<8x128xf32, #tpu.memory_space<vmem>>, vector<8x128xf32>
    tpu.vector_store %arg6[%c0_12, %c0_13], %32 {strides = array<i32>} : memref<8x128xf32, #tpu.memory_space<vmem>>, vector<8x128xf32>,
    %c0_14 = arith.constant 0 : index
    %c0_15 = arith.constant 0 : index
    %37 = vector.load %arg5[%c0_14, %c0_15] : memref<8x128xbf16, #tpu.memory_space<vmem>>, vector<8x128xbf16>
    tpu.vector_store %arg5[%c0_14, %c0_15], %35 {strides = array<i32>} : memref<8x128xbf16, #tpu.memory_space<vmem>>, vector<8x128xbf16>,
    %c0_16 = arith.constant 0 : index
    %c0_17 = arith.constant 0 : index
    %38 = vector.load %arg4[%c0_16, %c0_17] : memref<8x2048xbf16, #tpu.memory_space<vmem>>, vector<8x128xbf16>
    tpu.vector_store %arg4[%c0_16, %c0_17], %35 {strides = array<i32>} : memref<8x2048xbf16, #tpu.memory_space<vmem>>, vector<8x128xbf16>,
    %c1 = arith.constant 1 : index
    %c0_18 = arith.constant 0 : index
    %c0_19 = arith.constant 0 : index
    %39 = vector.load %arg2[%c1, %c0_18, %c0_19] : memref<16x8x512xf32, #tpu.memory_space<vmem>>, vector<1x8x512xf32>
    %40 = vector.shape_cast %39 : vector<1x8x512xf32> to vector<8x512xf32>
    %c0_20 = arith.constant 0 : index
    %c0_21 = arith.constant 0 : index
    %41 = vector.load %arg5[%c0_20, %c0_21] : memref<8x128xbf16, #tpu.memory_space<vmem>>, vector<8x128xbf16>
    %cst_22 = arith.constant dense<0.000000e+00> : vector<8x512xf32>
    %42 = tpu.matmul %41, %3, %cst_22 {dimension_numbers = #tpu.dot_dimension_numbers<[1], [0], [0], [1], [0, 0, 1, 1], [], []>} : vector<8x128xbf16>, vector<128x512xbf16>, vector<8x512xf32> -> vector<8x512xf32>
    %43 = arith.addf %40, %42 : vector<8x512xf32>
    %44 = vector.extract_strided_slice %43 {offsets = [0, 0], sizes = [8, 128], strides = [1, 1]} : vector<8x512xf32> to vector<8x128xf32>
    %45 = arith.negf %44 : vector<8x128xf32>
    %46 = math.exp %45 : vector<8x128xf32>
    %cst_23 = arith.constant 1.000000e+00 : f32
    %47 = vector.broadcast %cst_23 : f32 to vector<8x128xf32>
    %48 = arith.addf %47, %46 : vector<8x128xf32>
    %49 = arith.divf %47, %48 : vector<8x128xf32>
    %50 = vector.extract_strided_slice %43 {offsets = [0, 128], sizes = [8, 128], strides = [1, 1]} : vector<8x512xf32> to vector<8x128xf32>
    %51 = arith.negf %50 : vector<8x128xf32>
    %52 = math.exp %51 : vector<8x128xf32>
    %cst_24 = arith.constant 1.000000e+00 : f32
    %53 = vector.broadcast %cst_24 : f32 to vector<8x128xf32>
    %54 = arith.addf %53, %52 : vector<8x128xf32>
    %55 = arith.divf %53, %54 : vector<8x128xf32>
    %56 = vector.extract_strided_slice %43 {offsets = [0, 256], sizes = [8, 128], strides = [1, 1]} : vector<8x512xf32> to vector<8x128xf32>
    %57 = math.tanh %56 : vector<8x128xf32>
    %58 = vector.extract_strided_slice %43 {offsets = [0, 384], sizes = [8, 128], strides = [1, 1]} : vector<8x512xf32> to vector<8x128xf32>
    %59 = arith.negf %58 : vector<8x128xf32>
    %60 = math.exp %59 : vector<8x128xf32>
    %cst_25 = arith.constant 1.000000e+00 : f32
    %61 = vector.broadcast %cst_25 : f32 to vector<8x128xf32>
    %62 = arith.addf %61, %60 : vector<8x128xf32>
    %63 = arith.divf %61, %62 : vector<8x128xf32>
    %c0_26 = arith.constant 0 : index
    %c0_27 = arith.constant 0 : index
    %64 = vector.load %arg6[%c0_26, %c0_27] : memref<8x128xf32, #tpu.memory_space<vmem>>, vector<8x128xf32>
    %65 = arith.mulf %55, %64 : vector<8x128xf32>
    %66 = arith.mulf %49, %57 : vector<8x128xf32>
    %67 = arith.addf %65, %66 : vector<8x128xf32>
    %68 = math.tanh %67 : vector<8x128xf32>
    %69 = arith.mulf %63, %68 : vector<8x128xf32>
    %70 = arith.truncf %69 : vector<8x128xf32> to vector<8x128xbf16>
    %c0_28 = arith.constant 0 : index
    %c0_29 = arith.constant 0 : index
    %71 = vector.load %arg6[%c0_28, %c0_29] : memref<8x128xf32, #tpu.memory_space<vmem>>, vector<8x128xf32>
    tpu.vector_store %arg6[%c0_28, %c0_29], %67 {strides = array<i32>} : memref<8x128xf32, #tpu.memory_space<vmem>>, vector<8x128xf32>,
    %c0_30 = arith.constant 0 : index
    %c0_31 = arith.constant 0 : index
    %72 = vector.load %arg5[%c0_30, %c0_31] : memref<8x128xbf16, #tpu.memory_space<vmem>>, vector<8x128xbf16>
    tpu.vector_store %arg5[%c0_30, %c0_31], %70 {strides = array<i32>} : memref<8x128xbf16, #tpu.memory_space<vmem>>, vector<8x128xbf16>,
    %c0_32 = arith.constant 0 : index
    %c128 = arith.constant 128 : index
    %73 = vector.load %arg4[%c0_32, %c128] : memref<8x2048xbf16, #tpu.memory_space<vmem>>, vector<8x128xbf16>
    tpu.vector_store %arg4[%c0_32, %c128], %70 {strides = array<i32>} : memref<8x2048xbf16, #tpu.memory_space<vmem>>, vector<8x128xbf16>,
    %c2 = arith.constant 2 : index
    %c0_33 = arith.constant 0 : index
    %c0_34 = arith.constant 0 : index
    %74 = vector.load %arg2[%c2, %c0_33, %c0_34] : memref<16x8x512xf32, #tpu.memory_space<vmem>>, vector<1x8x512xf32>
    %75 = vector.shape_cast %74 : vector<1x8x512xf32> to vector<8x512xf32>
    %c0_35 = arith.constant 0 : index
    %c0_36 = arith.constant 0 : index
    %76 = vector.load %arg5[%c0_35, %c0_36] : memref<8x128xbf16, #tpu.memory_space<vmem>>, vector<8x128xbf16>
    %cst_37 = arith.constant dense<0.000000e+00> : vector<8x512xf32>
    %77 = tpu.matmul %76, %3, %cst_37 {dimension_numbers = #tpu.dot_dimension_numbers<[1], [0], [0], [1], [0, 0, 1, 1], [], []>} : vector<8x128xbf16>, vector<128x512xbf16>, vector<8x512xf32> -> vector<8x512xf32>
    %78 = arith.addf %75, %77 : vector<8x512xf32>
    %79 = vector.extract_strided_slice %78 {offsets = [0, 0], sizes = [8, 128], strides = [1, 1]} : vector<8x512xf32> to vector<8x128xf32>
    %80 = arith.negf %79 : vector<8x128xf32>
    %81 = math.exp %80 : vector<8x128xf32>
    %cst_38 = arith.constant 1.000000e+00 : f32
    %82 = vector.broadcast %cst_38 : f32 to vector<8x128xf32>
    %83 = arith.addf %82, %81 : vector<8x128xf32>
    %84 = arith.divf %82, %83 : vector<8x128xf32>
    %85 = vector.extract_strided_slice %78 {offsets = [0, 128], sizes = [8, 128], strides = [1, 1]} : vector<8x512xf32> to vector<8x128xf32>
    %86 = arith.negf %85 : vector<8x128xf32>
    %87 = math.exp %86 : vector<8x128xf32>
    %cst_39 = arith.constant 1.000000e+00 : f32
    %88 = vector.broadcast %cst_39 : f32 to vector<8x128xf32>
    %89 = arith.addf %88, %87 : vector<8x128xf32>
    %90 = arith.divf %88, %89 : vector<8x128xf32>
    %91 = vector.extract_strided_slice %78 {offsets = [0, 256], sizes = [8, 128], strides = [1, 1]} : vector<8x512xf32> to vector<8x128xf32>
    %92 = math.tanh %91 : vector<8x128xf32>
    %93 = vector.extract_strided_slice %78 {offsets = [0, 384], sizes = [8, 128], strides = [1, 1]} : vector<8x512xf32> to vector<8x128xf32>
    %94 = arith.negf %93 : vector<8x128xf32>
    %95 = math.exp %94 : vector<8x128xf32>
    %cst_40 = arith.constant 1.000000e+00 : f32
    %96 = vector.broadcast %cst_40 : f32 to vector<8x128xf32>
    %97 = arith.addf %96, %95 : vector<8x128xf32>
    %98 = arith.divf %96, %97 : vector<8x128xf32>
    %c0_41 = arith.constant 0 : index
    %c0_42 = arith.constant 0 : index
    %99 = vector.load %arg6[%c0_41, %c0_42] : memref<8x128xf32, #tpu.memory_space<vmem>>, vector<8x128xf32>
    %100 = arith.mulf %90, %99 : vector<8x128xf32>
    %101 = arith.mulf %84, %92 : vector<8x128xf32>
    %102 = arith.addf %100, %101 : vector<8x128xf32>
    %103 = math.tanh %102 : vector<8x128xf32>
    %104 = arith.mulf %98, %103 : vector<8x128xf32>
    %105 = arith.truncf %104 : vector<8x128xf32> to vector<8x128xbf16>
    %c0_43 = arith.constant 0 : index
    %c0_44 = arith.constant 0 : index
    %106 = vector.load %arg6[%c0_43, %c0_44] : memref<8x128xf32, #tpu.memory_space<vmem>>, vector<8x128xf32>
    tpu.vector_store %arg6[%c0_43, %c0_44], %102 {strides = array<i32>} : memref<8x128xf32, #tpu.memory_space<vmem>>, vector<8x128xf32>,
    %c0_45 = arith.constant 0 : index
    %c0_46 = arith.constant 0 : index
    %107 = vector.load %arg5[%c0_45, %c0_46] : memref<8x128xbf16, #tpu.memory_space<vmem>>, vector<8x128xbf16>
    tpu.vector_store %arg5[%c0_45, %c0_46], %105 {strides = array<i32>} : memref<8x128xbf16, #tpu.memory_space<vmem>>, vector<8x128xbf16>,
    %c0_47 = arith.constant 0 : index
    %c256 = arith.constant 256 : index
    %108 = vector.load %arg4[%c0_47, %c256] : memref<8x2048xbf16, #tpu.memory_space<vmem>>, vector<8x128xbf16>
    tpu.vector_store %arg4[%c0_47, %c256], %105 {strides = array<i32>} : memref<8x2048xbf16, #tpu.memory_space<vmem>>, vector<8x128xbf16>,
    %c3 = arith.constant 3 : index
    %c0_48 = arith.constant 0 : index
    %c0_49 = arith.constant 0 : index
    %109 = vector.load %arg2[%c3, %c0_48, %c0_49] : memref<16x8x512xf32, #tpu.memory_space<vmem>>, vector<1x8x512xf32>
    %110 = vector.shape_cast %109 : vector<1x8x512xf32> to vector<8x512xf32>
    %c0_50 = arith.constant 0 : index
    %c0_51 = arith.constant 0 : index
    %111 = vector.load %arg5[%c0_50, %c0_51] : memref<8x128xbf16, #tpu.memory_space<vmem>>, vector<8x128xbf16>
    %cst_52 = arith.constant dense<0.000000e+00> : vector<8x512xf32>
    %112 = tpu.matmul %111, %3, %cst_52 {dimension_numbers = #tpu.dot_dimension_numbers<[1], [0], [0], [1], [0, 0, 1, 1], [], []>} : vector<8x128xbf16>, vector<128x512xbf16>, vector<8x512xf32> -> vector<8x512xf32>
    %113 = arith.addf %110, %112 : vector<8x512xf32>
    %114 = vector.extract_strided_slice %113 {offsets = [0, 0], sizes = [8, 128], strides = [1, 1]} : vector<8x512xf32> to vector<8x128xf32>
    %115 = arith.negf %114 : vector<8x128xf32>
    %116 = math.exp %115 : vector<8x128xf32>
    %cst_53 = arith.constant 1.000000e+00 : f32
    %117 = vector.broadcast %cst_53 : f32 to vector<8x128xf32>
    %118 = arith.addf %117, %116 : vector<8x128xf32>
    %119 = arith.divf %117, %118 : vector<8x128xf32>
    %120 = vector.extract_strided_slice %113 {offsets = [0, 128], sizes = [8, 128], strides = [1, 1]} : vector<8x512xf32> to vector<8x128xf32>
    %121 = arith.negf %120 : vector<8x128xf32>
    %122 = math.exp %121 : vector<8x128xf32>
    %cst_54 = arith.constant 1.000000e+00 : f32
    %123 = vector.broadcast %cst_54 : f32 to vector<8x128xf32>
    %124 = arith.addf %123, %122 : vector<8x128xf32>
    %125 = arith.divf %123, %124 : vector<8x128xf32>
    %126 = vector.extract_strided_slice %113 {offsets = [0, 256], sizes = [8, 128], strides = [1, 1]} : vector<8x512xf32> to vector<8x128xf32>
    %127 = math.tanh %126 : vector<8x128xf32>
    %128 = vector.extract_strided_slice %113 {offsets = [0, 384], sizes = [8, 128], strides = [1, 1]} : vector<8x512xf32> to vector<8x128xf32>
    %129 = arith.negf %128 : vector<8x128xf32>
    %130 = math.exp %129 : vector<8x128xf32>
    %cst_55 = arith.constant 1.000000e+00 : f32
    %131 = vector.broadcast %cst_55 : f32 to vector<8x128xf32>
    %132 = arith.addf %131, %130 : vector<8x128xf32>
    %133 = arith.divf %131, %132 : vector<8x128xf32>
    %c0_56 = arith.constant 0 : index
    %c0_57 = arith.constant 0 : index
    %134 = vector.load %arg6[%c0_56, %c0_57] : memref<8x128xf32, #tpu.memory_space<vmem>>, vector<8x128xf32>
    %135 = arith.mulf %125, %134 : vector<8x128xf32>
    %136 = arith.mulf %119, %127 : vector<8x128xf32>
    %137 = arith.addf %135, %136 : vector<8x128xf32>
    %138 = math.tanh %137 : vector<8x128xf32>
    %139 = arith.mulf %133, %138 : vector<8x128xf32>
    %140 = arith.truncf %139 : vector<8x128xf32> to vector<8x128xbf16>
    %c0_58 = arith.constant 0 : index
    %c0_59 = arith.constant 0 : index
    %141 = vector.load %arg6[%c0_58, %c0_59] : memref<8x128xf32, #tpu.memory_space<vmem>>, vector<8x128xf32>
    tpu.vector_store %arg6[%c0_58, %c0_59], %137 {strides = array<i32>} : memref<8x128xf32, #tpu.memory_space<vmem>>, vector<8x128xf32>,
    %c0_60 = arith.constant 0 : index
    %c0_61 = arith.constant 0 : index
    %142 = vector.load %arg5[%c0_60, %c0_61] : memref<8x128xbf16, #tpu.memory_space<vmem>>, vector<8x128xbf16>
    tpu.vector_store %arg5[%c0_60, %c0_61], %140 {strides = array<i32>} : memref<8x128xbf16, #tpu.memory_space<vmem>>, vector<8x128xbf16>,
    %c0_62 = arith.constant 0 : index
    %c384 = arith.constant 384 : index
    %143 = vector.load %arg4[%c0_62, %c384] : memref<8x2048xbf16, #tpu.memory_space<vmem>>, vector<8x128xbf16>
    tpu.vector_store %arg4[%c0_62, %c384], %140 {strides = array<i32>} : memref<8x2048xbf16, #tpu.memory_space<vmem>>, vector<8x128xbf16>,
    %c4 = arith.constant 4 : index
    %c0_63 = arith.constant 0 : index
    %c0_64 = arith.constant 0 : index
    %144 = vector.load %arg2[%c4, %c0_63, %c0_64] : memref<16x8x512xf32, #tpu.memory_space<vmem>>, vector<1x8x512xf32>
    %145 = vector.shape_cast %144 : vector<1x8x512xf32> to vector<8x512xf32>
    %c0_65 = arith.constant 0 : index
    %c0_66 = arith.constant 0 : index
    %146 = vector.load %arg5[%c0_65, %c0_66] : memref<8x128xbf16, #tpu.memory_space<vmem>>, vector<8x128xbf16>
    %cst_67 = arith.constant dense<0.000000e+00> : vector<8x512xf32>
    %147 = tpu.matmul %146, %3, %cst_67 {dimension_numbers = #tpu.dot_dimension_numbers<[1], [0], [0], [1], [0, 0, 1, 1], [], []>} : vector<8x128xbf16>, vector<128x512xbf16>, vector<8x512xf32> -> vector<8x512xf32>
    %148 = arith.addf %145, %147 : vector<8x512xf32>
    %149 = vector.extract_strided_slice %148 {offsets = [0, 0], sizes = [8, 128], strides = [1, 1]} : vector<8x512xf32> to vector<8x128xf32>
    %150 = arith.negf %149 : vector<8x128xf32>
    %151 = math.exp %150 : vector<8x128xf32>
    %cst_68 = arith.constant 1.000000e+00 : f32
    %152 = vector.broadcast %cst_68 : f32 to vector<8x128xf32>
    %153 = arith.addf %152, %151 : vector<8x128xf32>
    %154 = arith.divf %152, %153 : vector<8x128xf32>
    %155 = vector.extract_strided_slice %148 {offsets = [0, 128], sizes = [8, 128], strides = [1, 1]} : vector<8x512xf32> to vector<8x128xf32>
    %156 = arith.negf %155 : vector<8x128xf32>
    %157 = math.exp %156 : vector<8x128xf32>
    %cst_69 = arith.constant 1.000000e+00 : f32
    %158 = vector.broadcast %cst_69 : f32 to vector<8x128xf32>
    %159 = arith.addf %158, %157 : vector<8x128xf32>
    %160 = arith.divf %158, %159 : vector<8x128xf32>
    %161 = vector.extract_strided_slice %148 {offsets = [0, 256], sizes = [8, 128], strides = [1, 1]} : vector<8x512xf32> to vector<8x128xf32>
    %162 = math.tanh %161 : vector<8x128xf32>
    %163 = vector.extract_strided_slice %148 {offsets = [0, 384], sizes = [8, 128], strides = [1, 1]} : vector<8x512xf32> to vector<8x128xf32>
    %164 = arith.negf %163 : vector<8x128xf32>
    %165 = math.exp %164 : vector<8x128xf32>
    %cst_70 = arith.constant 1.000000e+00 : f32
    %166 = vector.broadcast %cst_70 : f32 to vector<8x128xf32>
    %167 = arith.addf %166, %165 : vector<8x128xf32>
    %168 = arith.divf %166, %167 : vector<8x128xf32>
    %c0_71 = arith.constant 0 : index
    %c0_72 = arith.constant 0 : index
    %169 = vector.load %arg6[%c0_71, %c0_72] : memref<8x128xf32, #tpu.memory_space<vmem>>, vector<8x128xf32>
    %170 = arith.mulf %160, %169 : vector<8x128xf32>
    %171 = arith.mulf %154, %162 : vector<8x128xf32>
    %172 = arith.addf %170, %171 : vector<8x128xf32>
    %173 = math.tanh %172 : vector<8x128xf32>
    %174 = arith.mulf %168, %173 : vector<8x128xf32>
    %175 = arith.truncf %174 : vector<8x128xf32> to vector<8x128xbf16>
    %c0_73 = arith.constant 0 : index
    %c0_74 = arith.constant 0 : index
    %176 = vector.load %arg6[%c0_73, %c0_74] : memref<8x128xf32, #tpu.memory_space<vmem>>, vector<8x128xf32>
    tpu.vector_store %arg6[%c0_73, %c0_74], %172 {strides = array<i32>} : memref<8x128xf32, #tpu.memory_space<vmem>>, vector<8x128xf32>,
    %c0_75 = arith.constant 0 : index
    %c0_76 = arith.constant 0 : index
    %177 = vector.load %arg5[%c0_75, %c0_76] : memref<8x128xbf16, #tpu.memory_space<vmem>>, vector<8x128xbf16>
    tpu.vector_store %arg5[%c0_75, %c0_76], %175 {strides = array<i32>} : memref<8x128xbf16, #tpu.memory_space<vmem>>, vector<8x128xbf16>,
    %c0_77 = arith.constant 0 : index
    %c512 = arith.constant 512 : index
    %178 = vector.load %arg4[%c0_77, %c512] : memref<8x2048xbf16, #tpu.memory_space<vmem>>, vector<8x128xbf16>
    tpu.vector_store %arg4[%c0_77, %c512], %175 {strides = array<i32>} : memref<8x2048xbf16, #tpu.memory_space<vmem>>, vector<8x128xbf16>,
    %c5 = arith.constant 5 : index
    %c0_78 = arith.constant 0 : index
    %c0_79 = arith.constant 0 : index
    %179 = vector.load %arg2[%c5, %c0_78, %c0_79] : memref<16x8x512xf32, #tpu.memory_space<vmem>>, vector<1x8x512xf32>
    %180 = vector.shape_cast %179 : vector<1x8x512xf32> to vector<8x512xf32>
    %c0_80 = arith.constant 0 : index
    %c0_81 = arith.constant 0 : index
    %181 = vector.load %arg5[%c0_80, %c0_81] : memref<8x128xbf16, #tpu.memory_space<vmem>>, vector<8x128xbf16>
    %cst_82 = arith.constant dense<0.000000e+00> : vector<8x512xf32>
    %182 = tpu.matmul %181, %3, %cst_82 {dimension_numbers = #tpu.dot_dimension_numbers<[1], [0], [0], [1], [0, 0, 1, 1], [], []>} : vector<8x128xbf16>, vector<128x512xbf16>, vector<8x512xf32> -> vector<8x512xf32>
    %183 = arith.addf %180, %182 : vector<8x512xf32>
    %184 = vector.extract_strided_slice %183 {offsets = [0, 0], sizes = [8, 128], strides = [1, 1]} : vector<8x512xf32> to vector<8x128xf32>
    %185 = arith.negf %184 : vector<8x128xf32>
    %186 = math.exp %185 : vector<8x128xf32>
    %cst_83 = arith.constant 1.000000e+00 : f32
    %187 = vector.broadcast %cst_83 : f32 to vector<8x128xf32>
    %188 = arith.addf %187, %186 : vector<8x128xf32>
    %189 = arith.divf %187, %188 : vector<8x128xf32>
    %190 = vector.extract_strided_slice %183 {offsets = [0, 128], sizes = [8, 128], strides = [1, 1]} : vector<8x512xf32> to vector<8x128xf32>
    %191 = arith.negf %190 : vector<8x128xf32>
    %192 = math.exp %191 : vector<8x128xf32>
    %cst_84 = arith.constant 1.000000e+00 : f32
    %193 = vector.broadcast %cst_84 : f32 to vector<8x128xf32>
    %194 = arith.addf %193, %192 : vector<8x128xf32>
    %195 = arith.divf %193, %194 : vector<8x128xf32>
    %196 = vector.extract_strided_slice %183 {offsets = [0, 256], sizes = [8, 128], strides = [1, 1]} : vector<8x512xf32> to vector<8x128xf32>
    %197 = math.tanh %196 : vector<8x128xf32>
    %198 = vector.extract_strided_slice %183 {offsets = [0, 384], sizes = [8, 128], strides = [1, 1]} : vector<8x512xf32> to vector<8x128xf32>
    %199 = arith.negf %198 : vector<8x128xf32>
    %200 = math.exp %199 : vector<8x128xf32>
    %cst_85 = arith.constant 1.000000e+00 : f32
    %201 = vector.broadcast %cst_85 : f32 to vector<8x128xf32>
    %202 = arith.addf %201, %200 : vector<8x128xf32>
    %203 = arith.divf %201, %202 : vector<8x128xf32>
    %c0_86 = arith.constant 0 : index
    %c0_87 = arith.constant 0 : index
    %204 = vector.load %arg6[%c0_86, %c0_87] : memref<8x128xf32, #tpu.memory_space<vmem>>, vector<8x128xf32>
    %205 = arith.mulf %195, %204 : vector<8x128xf32>
    %206 = arith.mulf %189, %197 : vector<8x128xf32>
    %207 = arith.addf %205, %206 : vector<8x128xf32>
    %208 = math.tanh %207 : vector<8x128xf32>
    %209 = arith.mulf %203, %208 : vector<8x128xf32>
    %210 = arith.truncf %209 : vector<8x128xf32> to vector<8x128xbf16>
    %c0_88 = arith.constant 0 : index
    %c0_89 = arith.constant 0 : index
    %211 = vector.load %arg6[%c0_88, %c0_89] : memref<8x128xf32, #tpu.memory_space<vmem>>, vector<8x128xf32>
    tpu.vector_store %arg6[%c0_88, %c0_89], %207 {strides = array<i32>} : memref<8x128xf32, #tpu.memory_space<vmem>>, vector<8x128xf32>,
    %c0_90 = arith.constant 0 : index
    %c0_91 = arith.constant 0 : index
    %212 = vector.load %arg5[%c0_90, %c0_91] : memref<8x128xbf16, #tpu.memory_space<vmem>>, vector<8x128xbf16>
    tpu.vector_store %arg5[%c0_90, %c0_91], %210 {strides = array<i32>} : memref<8x128xbf16, #tpu.memory_space<vmem>>, vector<8x128xbf16>,
    %c0_92 = arith.constant 0 : index
    %c640 = arith.constant 640 : index
    %213 = vector.load %arg4[%c0_92, %c640] : memref<8x2048xbf16, #tpu.memory_space<vmem>>, vector<8x128xbf16>
    tpu.vector_store %arg4[%c0_92, %c640], %210 {strides = array<i32>} : memref<8x2048xbf16, #tpu.memory_space<vmem>>, vector<8x128xbf16>,
    %c6 = arith.constant 6 : index
    %c0_93 = arith.constant 0 : index
    %c0_94 = arith.constant 0 : index
    %214 = vector.load %arg2[%c6, %c0_93, %c0_94] : memref<16x8x512xf32, #tpu.memory_space<vmem>>, vector<1x8x512xf32>
    %215 = vector.shape_cast %214 : vector<1x8x512xf32> to vector<8x512xf32>
    %c0_95 = arith.constant 0 : index
    %c0_96 = arith.constant 0 : index
    %216 = vector.load %arg5[%c0_95, %c0_96] : memref<8x128xbf16, #tpu.memory_space<vmem>>, vector<8x128xbf16>
    %cst_97 = arith.constant dense<0.000000e+00> : vector<8x512xf32>
    %217 = tpu.matmul %216, %3, %cst_97 {dimension_numbers = #tpu.dot_dimension_numbers<[1], [0], [0], [1], [0, 0, 1, 1], [], []>} : vector<8x128xbf16>, vector<128x512xbf16>, vector<8x512xf32> -> vector<8x512xf32>
    %218 = arith.addf %215, %217 : vector<8x512xf32>
    %219 = vector.extract_strided_slice %218 {offsets = [0, 0], sizes = [8, 128], strides = [1, 1]} : vector<8x512xf32> to vector<8x128xf32>
    %220 = arith.negf %219 : vector<8x128xf32>
    %221 = math.exp %220 : vector<8x128xf32>
    %cst_98 = arith.constant 1.000000e+00 : f32
    %222 = vector.broadcast %cst_98 : f32 to vector<8x128xf32>
    %223 = arith.addf %222, %221 : vector<8x128xf32>
    %224 = arith.divf %222, %223 : vector<8x128xf32>
    %225 = vector.extract_strided_slice %218 {offsets = [0, 128], sizes = [8, 128], strides = [1, 1]} : vector<8x512xf32> to vector<8x128xf32>
    %226 = arith.negf %225 : vector<8x128xf32>
    %227 = math.exp %226 : vector<8x128xf32>
    %cst_99 = arith.constant 1.000000e+00 : f32
    %228 = vector.broadcast %cst_99 : f32 to vector<8x128xf32>
    %229 = arith.addf %228, %227 : vector<8x128xf32>
    %230 = arith.divf %228, %229 : vector<8x128xf32>
    %231 = vector.extract_strided_slice %218 {offsets = [0, 256], sizes = [8, 128], strides = [1, 1]} : vector<8x512xf32> to vector<8x128xf32>
    %232 = math.tanh %231 : vector<8x128xf32>
    %233 = vector.extract_strided_slice %218 {offsets = [0, 384], sizes = [8, 128], strides = [1, 1]} : vector<8x512xf32> to vector<8x128xf32>
    %234 = arith.negf %233 : vector<8x128xf32>
    %235 = math.exp %234 : vector<8x128xf32>
    %cst_100 = arith.constant 1.000000e+00 : f32
    %236 = vector.broadcast %cst_100 : f32 to vector<8x128xf32>
    %237 = arith.addf %236, %235 : vector<8x128xf32>
    %238 = arith.divf %236, %237 : vector<8x128xf32>
    %c0_101 = arith.constant 0 : index
    %c0_102 = arith.constant 0 : index
    %239 = vector.load %arg6[%c0_101, %c0_102] : memref<8x128xf32, #tpu.memory_space<vmem>>, vector<8x128xf32>
    %240 = arith.mulf %230, %239 : vector<8x128xf32>
    %241 = arith.mulf %224, %232 : vector<8x128xf32>
    %242 = arith.addf %240, %241 : vector<8x128xf32>
    %243 = math.tanh %242 : vector<8x128xf32>
    %244 = arith.mulf %238, %243 : vector<8x128xf32>
    %245 = arith.truncf %244 : vector<8x128xf32> to vector<8x128xbf16>
    %c0_103 = arith.constant 0 : index
    %c0_104 = arith.constant 0 : index
    %246 = vector.load %arg6[%c0_103, %c0_104] : memref<8x128xf32, #tpu.memory_space<vmem>>, vector<8x128xf32>
    tpu.vector_store %arg6[%c0_103, %c0_104], %242 {strides = array<i32>} : memref<8x128xf32, #tpu.memory_space<vmem>>, vector<8x128xf32>,
    %c0_105 = arith.constant 0 : index
    %c0_106 = arith.constant 0 : index
    %247 = vector.load %arg5[%c0_105, %c0_106] : memref<8x128xbf16, #tpu.memory_space<vmem>>, vector<8x128xbf16>
    tpu.vector_store %arg5[%c0_105, %c0_106], %245 {strides = array<i32>} : memref<8x128xbf16, #tpu.memory_space<vmem>>, vector<8x128xbf16>,
    %c0_107 = arith.constant 0 : index
    %c768 = arith.constant 768 : index
    %248 = vector.load %arg4[%c0_107, %c768] : memref<8x2048xbf16, #tpu.memory_space<vmem>>, vector<8x128xbf16>
    tpu.vector_store %arg4[%c0_107, %c768], %245 {strides = array<i32>} : memref<8x2048xbf16, #tpu.memory_space<vmem>>, vector<8x128xbf16>,
    %c7 = arith.constant 7 : index
    %c0_108 = arith.constant 0 : index
    %c0_109 = arith.constant 0 : index
    %249 = vector.load %arg2[%c7, %c0_108, %c0_109] : memref<16x8x512xf32, #tpu.memory_space<vmem>>, vector<1x8x512xf32>
    %250 = vector.shape_cast %249 : vector<1x8x512xf32> to vector<8x512xf32>
    %c0_110 = arith.constant 0 : index
    %c0_111 = arith.constant 0 : index
    %251 = vector.load %arg5[%c0_110, %c0_111] : memref<8x128xbf16, #tpu.memory_space<vmem>>, vector<8x128xbf16>
    %cst_112 = arith.constant dense<0.000000e+00> : vector<8x512xf32>
    %252 = tpu.matmul %251, %3, %cst_112 {dimension_numbers = #tpu.dot_dimension_numbers<[1], [0], [0], [1], [0, 0, 1, 1], [], []>} : vector<8x128xbf16>, vector<128x512xbf16>, vector<8x512xf32> -> vector<8x512xf32>
    %253 = arith.addf %250, %252 : vector<8x512xf32>
    %254 = vector.extract_strided_slice %253 {offsets = [0, 0], sizes = [8, 128], strides = [1, 1]} : vector<8x512xf32> to vector<8x128xf32>
    %255 = arith.negf %254 : vector<8x128xf32>
    %256 = math.exp %255 : vector<8x128xf32>
    %cst_113 = arith.constant 1.000000e+00 : f32
    %257 = vector.broadcast %cst_113 : f32 to vector<8x128xf32>
    %258 = arith.addf %257, %256 : vector<8x128xf32>
    %259 = arith.divf %257, %258 : vector<8x128xf32>
    %260 = vector.extract_strided_slice %253 {offsets = [0, 128], sizes = [8, 128], strides = [1, 1]} : vector<8x512xf32> to vector<8x128xf32>
    %261 = arith.negf %260 : vector<8x128xf32>
    %262 = math.exp %261 : vector<8x128xf32>
    %cst_114 = arith.constant 1.000000e+00 : f32
    %263 = vector.broadcast %cst_114 : f32 to vector<8x128xf32>
    %264 = arith.addf %263, %262 : vector<8x128xf32>
    %265 = arith.divf %263, %264 : vector<8x128xf32>
    %266 = vector.extract_strided_slice %253 {offsets = [0, 256], sizes = [8, 128], strides = [1, 1]} : vector<8x512xf32> to vector<8x128xf32>
    %267 = math.tanh %266 : vector<8x128xf32>
    %268 = vector.extract_strided_slice %253 {offsets = [0, 384], sizes = [8, 128], strides = [1, 1]} : vector<8x512xf32> to vector<8x128xf32>
    %269 = arith.negf %268 : vector<8x128xf32>
    %270 = math.exp %269 : vector<8x128xf32>
    %cst_115 = arith.constant 1.000000e+00 : f32
    %271 = vector.broadcast %cst_115 : f32 to vector<8x128xf32>
    %272 = arith.addf %271, %270 : vector<8x128xf32>
    %273 = arith.divf %271, %272 : vector<8x128xf32>
    %c0_116 = arith.constant 0 : index
    %c0_117 = arith.constant 0 : index
    %274 = vector.load %arg6[%c0_116, %c0_117] : memref<8x128xf32, #tpu.memory_space<vmem>>, vector<8x128xf32>
    %275 = arith.mulf %265, %274 : vector<8x128xf32>
    %276 = arith.mulf %259, %267 : vector<8x128xf32>
    %277 = arith.addf %275, %276 : vector<8x128xf32>
    %278 = math.tanh %277 : vector<8x128xf32>
    %279 = arith.mulf %273, %278 : vector<8x128xf32>
    %280 = arith.truncf %279 : vector<8x128xf32> to vector<8x128xbf16>
    %c0_118 = arith.constant 0 : index
    %c0_119 = arith.constant 0 : index
    %281 = vector.load %arg6[%c0_118, %c0_119] : memref<8x128xf32, #tpu.memory_space<vmem>>, vector<8x128xf32>
    tpu.vector_store %arg6[%c0_118, %c0_119], %277 {strides = array<i32>} : memref<8x128xf32, #tpu.memory_space<vmem>>, vector<8x128xf32>,
    %c0_120 = arith.constant 0 : index
    %c0_121 = arith.constant 0 : index
    %282 = vector.load %arg5[%c0_120, %c0_121] : memref<8x128xbf16, #tpu.memory_space<vmem>>, vector<8x128xbf16>
    tpu.vector_store %arg5[%c0_120, %c0_121], %280 {strides = array<i32>} : memref<8x128xbf16, #tpu.memory_space<vmem>>, vector<8x128xbf16>,
    %c0_122 = arith.constant 0 : index
    %c896 = arith.constant 896 : index
    %283 = vector.load %arg4[%c0_122, %c896] : memref<8x2048xbf16, #tpu.memory_space<vmem>>, vector<8x128xbf16>
    tpu.vector_store %arg4[%c0_122, %c896], %280 {strides = array<i32>} : memref<8x2048xbf16, #tpu.memory_space<vmem>>, vector<8x128xbf16>,
    %c8 = arith.constant 8 : index
    %c0_123 = arith.constant 0 : index
    %c0_124 = arith.constant 0 : index
    %284 = vector.load %arg2[%c8, %c0_123, %c0_124] : memref<16x8x512xf32, #tpu.memory_space<vmem>>, vector<1x8x512xf32>
    %285 = vector.shape_cast %284 : vector<1x8x512xf32> to vector<8x512xf32>
    %c0_125 = arith.constant 0 : index
    %c0_126 = arith.constant 0 : index
    %286 = vector.load %arg5[%c0_125, %c0_126] : memref<8x128xbf16, #tpu.memory_space<vmem>>, vector<8x128xbf16>
    %cst_127 = arith.constant dense<0.000000e+00> : vector<8x512xf32>
    %287 = tpu.matmul %286, %3, %cst_127 {dimension_numbers = #tpu.dot_dimension_numbers<[1], [0], [0], [1], [0, 0, 1, 1], [], []>} : vector<8x128xbf16>, vector<128x512xbf16>, vector<8x512xf32> -> vector<8x512xf32>
    %288 = arith.addf %285, %287 : vector<8x512xf32>
    %289 = vector.extract_strided_slice %288 {offsets = [0, 0], sizes = [8, 128], strides = [1, 1]} : vector<8x512xf32> to vector<8x128xf32>
    %290 = arith.negf %289 : vector<8x128xf32>
    %291 = math.exp %290 : vector<8x128xf32>
    %cst_128 = arith.constant 1.000000e+00 : f32
    %292 = vector.broadcast %cst_128 : f32 to vector<8x128xf32>
    %293 = arith.addf %292, %291 : vector<8x128xf32>
    %294 = arith.divf %292, %293 : vector<8x128xf32>
    %295 = vector.extract_strided_slice %288 {offsets = [0, 128], sizes = [8, 128], strides = [1, 1]} : vector<8x512xf32> to vector<8x128xf32>
    %296 = arith.negf %295 : vector<8x128xf32>
    %297 = math.exp %296 : vector<8x128xf32>
    %cst_129 = arith.constant 1.000000e+00 : f32
    %298 = vector.broadcast %cst_129 : f32 to vector<8x128xf32>
    %299 = arith.addf %298, %297 : vector<8x128xf32>
    %300 = arith.divf %298, %299 : vector<8x128xf32>
    %301 = vector.extract_strided_slice %288 {offsets = [0, 256], sizes = [8, 128], strides = [1, 1]} : vector<8x512xf32> to vector<8x128xf32>
    %302 = math.tanh %301 : vector<8x128xf32>
    %303 = vector.extract_strided_slice %288 {offsets = [0, 384], sizes = [8, 128], strides = [1, 1]} : vector<8x512xf32> to vector<8x128xf32>
    %304 = arith.negf %303 : vector<8x128xf32>
    %305 = math.exp %304 : vector<8x128xf32>
    %cst_130 = arith.constant 1.000000e+00 : f32
    %306 = vector.broadcast %cst_130 : f32 to vector<8x128xf32>
    %307 = arith.addf %306, %305 : vector<8x128xf32>
    %308 = arith.divf %306, %307 : vector<8x128xf32>
    %c0_131 = arith.constant 0 : index
    %c0_132 = arith.constant 0 : index
    %309 = vector.load %arg6[%c0_131, %c0_132] : memref<8x128xf32, #tpu.memory_space<vmem>>, vector<8x128xf32>
    %310 = arith.mulf %300, %309 : vector<8x128xf32>
    %311 = arith.mulf %294, %302 : vector<8x128xf32>
    %312 = arith.addf %310, %311 : vector<8x128xf32>
    %313 = math.tanh %312 : vector<8x128xf32>
    %314 = arith.mulf %308, %313 : vector<8x128xf32>
    %315 = arith.truncf %314 : vector<8x128xf32> to vector<8x128xbf16>
    %c0_133 = arith.constant 0 : index
    %c0_134 = arith.constant 0 : index
    %316 = vector.load %arg6[%c0_133, %c0_134] : memref<8x128xf32, #tpu.memory_space<vmem>>, vector<8x128xf32>
    tpu.vector_store %arg6[%c0_133, %c0_134], %312 {strides = array<i32>} : memref<8x128xf32, #tpu.memory_space<vmem>>, vector<8x128xf32>,
    %c0_135 = arith.constant 0 : index
    %c0_136 = arith.constant 0 : index
    %317 = vector.load %arg5[%c0_135, %c0_136] : memref<8x128xbf16, #tpu.memory_space<vmem>>, vector<8x128xbf16>
    tpu.vector_store %arg5[%c0_135, %c0_136], %315 {strides = array<i32>} : memref<8x128xbf16, #tpu.memory_space<vmem>>, vector<8x128xbf16>,
    %c0_137 = arith.constant 0 : index
    %c1024 = arith.constant 1024 : index
    %318 = vector.load %arg4[%c0_137, %c1024] : memref<8x2048xbf16, #tpu.memory_space<vmem>>, vector<8x128xbf16>
    tpu.vector_store %arg4[%c0_137, %c1024], %315 {strides = array<i32>} : memref<8x2048xbf16, #tpu.memory_space<vmem>>, vector<8x128xbf16>,
    %c9 = arith.constant 9 : index
    %c0_138 = arith.constant 0 : index
    %c0_139 = arith.constant 0 : index
    %319 = vector.load %arg2[%c9, %c0_138, %c0_139] : memref<16x8x512xf32, #tpu.memory_space<vmem>>, vector<1x8x512xf32>
    %320 = vector.shape_cast %319 : vector<1x8x512xf32> to vector<8x512xf32>
    %c0_140 = arith.constant 0 : index
    %c0_141 = arith.constant 0 : index
    %321 = vector.load %arg5[%c0_140, %c0_141] : memref<8x128xbf16, #tpu.memory_space<vmem>>, vector<8x128xbf16>
    %cst_142 = arith.constant dense<0.000000e+00> : vector<8x512xf32>
    %322 = tpu.matmul %321, %3, %cst_142 {dimension_numbers = #tpu.dot_dimension_numbers<[1], [0], [0], [1], [0, 0, 1, 1], [], []>} : vector<8x128xbf16>, vector<128x512xbf16>, vector<8x512xf32> -> vector<8x512xf32>
    %323 = arith.addf %320, %322 : vector<8x512xf32>
    %324 = vector.extract_strided_slice %323 {offsets = [0, 0], sizes = [8, 128], strides = [1, 1]} : vector<8x512xf32> to vector<8x128xf32>
    %325 = arith.negf %324 : vector<8x128xf32>
    %326 = math.exp %325 : vector<8x128xf32>
    %cst_143 = arith.constant 1.000000e+00 : f32
    %327 = vector.broadcast %cst_143 : f32 to vector<8x128xf32>
    %328 = arith.addf %327, %326 : vector<8x128xf32>
    %329 = arith.divf %327, %328 : vector<8x128xf32>
    %330 = vector.extract_strided_slice %323 {offsets = [0, 128], sizes = [8, 128], strides = [1, 1]} : vector<8x512xf32> to vector<8x128xf32>
    %331 = arith.negf %330 : vector<8x128xf32>
    %332 = math.exp %331 : vector<8x128xf32>
    %cst_144 = arith.constant 1.000000e+00 : f32
    %333 = vector.broadcast %cst_144 : f32 to vector<8x128xf32>
    %334 = arith.addf %333, %332 : vector<8x128xf32>
    %335 = arith.divf %333, %334 : vector<8x128xf32>
    %336 = vector.extract_strided_slice %323 {offsets = [0, 256], sizes = [8, 128], strides = [1, 1]} : vector<8x512xf32> to vector<8x128xf32>
    %337 = math.tanh %336 : vector<8x128xf32>
    %338 = vector.extract_strided_slice %323 {offsets = [0, 384], sizes = [8, 128], strides = [1, 1]} : vector<8x512xf32> to vector<8x128xf32>
    %339 = arith.negf %338 : vector<8x128xf32>
    %340 = math.exp %339 : vector<8x128xf32>
    %cst_145 = arith.constant 1.000000e+00 : f32
    %341 = vector.broadcast %cst_145 : f32 to vector<8x128xf32>
    %342 = arith.addf %341, %340 : vector<8x128xf32>
    %343 = arith.divf %341, %342 : vector<8x128xf32>
    %c0_146 = arith.constant 0 : index
    %c0_147 = arith.constant 0 : index
    %344 = vector.load %arg6[%c0_146, %c0_147] : memref<8x128xf32, #tpu.memory_space<vmem>>, vector<8x128xf32>
    %345 = arith.mulf %335, %344 : vector<8x128xf32>
    %346 = arith.mulf %329, %337 : vector<8x128xf32>
    %347 = arith.addf %345, %346 : vector<8x128xf32>
    %348 = math.tanh %347 : vector<8x128xf32>
    %349 = arith.mulf %343, %348 : vector<8x128xf32>
    %350 = arith.truncf %349 : vector<8x128xf32> to vector<8x128xbf16>
    %c0_148 = arith.constant 0 : index
    %c0_149 = arith.constant 0 : index
    %351 = vector.load %arg6[%c0_148, %c0_149] : memref<8x128xf32, #tpu.memory_space<vmem>>, vector<8x128xf32>
    tpu.vector_store %arg6[%c0_148, %c0_149], %347 {strides = array<i32>} : memref<8x128xf32, #tpu.memory_space<vmem>>, vector<8x128xf32>,
    %c0_150 = arith.constant 0 : index
    %c0_151 = arith.constant 0 : index
    %352 = vector.load %arg5[%c0_150, %c0_151] : memref<8x128xbf16, #tpu.memory_space<vmem>>, vector<8x128xbf16>
    tpu.vector_store %arg5[%c0_150, %c0_151], %350 {strides = array<i32>} : memref<8x128xbf16, #tpu.memory_space<vmem>>, vector<8x128xbf16>,
    %c0_152 = arith.constant 0 : index
    %c1152 = arith.constant 1152 : index
    %353 = vector.load %arg4[%c0_152, %c1152] : memref<8x2048xbf16, #tpu.memory_space<vmem>>, vector<8x128xbf16>
    tpu.vector_store %arg4[%c0_152, %c1152], %350 {strides = array<i32>} : memref<8x2048xbf16, #tpu.memory_space<vmem>>, vector<8x128xbf16>,
    %c10 = arith.constant 10 : index
    %c0_153 = arith.constant 0 : index
    %c0_154 = arith.constant 0 : index
    %354 = vector.load %arg2[%c10, %c0_153, %c0_154] : memref<16x8x512xf32, #tpu.memory_space<vmem>>, vector<1x8x512xf32>
    %355 = vector.shape_cast %354 : vector<1x8x512xf32> to vector<8x512xf32>
    %c0_155 = arith.constant 0 : index
    %c0_156 = arith.constant 0 : index
    %356 = vector.load %arg5[%c0_155, %c0_156] : memref<8x128xbf16, #tpu.memory_space<vmem>>, vector<8x128xbf16>
    %cst_157 = arith.constant dense<0.000000e+00> : vector<8x512xf32>
    %357 = tpu.matmul %356, %3, %cst_157 {dimension_numbers = #tpu.dot_dimension_numbers<[1], [0], [0], [1], [0, 0, 1, 1], [], []>} : vector<8x128xbf16>, vector<128x512xbf16>, vector<8x512xf32> -> vector<8x512xf32>
    %358 = arith.addf %355, %357 : vector<8x512xf32>
    %359 = vector.extract_strided_slice %358 {offsets = [0, 0], sizes = [8, 128], strides = [1, 1]} : vector<8x512xf32> to vector<8x128xf32>
    %360 = arith.negf %359 : vector<8x128xf32>
    %361 = math.exp %360 : vector<8x128xf32>
    %cst_158 = arith.constant 1.000000e+00 : f32
    %362 = vector.broadcast %cst_158 : f32 to vector<8x128xf32>
    %363 = arith.addf %362, %361 : vector<8x128xf32>
    %364 = arith.divf %362, %363 : vector<8x128xf32>
    %365 = vector.extract_strided_slice %358 {offsets = [0, 128], sizes = [8, 128], strides = [1, 1]} : vector<8x512xf32> to vector<8x128xf32>
    %366 = arith.negf %365 : vector<8x128xf32>
    %367 = math.exp %366 : vector<8x128xf32>
    %cst_159 = arith.constant 1.000000e+00 : f32
    %368 = vector.broadcast %cst_159 : f32 to vector<8x128xf32>
    %369 = arith.addf %368, %367 : vector<8x128xf32>
    %370 = arith.divf %368, %369 : vector<8x128xf32>
    %371 = vector.extract_strided_slice %358 {offsets = [0, 256], sizes = [8, 128], strides = [1, 1]} : vector<8x512xf32> to vector<8x128xf32>
    %372 = math.tanh %371 : vector<8x128xf32>
    %373 = vector.extract_strided_slice %358 {offsets = [0, 384], sizes = [8, 128], strides = [1, 1]} : vector<8x512xf32> to vector<8x128xf32>
    %374 = arith.negf %373 : vector<8x128xf32>
    %375 = math.exp %374 : vector<8x128xf32>
    %cst_160 = arith.constant 1.000000e+00 : f32
    %376 = vector.broadcast %cst_160 : f32 to vector<8x128xf32>
    %377 = arith.addf %376, %375 : vector<8x128xf32>
    %378 = arith.divf %376, %377 : vector<8x128xf32>
    %c0_161 = arith.constant 0 : index
    %c0_162 = arith.constant 0 : index
    %379 = vector.load %arg6[%c0_161, %c0_162] : memref<8x128xf32, #tpu.memory_space<vmem>>, vector<8x128xf32>
    %380 = arith.mulf %370, %379 : vector<8x128xf32>
    %381 = arith.mulf %364, %372 : vector<8x128xf32>
    %382 = arith.addf %380, %381 : vector<8x128xf32>
    %383 = math.tanh %382 : vector<8x128xf32>
    %384 = arith.mulf %378, %383 : vector<8x128xf32>
    %385 = arith.truncf %384 : vector<8x128xf32> to vector<8x128xbf16>
    %c0_163 = arith.constant 0 : index
    %c0_164 = arith.constant 0 : index
    %386 = vector.load %arg6[%c0_163, %c0_164] : memref<8x128xf32, #tpu.memory_space<vmem>>, vector<8x128xf32>
    tpu.vector_store %arg6[%c0_163, %c0_164], %382 {strides = array<i32>} : memref<8x128xf32, #tpu.memory_space<vmem>>, vector<8x128xf32>,
    %c0_165 = arith.constant 0 : index
    %c0_166 = arith.constant 0 : index
    %387 = vector.load %arg5[%c0_165, %c0_166] : memref<8x128xbf16, #tpu.memory_space<vmem>>, vector<8x128xbf16>
    tpu.vector_store %arg5[%c0_165, %c0_166], %385 {strides = array<i32>} : memref<8x128xbf16, #tpu.memory_space<vmem>>, vector<8x128xbf16>,
    %c0_167 = arith.constant 0 : index
    %c1280 = arith.constant 1280 : index
    %388 = vector.load %arg4[%c0_167, %c1280] : memref<8x2048xbf16, #tpu.memory_space<vmem>>, vector<8x128xbf16>
    tpu.vector_store %arg4[%c0_167, %c1280], %385 {strides = array<i32>} : memref<8x2048xbf16, #tpu.memory_space<vmem>>, vector<8x128xbf16>,
    %c11 = arith.constant 11 : index
    %c0_168 = arith.constant 0 : index
    %c0_169 = arith.constant 0 : index
    %389 = vector.load %arg2[%c11, %c0_168, %c0_169] : memref<16x8x512xf32, #tpu.memory_space<vmem>>, vector<1x8x512xf32>
    %390 = vector.shape_cast %389 : vector<1x8x512xf32> to vector<8x512xf32>
    %c0_170 = arith.constant 0 : index
    %c0_171 = arith.constant 0 : index
    %391 = vector.load %arg5[%c0_170, %c0_171] : memref<8x128xbf16, #tpu.memory_space<vmem>>, vector<8x128xbf16>
    %cst_172 = arith.constant dense<0.000000e+00> : vector<8x512xf32>
    %392 = tpu.matmul %391, %3, %cst_172 {dimension_numbers = #tpu.dot_dimension_numbers<[1], [0], [0], [1], [0, 0, 1, 1], [], []>} : vector<8x128xbf16>, vector<128x512xbf16>, vector<8x512xf32> -> vector<8x512xf32>
    %393 = arith.addf %390, %392 : vector<8x512xf32>
    %394 = vector.extract_strided_slice %393 {offsets = [0, 0], sizes = [8, 128], strides = [1, 1]} : vector<8x512xf32> to vector<8x128xf32>
    %395 = arith.negf %394 : vector<8x128xf32>
    %396 = math.exp %395 : vector<8x128xf32>
    %cst_173 = arith.constant 1.000000e+00 : f32
    %397 = vector.broadcast %cst_173 : f32 to vector<8x128xf32>
    %398 = arith.addf %397, %396 : vector<8x128xf32>
    %399 = arith.divf %397, %398 : vector<8x128xf32>
    %400 = vector.extract_strided_slice %393 {offsets = [0, 128], sizes = [8, 128], strides = [1, 1]} : vector<8x512xf32> to vector<8x128xf32>
    %401 = arith.negf %400 : vector<8x128xf32>
    %402 = math.exp %401 : vector<8x128xf32>
    %cst_174 = arith.constant 1.000000e+00 : f32
    %403 = vector.broadcast %cst_174 : f32 to vector<8x128xf32>
    %404 = arith.addf %403, %402 : vector<8x128xf32>
    %405 = arith.divf %403, %404 : vector<8x128xf32>
    %406 = vector.extract_strided_slice %393 {offsets = [0, 256], sizes = [8, 128], strides = [1, 1]} : vector<8x512xf32> to vector<8x128xf32>
    %407 = math.tanh %406 : vector<8x128xf32>
    %408 = vector.extract_strided_slice %393 {offsets = [0, 384], sizes = [8, 128], strides = [1, 1]} : vector<8x512xf32> to vector<8x128xf32>
    %409 = arith.negf %408 : vector<8x128xf32>
    %410 = math.exp %409 : vector<8x128xf32>
    %cst_175 = arith.constant 1.000000e+00 : f32
    %411 = vector.broadcast %cst_175 : f32 to vector<8x128xf32>
    %412 = arith.addf %411, %410 : vector<8x128xf32>
    %413 = arith.divf %411, %412 : vector<8x128xf32>
    %c0_176 = arith.constant 0 : index
    %c0_177 = arith.constant 0 : index
    %414 = vector.load %arg6[%c0_176, %c0_177] : memref<8x128xf32, #tpu.memory_space<vmem>>, vector<8x128xf32>
    %415 = arith.mulf %405, %414 : vector<8x128xf32>
    %416 = arith.mulf %399, %407 : vector<8x128xf32>
    %417 = arith.addf %415, %416 : vector<8x128xf32>
    %418 = math.tanh %417 : vector<8x128xf32>
    %419 = arith.mulf %413, %418 : vector<8x128xf32>
    %420 = arith.truncf %419 : vector<8x128xf32> to vector<8x128xbf16>
    %c0_178 = arith.constant 0 : index
    %c0_179 = arith.constant 0 : index
    %421 = vector.load %arg6[%c0_178, %c0_179] : memref<8x128xf32, #tpu.memory_space<vmem>>, vector<8x128xf32>
    tpu.vector_store %arg6[%c0_178, %c0_179], %417 {strides = array<i32>} : memref<8x128xf32, #tpu.memory_space<vmem>>, vector<8x128xf32>,
    %c0_180 = arith.constant 0 : index
    %c0_181 = arith.constant 0 : index
    %422 = vector.load %arg5[%c0_180, %c0_181] : memref<8x128xbf16, #tpu.memory_space<vmem>>, vector<8x128xbf16>
    tpu.vector_store %arg5[%c0_180, %c0_181], %420 {strides = array<i32>} : memref<8x128xbf16, #tpu.memory_space<vmem>>, vector<8x128xbf16>,
    %c0_182 = arith.constant 0 : index
    %c1408 = arith.constant 1408 : index
    %423 = vector.load %arg4[%c0_182, %c1408] : memref<8x2048xbf16, #tpu.memory_space<vmem>>, vector<8x128xbf16>
    tpu.vector_store %arg4[%c0_182, %c1408], %420 {strides = array<i32>} : memref<8x2048xbf16, #tpu.memory_space<vmem>>, vector<8x128xbf16>,
    %c12 = arith.constant 12 : index
    %c0_183 = arith.constant 0 : index
    %c0_184 = arith.constant 0 : index
    %424 = vector.load %arg2[%c12, %c0_183, %c0_184] : memref<16x8x512xf32, #tpu.memory_space<vmem>>, vector<1x8x512xf32>
    %425 = vector.shape_cast %424 : vector<1x8x512xf32> to vector<8x512xf32>
    %c0_185 = arith.constant 0 : index
    %c0_186 = arith.constant 0 : index
    %426 = vector.load %arg5[%c0_185, %c0_186] : memref<8x128xbf16, #tpu.memory_space<vmem>>, vector<8x128xbf16>
    %cst_187 = arith.constant dense<0.000000e+00> : vector<8x512xf32>
    %427 = tpu.matmul %426, %3, %cst_187 {dimension_numbers = #tpu.dot_dimension_numbers<[1], [0], [0], [1], [0, 0, 1, 1], [], []>} : vector<8x128xbf16>, vector<128x512xbf16>, vector<8x512xf32> -> vector<8x512xf32>
    %428 = arith.addf %425, %427 : vector<8x512xf32>
    %429 = vector.extract_strided_slice %428 {offsets = [0, 0], sizes = [8, 128], strides = [1, 1]} : vector<8x512xf32> to vector<8x128xf32>
    %430 = arith.negf %429 : vector<8x128xf32>
    %431 = math.exp %430 : vector<8x128xf32>
    %cst_188 = arith.constant 1.000000e+00 : f32
    %432 = vector.broadcast %cst_188 : f32 to vector<8x128xf32>
    %433 = arith.addf %432, %431 : vector<8x128xf32>
    %434 = arith.divf %432, %433 : vector<8x128xf32>
    %435 = vector.extract_strided_slice %428 {offsets = [0, 128], sizes = [8, 128], strides = [1, 1]} : vector<8x512xf32> to vector<8x128xf32>
    %436 = arith.negf %435 : vector<8x128xf32>
    %437 = math.exp %436 : vector<8x128xf32>
    %cst_189 = arith.constant 1.000000e+00 : f32
    %438 = vector.broadcast %cst_189 : f32 to vector<8x128xf32>
    %439 = arith.addf %438, %437 : vector<8x128xf32>
    %440 = arith.divf %438, %439 : vector<8x128xf32>
    %441 = vector.extract_strided_slice %428 {offsets = [0, 256], sizes = [8, 128], strides = [1, 1]} : vector<8x512xf32> to vector<8x128xf32>
    %442 = math.tanh %441 : vector<8x128xf32>
    %443 = vector.extract_strided_slice %428 {offsets = [0, 384], sizes = [8, 128], strides = [1, 1]} : vector<8x512xf32> to vector<8x128xf32>
    %444 = arith.negf %443 : vector<8x128xf32>
    %445 = math.exp %444 : vector<8x128xf32>
    %cst_190 = arith.constant 1.000000e+00 : f32
    %446 = vector.broadcast %cst_190 : f32 to vector<8x128xf32>
    %447 = arith.addf %446, %445 : vector<8x128xf32>
    %448 = arith.divf %446, %447 : vector<8x128xf32>
    %c0_191 = arith.constant 0 : index
    %c0_192 = arith.constant 0 : index
    %449 = vector.load %arg6[%c0_191, %c0_192] : memref<8x128xf32, #tpu.memory_space<vmem>>, vector<8x128xf32>
    %450 = arith.mulf %440, %449 : vector<8x128xf32>
    %451 = arith.mulf %434, %442 : vector<8x128xf32>
    %452 = arith.addf %450, %451 : vector<8x128xf32>
    %453 = math.tanh %452 : vector<8x128xf32>
    %454 = arith.mulf %448, %453 : vector<8x128xf32>
    %455 = arith.truncf %454 : vector<8x128xf32> to vector<8x128xbf16>
    %c0_193 = arith.constant 0 : index
    %c0_194 = arith.constant 0 : index
    %456 = vector.load %arg6[%c0_193, %c0_194] : memref<8x128xf32, #tpu.memory_space<vmem>>, vector<8x128xf32>
    tpu.vector_store %arg6[%c0_193, %c0_194], %452 {strides = array<i32>} : memref<8x128xf32, #tpu.memory_space<vmem>>, vector<8x128xf32>,
    %c0_195 = arith.constant 0 : index
    %c0_196 = arith.constant 0 : index
    %457 = vector.load %arg5[%c0_195, %c0_196] : memref<8x128xbf16, #tpu.memory_space<vmem>>, vector<8x128xbf16>
    tpu.vector_store %arg5[%c0_195, %c0_196], %455 {strides = array<i32>} : memref<8x128xbf16, #tpu.memory_space<vmem>>, vector<8x128xbf16>,
    %c0_197 = arith.constant 0 : index
    %c1536 = arith.constant 1536 : index
    %458 = vector.load %arg4[%c0_197, %c1536] : memref<8x2048xbf16, #tpu.memory_space<vmem>>, vector<8x128xbf16>
    tpu.vector_store %arg4[%c0_197, %c1536], %455 {strides = array<i32>} : memref<8x2048xbf16, #tpu.memory_space<vmem>>, vector<8x128xbf16>,
    %c13 = arith.constant 13 : index
    %c0_198 = arith.constant 0 : index
    %c0_199 = arith.constant 0 : index
    %459 = vector.load %arg2[%c13, %c0_198, %c0_199] : memref<16x8x512xf32, #tpu.memory_space<vmem>>, vector<1x8x512xf32>
    %460 = vector.shape_cast %459 : vector<1x8x512xf32> to vector<8x512xf32>
    %c0_200 = arith.constant 0 : index
    %c0_201 = arith.constant 0 : index
    %461 = vector.load %arg5[%c0_200, %c0_201] : memref<8x128xbf16, #tpu.memory_space<vmem>>, vector<8x128xbf16>
    %cst_202 = arith.constant dense<0.000000e+00> : vector<8x512xf32>
    %462 = tpu.matmul %461, %3, %cst_202 {dimension_numbers = #tpu.dot_dimension_numbers<[1], [0], [0], [1], [0, 0, 1, 1], [], []>} : vector<8x128xbf16>, vector<128x512xbf16>, vector<8x512xf32> -> vector<8x512xf32>
    %463 = arith.addf %460, %462 : vector<8x512xf32>
    %464 = vector.extract_strided_slice %463 {offsets = [0, 0], sizes = [8, 128], strides = [1, 1]} : vector<8x512xf32> to vector<8x128xf32>
    %465 = arith.negf %464 : vector<8x128xf32>
    %466 = math.exp %465 : vector<8x128xf32>
    %cst_203 = arith.constant 1.000000e+00 : f32
    %467 = vector.broadcast %cst_203 : f32 to vector<8x128xf32>
    %468 = arith.addf %467, %466 : vector<8x128xf32>
    %469 = arith.divf %467, %468 : vector<8x128xf32>
    %470 = vector.extract_strided_slice %463 {offsets = [0, 128], sizes = [8, 128], strides = [1, 1]} : vector<8x512xf32> to vector<8x128xf32>
    %471 = arith.negf %470 : vector<8x128xf32>
    %472 = math.exp %471 : vector<8x128xf32>
    %cst_204 = arith.constant 1.000000e+00 : f32
    %473 = vector.broadcast %cst_204 : f32 to vector<8x128xf32>
    %474 = arith.addf %473, %472 : vector<8x128xf32>
    %475 = arith.divf %473, %474 : vector<8x128xf32>
    %476 = vector.extract_strided_slice %463 {offsets = [0, 256], sizes = [8, 128], strides = [1, 1]} : vector<8x512xf32> to vector<8x128xf32>
    %477 = math.tanh %476 : vector<8x128xf32>
    %478 = vector.extract_strided_slice %463 {offsets = [0, 384], sizes = [8, 128], strides = [1, 1]} : vector<8x512xf32> to vector<8x128xf32>
    %479 = arith.negf %478 : vector<8x128xf32>
    %480 = math.exp %479 : vector<8x128xf32>
    %cst_205 = arith.constant 1.000000e+00 : f32
    %481 = vector.broadcast %cst_205 : f32 to vector<8x128xf32>
    %482 = arith.addf %481, %480 : vector<8x128xf32>
    %483 = arith.divf %481, %482 : vector<8x128xf32>
    %c0_206 = arith.constant 0 : index
    %c0_207 = arith.constant 0 : index
    %484 = vector.load %arg6[%c0_206, %c0_207] : memref<8x128xf32, #tpu.memory_space<vmem>>, vector<8x128xf32>
    %485 = arith.mulf %475, %484 : vector<8x128xf32>
    %486 = arith.mulf %469, %477 : vector<8x128xf32>
    %487 = arith.addf %485, %486 : vector<8x128xf32>
    %488 = math.tanh %487 : vector<8x128xf32>
    %489 = arith.mulf %483, %488 : vector<8x128xf32>
    %490 = arith.truncf %489 : vector<8x128xf32> to vector<8x128xbf16>
    %c0_208 = arith.constant 0 : index
    %c0_209 = arith.constant 0 : index
    %491 = vector.load %arg6[%c0_208, %c0_209] : memref<8x128xf32, #tpu.memory_space<vmem>>, vector<8x128xf32>
    tpu.vector_store %arg6[%c0_208, %c0_209], %487 {strides = array<i32>} : memref<8x128xf32, #tpu.memory_space<vmem>>, vector<8x128xf32>,
    %c0_210 = arith.constant 0 : index
    %c0_211 = arith.constant 0 : index
    %492 = vector.load %arg5[%c0_210, %c0_211] : memref<8x128xbf16, #tpu.memory_space<vmem>>, vector<8x128xbf16>
    tpu.vector_store %arg5[%c0_210, %c0_211], %490 {strides = array<i32>} : memref<8x128xbf16, #tpu.memory_space<vmem>>, vector<8x128xbf16>,
    %c0_212 = arith.constant 0 : index
    %c1664 = arith.constant 1664 : index
    %493 = vector.load %arg4[%c0_212, %c1664] : memref<8x2048xbf16, #tpu.memory_space<vmem>>, vector<8x128xbf16>
    tpu.vector_store %arg4[%c0_212, %c1664], %490 {strides = array<i32>} : memref<8x2048xbf16, #tpu.memory_space<vmem>>, vector<8x128xbf16>,
    %c14 = arith.constant 14 : index
    %c0_213 = arith.constant 0 : index
    %c0_214 = arith.constant 0 : index
    %494 = vector.load %arg2[%c14, %c0_213, %c0_214] : memref<16x8x512xf32, #tpu.memory_space<vmem>>, vector<1x8x512xf32>
    %495 = vector.shape_cast %494 : vector<1x8x512xf32> to vector<8x512xf32>
    %c0_215 = arith.constant 0 : index
    %c0_216 = arith.constant 0 : index
    %496 = vector.load %arg5[%c0_215, %c0_216] : memref<8x128xbf16, #tpu.memory_space<vmem>>, vector<8x128xbf16>
    %cst_217 = arith.constant dense<0.000000e+00> : vector<8x512xf32>
    %497 = tpu.matmul %496, %3, %cst_217 {dimension_numbers = #tpu.dot_dimension_numbers<[1], [0], [0], [1], [0, 0, 1, 1], [], []>} : vector<8x128xbf16>, vector<128x512xbf16>, vector<8x512xf32> -> vector<8x512xf32>
    %498 = arith.addf %495, %497 : vector<8x512xf32>
    %499 = vector.extract_strided_slice %498 {offsets = [0, 0], sizes = [8, 128], strides = [1, 1]} : vector<8x512xf32> to vector<8x128xf32>
    %500 = arith.negf %499 : vector<8x128xf32>
    %501 = math.exp %500 : vector<8x128xf32>
    %cst_218 = arith.constant 1.000000e+00 : f32
    %502 = vector.broadcast %cst_218 : f32 to vector<8x128xf32>
    %503 = arith.addf %502, %501 : vector<8x128xf32>
    %504 = arith.divf %502, %503 : vector<8x128xf32>
    %505 = vector.extract_strided_slice %498 {offsets = [0, 128], sizes = [8, 128], strides = [1, 1]} : vector<8x512xf32> to vector<8x128xf32>
    %506 = arith.negf %505 : vector<8x128xf32>
    %507 = math.exp %506 : vector<8x128xf32>
    %cst_219 = arith.constant 1.000000e+00 : f32
    %508 = vector.broadcast %cst_219 : f32 to vector<8x128xf32>
    %509 = arith.addf %508, %507 : vector<8x128xf32>
    %510 = arith.divf %508, %509 : vector<8x128xf32>
    %511 = vector.extract_strided_slice %498 {offsets = [0, 256], sizes = [8, 128], strides = [1, 1]} : vector<8x512xf32> to vector<8x128xf32>
    %512 = math.tanh %511 : vector<8x128xf32>
    %513 = vector.extract_strided_slice %498 {offsets = [0, 384], sizes = [8, 128], strides = [1, 1]} : vector<8x512xf32> to vector<8x128xf32>
    %514 = arith.negf %513 : vector<8x128xf32>
    %515 = math.exp %514 : vector<8x128xf32>
    %cst_220 = arith.constant 1.000000e+00 : f32
    %516 = vector.broadcast %cst_220 : f32 to vector<8x128xf32>
    %517 = arith.addf %516, %515 : vector<8x128xf32>
    %518 = arith.divf %516, %517 : vector<8x128xf32>
    %c0_221 = arith.constant 0 : index
    %c0_222 = arith.constant 0 : index
    %519 = vector.load %arg6[%c0_221, %c0_222] : memref<8x128xf32, #tpu.memory_space<vmem>>, vector<8x128xf32>
    %520 = arith.mulf %510, %519 : vector<8x128xf32>
    %521 = arith.mulf %504, %512 : vector<8x128xf32>
    %522 = arith.addf %520, %521 : vector<8x128xf32>
    %523 = math.tanh %522 : vector<8x128xf32>
    %524 = arith.mulf %518, %523 : vector<8x128xf32>
    %525 = arith.truncf %524 : vector<8x128xf32> to vector<8x128xbf16>
    %c0_223 = arith.constant 0 : index
    %c0_224 = arith.constant 0 : index
    %526 = vector.load %arg6[%c0_223, %c0_224] : memref<8x128xf32, #tpu.memory_space<vmem>>, vector<8x128xf32>
    tpu.vector_store %arg6[%c0_223, %c0_224], %522 {strides = array<i32>} : memref<8x128xf32, #tpu.memory_space<vmem>>, vector<8x128xf32>,
    %c0_225 = arith.constant 0 : index
    %c0_226 = arith.constant 0 : index
    %527 = vector.load %arg5[%c0_225, %c0_226] : memref<8x128xbf16, #tpu.memory_space<vmem>>, vector<8x128xbf16>
    tpu.vector_store %arg5[%c0_225, %c0_226], %525 {strides = array<i32>} : memref<8x128xbf16, #tpu.memory_space<vmem>>, vector<8x128xbf16>,
    %c0_227 = arith.constant 0 : index
    %c1792 = arith.constant 1792 : index
    %528 = vector.load %arg4[%c0_227, %c1792] : memref<8x2048xbf16, #tpu.memory_space<vmem>>, vector<8x128xbf16>
    tpu.vector_store %arg4[%c0_227, %c1792], %525 {strides = array<i32>} : memref<8x2048xbf16, #tpu.memory_space<vmem>>, vector<8x128xbf16>,
    %c15 = arith.constant 15 : index
    %c0_228 = arith.constant 0 : index
    %c0_229 = arith.constant 0 : index
    %529 = vector.load %arg2[%c15, %c0_228, %c0_229] : memref<16x8x512xf32, #tpu.memory_space<vmem>>, vector<1x8x512xf32>
    %530 = vector.shape_cast %529 : vector<1x8x512xf32> to vector<8x512xf32>
    %c0_230 = arith.constant 0 : index
    %c0_231 = arith.constant 0 : index
    %531 = vector.load %arg5[%c0_230, %c0_231] : memref<8x128xbf16, #tpu.memory_space<vmem>>, vector<8x128xbf16>
    %cst_232 = arith.constant dense<0.000000e+00> : vector<8x512xf32>
    %532 = tpu.matmul %531, %3, %cst_232 {dimension_numbers = #tpu.dot_dimension_numbers<[1], [0], [0], [1], [0, 0, 1, 1], [], []>} : vector<8x128xbf16>, vector<128x512xbf16>, vector<8x512xf32> -> vector<8x512xf32>
    %533 = arith.addf %530, %532 : vector<8x512xf32>
    %534 = vector.extract_strided_slice %533 {offsets = [0, 0], sizes = [8, 128], strides = [1, 1]} : vector<8x512xf32> to vector<8x128xf32>
    %535 = arith.negf %534 : vector<8x128xf32>
    %536 = math.exp %535 : vector<8x128xf32>
    %cst_233 = arith.constant 1.000000e+00 : f32
    %537 = vector.broadcast %cst_233 : f32 to vector<8x128xf32>
    %538 = arith.addf %537, %536 : vector<8x128xf32>
    %539 = arith.divf %537, %538 : vector<8x128xf32>
    %540 = vector.extract_strided_slice %533 {offsets = [0, 128], sizes = [8, 128], strides = [1, 1]} : vector<8x512xf32> to vector<8x128xf32>
    %541 = arith.negf %540 : vector<8x128xf32>
    %542 = math.exp %541 : vector<8x128xf32>
    %cst_234 = arith.constant 1.000000e+00 : f32
    %543 = vector.broadcast %cst_234 : f32 to vector<8x128xf32>
    %544 = arith.addf %543, %542 : vector<8x128xf32>
    %545 = arith.divf %543, %544 : vector<8x128xf32>
    %546 = vector.extract_strided_slice %533 {offsets = [0, 256], sizes = [8, 128], strides = [1, 1]} : vector<8x512xf32> to vector<8x128xf32>
    %547 = math.tanh %546 : vector<8x128xf32>
    %548 = vector.extract_strided_slice %533 {offsets = [0, 384], sizes = [8, 128], strides = [1, 1]} : vector<8x512xf32> to vector<8x128xf32>
    %549 = arith.negf %548 : vector<8x128xf32>
    %550 = math.exp %549 : vector<8x128xf32>
    %cst_235 = arith.constant 1.000000e+00 : f32
    %551 = vector.broadcast %cst_235 : f32 to vector<8x128xf32>
    %552 = arith.addf %551, %550 : vector<8x128xf32>
    %553 = arith.divf %551, %552 : vector<8x128xf32>
    %c0_236 = arith.constant 0 : index
    %c0_237 = arith.constant 0 : index
    %554 = vector.load %arg6[%c0_236, %c0_237] : memref<8x128xf32, #tpu.memory_space<vmem>>, vector<8x128xf32>
    %555 = arith.mulf %545, %554 : vector<8x128xf32>
    %556 = arith.mulf %539, %547 : vector<8x128xf32>
    %557 = arith.addf %555, %556 : vector<8x128xf32>
    %558 = math.tanh %557 : vector<8x128xf32>
    %559 = arith.mulf %553, %558 : vector<8x128xf32>
    %560 = arith.truncf %559 : vector<8x128xf32> to vector<8x128xbf16>
    %c0_238 = arith.constant 0 : index
    %c0_239 = arith.constant 0 : index
    %561 = vector.load %arg6[%c0_238, %c0_239] : memref<8x128xf32, #tpu.memory_space<vmem>>, vector<8x128xf32>
    tpu.vector_store %arg6[%c0_238, %c0_239], %557 {strides = array<i32>} : memref<8x128xf32, #tpu.memory_space<vmem>>, vector<8x128xf32>,
    %c0_240 = arith.constant 0 : index
    %c0_241 = arith.constant 0 : index
    %562 = vector.load %arg5[%c0_240, %c0_241] : memref<8x128xbf16, #tpu.memory_space<vmem>>, vector<8x128xbf16>
    tpu.vector_store %arg5[%c0_240, %c0_241], %560 {strides = array<i32>} : memref<8x128xbf16, #tpu.memory_space<vmem>>, vector<8x128xbf16>,
    %c0_242 = arith.constant 0 : index
    %c1920 = arith.constant 1920 : index
    %563 = vector.load %arg4[%c0_242, %c1920] : memref<8x2048xbf16, #tpu.memory_space<vmem>>, vector<8x128xbf16>
    tpu.vector_store %arg4[%c0_242, %c1920], %560 {strides = array<i32>} : memref<8x2048xbf16, #tpu.memory_space<vmem>>, vector<8x128xbf16>,
    return
  }
  func.func @transform_0(%arg0: i32, %arg1: i32) -> (i32, i32, i32) {
    %c0_i32 = arith.constant 0 : i32
    %c0_i32_0 = arith.constant 0 : i32
    return %arg1, %arg0, %c0_i32 : i32, i32, i32
  }
  func.func @transform_1(%arg0: i32, %arg1: i32) -> (i32, i32) {
    %c0_i32 = arith.constant 0 : i32
    %c0_i32_0 = arith.constant 0 : i32
    %c0_i32_1 = arith.constant 0 : i32
    return %c0_i32, %c0_i32_0 : i32, i32
  }
  func.func @transform_2(%arg0: i32, %arg1: i32) -> (i32, i32) {
    %c0_i32 = arith.constant 0 : i32
    return %arg0, %arg1 : i32, i32
  }
}

module attributes {stable_mosaic.version = 11 : i64} {
  func.func @_matmul_bias_kernel(%arg0: i32, %arg1: i32, %arg2: memref<128x128xbf16, #tpu.memory_space<vmem>>, %arg3: memref<128x512xbf16, #tpu.memory_space<vmem>>, %arg4: memref<1x512xf32, #tpu.memory_space<vmem>>, %arg5: memref<128x512xf32, #tpu.memory_space<vmem>>) attributes {dimension_semantics = [#tpu.dimension_semantics<parallel>, #tpu.dimension_semantics<parallel>], iteration_bounds = array<i64: 1, 1>, scalar_prefetch = 0 : i64, scratch_operands = 0 : i64, tpu.core_type = #tpu.core_type<tc>, window_params = [{transform_indices = @transform_0, window_bounds = array<i64: 128, 128>}, {transform_indices = @transform_1, window_bounds = array<i64: 128, 512>}, {transform_indices = @transform_2, window_bounds = array<i64: 1, 512>}, {transform_indices = @transform_3, window_bounds = array<i64: 128, 512>}]} {
    %c0 = arith.constant 0 : index
    %c0_0 = arith.constant 0 : index
    %0 = vector.load %arg2[%c0, %c0_0] : memref<128x128xbf16, #tpu.memory_space<vmem>>, vector<128x128xbf16>
    %c0_1 = arith.constant 0 : index
    %c0_2 = arith.constant 0 : index
    %1 = vector.load %arg3[%c0_1, %c0_2] : memref<128x512xbf16, #tpu.memory_space<vmem>>, vector<128x512xbf16>
    %cst = arith.constant dense<0.000000e+00> : vector<128x512xf32>
    %2 = tpu.matmul %0, %1, %cst {dimension_numbers = #tpu.dot_dimension_numbers<[1], [0], [0], [1], [0, 0, 1, 1], [], []>} : vector<128x128xbf16>, vector<128x512xbf16>, vector<128x512xf32> -> vector<128x512xf32>
    %c0_3 = arith.constant 0 : index
    %c0_4 = arith.constant 0 : index
    %3 = vector.load %arg4[%c0_3, %c0_4] : memref<1x512xf32, #tpu.memory_space<vmem>>, vector<1x512xf32>
    %4 = vector.broadcast %3 : vector<1x512xf32> to vector<128x512xf32>
    %5 = arith.addf %2, %4 : vector<128x512xf32>
    %c0_5 = arith.constant 0 : index
    %c0_6 = arith.constant 0 : index
    %6 = vector.load %arg5[%c0_5, %c0_6] : memref<128x512xf32, #tpu.memory_space<vmem>>, vector<128x512xf32>
    tpu.vector_store %arg5[%c0_5, %c0_6], %5 {strides = array<i32>} : memref<128x512xf32, #tpu.memory_space<vmem>>, vector<128x512xf32>,
    return
  }
  func.func @transform_0(%arg0: i32, %arg1: i32) -> (i32, i32) {
    %c0_i32 = arith.constant 0 : i32
    %c0_i32_0 = arith.constant 0 : i32
    return %arg0, %c0_i32 : i32, i32
  }
  func.func @transform_1(%arg0: i32, %arg1: i32) -> (i32, i32) {
    %c0_i32 = arith.constant 0 : i32
    %c0_i32_0 = arith.constant 0 : i32
    return %c0_i32, %arg1 : i32, i32
  }
  func.func @transform_2(%arg0: i32, %arg1: i32) -> (i32, i32) {
    %c0_i32 = arith.constant 0 : i32
    %c0_i32_0 = arith.constant 0 : i32
    return %c0_i32, %arg1 : i32, i32
  }
  func.func @transform_3(%arg0: i32, %arg1: i32) -> (i32, i32) {
    %c0_i32 = arith.constant 0 : i32
    return %arg0, %arg1 : i32, i32
  }
}

</mosaic_0001>

<bundles_post_ra>
// kernel: decoder_rnn_forward.3
= control target key start
LH: loop header
LB: loop body
LE: loop exit
PB: predicated region body
PF: predicated region fallthrough
CT: control target
= control target key end

     0   :  { %s1247_s1 = inlined_call_operand.vmem [shape: bf16[128,512], index: 1, kind: input, shape index: {}]   ;;  %s1248_s0 = inlined_call_operand.vmem [shape: bf16[128,128], index: 0, kind: input, shape index: {}]   ;;  %s1249_s2 = inlined_call_operand.vmem [shape: f32[1,512], index: 2, kind: input, shape index: {}]   ;;  %s1250_s3 = inlined_call_operand.vmem [shape: f32[128,512], index: 3, kind: output, shape index: {}]  }
   0x1   :  { %v690_v0 = vld [vmem:[%s1247_s1 + $0xe0] sm:$0xf]  ;;  %v742_v1 = vld [vmem:[%s1247_s1 + $0xec] sm:$0xf0]  ;;  %v740_v2 = vld [vmem:[%s1247_s1 + $0xe4] sm:$0xf] }
   0x2   :  { %v691_v3 = vor.u32 %v742_v1, %v690_v0  ;;  %v692_v4 = vld [vmem:[%s1247_s1 + $0xf0] sm:$0xf0]  ;;  %v698_v5 = vld [vmem:[%s1247_s1 + $0xe8] sm:$0xf]  ;;  %v743_v6 = vld [vmem:[%s1247_s1 + $0xf4] sm:$0xf0] }
   0x3   :  { %v695_v7 = vor.u32 %v740_v2, %v692_v4  ;;  %v699_v8 = vor.u32 %v743_v6, %v698_v5  ;;  %v741_v9 = vld [vmem:[%s1247_s1 + $0xec] sm:$0xf]  ;;  %v700_v10 = vld [vmem:[%s1247_s1 + $0xf8] sm:$0xf0]  ;;  %v674_v11 = vld [vmem:[%s1247_s1 + $0xc0] sm:$0xf] }
   0x4   :  { %280 = vmatpush.bf16.msra.mxu0 %v691_v3  ;;  %v703_v12 = vor.u32 %v741_v9, %v700_v10  ;;  %v738_v13 = vld [vmem:[%s1247_s1 + $0xcc] sm:$0xf0]  ;;  %v736_v14 = vld [vmem:[%s1247_s1 + $0xc4] sm:$0xf]  ;;  %v676_v15 = vld [vmem:[%s1247_s1 + $0xd0] sm:$0xf0] }
   0x5   :  { %329 = vmatpush.bf16.msra.mxu1 %v695_v7  ;;  %378 = vmatpush.bf16.msra.mxu2 %v699_v8  ;;  %v675_v16 = vor.u32 %v738_v13, %v674_v11  ;;  %v679_v17 = vor.u32 %v736_v14, %v676_v15  ;;  %v682_v18 = vld [vmem:[%s1247_s1 + $0xc8] sm:$0xf]  ;;  %v739_v19 = vld [vmem:[%s1247_s1 + $0xd4] sm:$0xf0]  ;;  %v737_v20 = vld [vmem:[%s1247_s1 + $0xcc] sm:$0xf] }
   0x6   :  { %427 = vmatpush.bf16.msra.mxu3 %v703_v12  ;;  %v683_v21 = vor.u32 %v739_v19, %v682_v18  ;;  %v684_v22 = vld [vmem:[%s1247_s1 + $0xd8] sm:$0xf0]  ;;  %v658_v23 = vld [vmem:[%s1247_s1 + $0xa0] sm:$0xf]  ;;  %v734_v24 = vld [vmem:[%s1247_s1 + $0xac] sm:$0xf0] }
   0x7   :  { %v687_v25 = vor.u32 %v737_v20, %v684_v22  ;;  %v732_v26 = vld [vmem:[%s1247_s1 + $0xa4] sm:$0xf]  ;;  %v660_v27 = vld [vmem:[%s1247_s1 + $0xb0] sm:$0xf0]  ;;  %v666_v28 = vld [vmem:[%s1247_s1 + $0xa8] sm:$0xf]  ;;  %v659_v29 = vor.u32 %v734_v24, %v658_v23 }
   0x8   :  { %281 = vmatpush.bf16.msra.mxu0 %v675_v16  ;;  %v735_v30 = vld [vmem:[%s1247_s1 + $0xb4] sm:$0xf0]  ;;  %v733_v31 = vld [vmem:[%s1247_s1 + $0xac] sm:$0xf]  ;;  %v668_v32 = vld [vmem:[%s1247_s1 + $0xb8] sm:$0xf0]  ;;  %v663_v33 = vor.u32 %v732_v26, %v660_v27 }
   0x9   :  { %330 = vmatpush.bf16.msra.mxu1 %v679_v17  ;;  %379 = vmatpush.bf16.msra.mxu2 %v683_v21  ;;  %v667_v34 = vor.u32 %v735_v30, %v666_v28  ;;  %v642_v35 = vld [vmem:[%s1247_s1 + $0x80] sm:$0xf]  ;;  %v730_v36 = vld [vmem:[%s1247_s1 + $0x8c] sm:$0xf0]  ;;  %v728_v37 = vld [vmem:[%s1247_s1 + $0x84] sm:$0xf]  ;;  %v671_v38 = vor.u32 %v733_v31, %v668_v32 }
   0xa   :  { %428 = vmatpush.bf16.msra.mxu3 %v687_v25  ;;  %v644_v39 = vld [vmem:[%s1247_s1 + $0x90] sm:$0xf0]  ;;  %v650_v40 = vld [vmem:[%s1247_s1 + $0x88] sm:$0xf]  ;;  %v731_v41 = vld [vmem:[%s1247_s1 + $0x94] sm:$0xf0]  ;;  %v643_v44 = vor.u32 %v730_v36, %v642_v35 }
   0xb   :  { %v729_v42 = vld [vmem:[%s1247_s1 + $0x8c] sm:$0xf]  ;;  %v652_v43 = vld [vmem:[%s1247_s1 + $0x98] sm:$0xf0]  ;;  %v647_v45 = vor.u32 %v728_v37, %v644_v39  ;;  %v651_v46 = vor.u32 %v731_v41, %v650_v40  ;;  %v626_v47 = vld [vmem:[%s1247_s1 + $0x60] sm:$0xf] }
   0xc   :  { %282 = vmatpush.bf16.msra.mxu0 %v659_v29  ;;  %v726_v48 = vld [vmem:[%s1247_s1 + $0x6c] sm:$0xf0]  ;;  %v724_v49 = vld [vmem:[%s1247_s1 + $0x64] sm:$0xf]  ;;  %v655_v50 = vor.u32 %v729_v42, %v652_v43  ;;  %v628_v51 = vld [vmem:[%s1247_s1 + $0x70] sm:$0xf0] }
   0xd   :  { %331 = vmatpush.bf16.msra.mxu1 %v663_v33  ;;  %380 = vmatpush.bf16.msra.mxu2 %v667_v34  ;;  %v634_v52 = vld [vmem:[%s1247_s1 + $0x68] sm:$0xf]  ;;  %v727_v53 = vld [vmem:[%s1247_s1 + $0x74] sm:$0xf0]  ;;  %v725_v54 = vld [vmem:[%s1247_s1 + $0x6c] sm:$0xf]  ;;  %v627_v56 = vor.u32 %v726_v48, %v626_v47  ;;  %v631_v57 = vor.u32 %v724_v49, %v628_v51 }
   0xe   :  { %429 = vmatpush.bf16.msra.mxu3 %v671_v38  ;;  %v636_v55 = vld [vmem:[%s1247_s1 + $0x78] sm:$0xf0]  ;;  %v635_v58 = vor.u32 %v727_v53, %v634_v52  ;;  %v610_v59 = vld [vmem:[%s1247_s1 + $0x40] sm:$0xf]  ;;  %v722_v60 = vld [vmem:[%s1247_s1 + $0x4c] sm:$0xf0] }
   0xf   :  { %v720_v61 = vld [vmem:[%s1247_s1 + $0x44] sm:$0xf]  ;;  %v639_v62 = vor.u32 %v725_v54, %v636_v55  ;;  %v612_v63 = vld [vmem:[%s1247_s1 + $0x50] sm:$0xf0]  ;;  %v618_v0 = vld [vmem:[%s1247_s1 + $0x48] sm:$0xf]  ;;  %v611_v4 = vor.u32 %v722_v60, %v610_v59 }
  0x10   :  { %283 = vmatpush.bf16.msra.mxu0 %v643_v44  ;;  %v723_v1 = vld [vmem:[%s1247_s1 + $0x54] sm:$0xf0]  ;;  %v721_v2 = vld [vmem:[%s1247_s1 + $0x4c] sm:$0xf]  ;;  %v620_v3 = vld [vmem:[%s1247_s1 + $0x58] sm:$0xf0]  ;;  %v615_v5 = vor.u32 %v720_v61, %v612_v63 }
  0x11   :  { %332 = vmatpush.bf16.msra.mxu1 %v647_v45  ;;  %381 = vmatpush.bf16.msra.mxu2 %v651_v46  ;;  %v619_v6 = vor.u32 %v723_v1, %v618_v0  ;;  %v594_v7 = vld [vmem:[%s1247_s1 + $0x20] sm:$0xf]  ;;  %v718_v8 = vld [vmem:[%s1247_s1 + $0x2c] sm:$0xf0]  ;;  %v716_v9 = vld [vmem:[%s1247_s1 + $0x24] sm:$0xf]  ;;  %v623_v10 = vor.u32 %v721_v2, %v620_v3 }
  0x12   :  { %430 = vmatpush.bf16.msra.mxu3 %v655_v50  ;;  %v596_v11 = vld [vmem:[%s1247_s1 + $0x30] sm:$0xf0]  ;;  %v602_v12 = vld [vmem:[%s1247_s1 + $0x28] sm:$0xf]  ;;  %v719_v13 = vld [vmem:[%s1247_s1 + $0x34] sm:$0xf0]  ;;  %v595_v16 = vor.u32 %v718_v8, %v594_v7 }
  0x13   :  { %v717_v14 = vld [vmem:[%s1247_s1 + $0x2c] sm:$0xf]  ;;  %v604_v15 = vld [vmem:[%s1247_s1 + $0x38] sm:$0xf0]  ;;  %v599_v17 = vor.u32 %v716_v9, %v596_v11  ;;  %v603_v18 = vor.u32 %v719_v13, %v602_v12  ;;  %v578_v19 = vld [vmem:[%s1247_s1] sm:$0xf] }
  0x14   :  { %284 = vmatpush.bf16.msra.mxu0 %v627_v56  ;;  %v714_v20 = vld [vmem:[%s1247_s1 + $0xc] sm:$0xf0]  ;;  %v712_v21 = vld [vmem:[%s1247_s1 + $0x4] sm:$0xf]  ;;  %v607_v22 = vor.u32 %v717_v14, %v604_v15  ;;  %v580_v23 = vld [vmem:[%s1247_s1 + $0x10] sm:$0xf0] }
  0x15   :  { %333 = vmatpush.bf16.msra.mxu1 %v631_v57  ;;  %382 = vmatpush.bf16.msra.mxu2 %v635_v58  ;;  %v586_v24 = vld [vmem:[%s1247_s1 + $0x8] sm:$0xf]  ;;  %v715_v25 = vld [vmem:[%s1247_s1 + $0x14] sm:$0xf0]  ;;  %v713_v26 = vld [vmem:[%s1247_s1 + $0xc] sm:$0xf]  ;;  %v579_v28 = vor.u32 %v714_v20, %v578_v19  ;;  %v583_v29 = vor.u32 %v712_v21, %v580_v23 }
  0x16   :  { %431 = vmatpush.bf16.msra.mxu3 %v639_v62  ;;  %v588_v27 = vld [vmem:[%s1247_s1 + $0x18] sm:$0xf0]  ;;  %v587_v30 = vor.u32 %v715_v25, %v586_v24  ;;  %v704_v32 = vld [vmem:[%s1248_s0] sm:$0xff]  ;;  %v705_v33 = vld [vmem:[%s1248_s0 + $0x8] sm:$0xff] }
  0x17   :  { %v591_v31 = vor.u32 %v713_v26, %v588_v27  ;;  %v706_v34 = vld [vmem:[%s1248_s0 + $0x10] sm:$0xff]  ;;  %v707_v35 = vld [vmem:[%s1248_s0 + $0x18] sm:$0xff]  ;;  %v708_v36 = vld [vmem:[%s1248_s0 + $0x20] sm:$0xff] }
  0x18   :  { %285 = vmatpush.bf16.msra.mxu0 %v611_v4  ;;  %v709_v37 = vld [vmem:[%s1248_s0 + $0x28] sm:$0xff]  ;;  %v710_v38 = vld [vmem:[%s1248_s0 + $0x30] sm:$0xff]  ;;  %v711_v39 = vld [vmem:[%s1248_s0 + $0x38] sm:$0xff] }
  0x19   :  { %334 = vmatpush.bf16.msra.mxu1 %v615_v5  ;;  %383 = vmatpush.bf16.msra.mxu2 %v619_v6  ;;  %v62_v40 = vld [vmem:[%s1249_s2] sm:$0xf] }
  0x1a   :  { %432 = vmatpush.bf16.msra.mxu3 %v623_v10  ;;  %v983_v41 = vperm.slane %v62_v40, 0  ;;  %v985_v42 = vperm.slane %v62_v40, 1  ;;  %v995_v47 = vperm.slane %v62_v40, 2  ;;  %v997_v48 = vperm.slane %v62_v40, 3 }
  0x1c   :  { %286 = vmatpush.bf16.msra.mxu0 %v595_v16 }
  0x1d   :  { %335 = vmatpush.bf16.msra.mxu1 %v599_v17  ;;  %384 = vmatpush.bf16.msra.mxu2 %v603_v18 }
  0x1e   :  { %433 = vmatpush.bf16.msra.mxu3 %v607_v22 }
  0x20   :  { %287 = vmatpush.bf16.msra.mxu0 %v579_v28 }
  0x21   :  { %336 = vmatpush.bf16.msra.mxu1 %v583_v29  ;;  %385 = vmatpush.bf16.msra.mxu2 %v587_v30 }
  0x22   :  { %434 = vmatpush.bf16.msra.mxu3 %v591_v31 }
  0x23   :  { %288 = vmatmul.bf16.vlgmr.msra.gmra.mxu0 %v704_v32 }
  0x24   :  { %337 = vmatmul.bf16.vlgmr.msra.gmra.mxu1 %v704_v32  ;;  %386 = vmatmul.bf16.vlgmr.msra.gmra.mxu2 %v704_v32 }
  0x25   :  { %435 = vmatmul.bf16.vlgmr.msra.gmra.mxu3 %v704_v32 }
  0x33   :  { %293 = vmatmul.bf16.gmra.mxu0 %v705_v33 }
  0x34   :  { %342 = vmatmul.bf16.gmra.mxu1 %v705_v33  ;;  %391 = vmatmul.bf16.gmra.mxu2 %v705_v33 }
  0x35   :  { %440 = vmatmul.bf16.gmra.mxu3 %v705_v33 }
  0x43   :  { %298 = vmatmul.bf16.gmra.mxu0 %v706_v34 }
  0x44   :  { %347 = vmatmul.bf16.gmra.mxu1 %v706_v34  ;;  %396 = vmatmul.bf16.gmra.mxu2 %v706_v34 }
  0x45   :  { %445 = vmatmul.bf16.gmra.mxu3 %v706_v34 }
  0x53   :  { %303 = vmatmul.bf16.gmra.mxu0 %v707_v35 }
  0x54   :  { %352 = vmatmul.bf16.gmra.mxu1 %v707_v35  ;;  %401 = vmatmul.bf16.gmra.mxu2 %v707_v35 }
  0x55   :  { %450 = vmatmul.bf16.gmra.mxu3 %v707_v35 }
  0x63   :  { %308 = vmatmul.bf16.gmra.mxu0 %v708_v36 }
  0x64   :  { %357 = vmatmul.bf16.gmra.mxu1 %v708_v36  ;;  %406 = vmatmul.bf16.gmra.mxu2 %v708_v36 }
  0x65   :  { %455 = vmatmul.bf16.gmra.mxu3 %v708_v36 }
  0x73   :  { %313 = vmatmul.bf16.gmra.mxu0 %v709_v37 }
  0x74   :  { %362 = vmatmul.bf16.gmra.mxu1 %v709_v37  ;;  %411 = vmatmul.bf16.gmra.mxu2 %v709_v37 }
  0x75   :  { %460 = vmatmul.bf16.gmra.mxu3 %v709_v37 }
  0x83   :  { %318 = vmatmul.bf16.gmra.mxu0 %v710_v38 }
  0x84   :  { %367 = vmatmul.bf16.gmra.mxu1 %v710_v38  ;;  %416 = vmatmul.bf16.gmra.mxu2 %v710_v38 }
  0x85   :  { %465 = vmatmul.bf16.gmra.mxu3 %v710_v38 }
  0x93   :  { %323 = vmatmul.bf16.gmra.mxu0 %v711_v39 }
  0x94   :  { %372 = vmatmul.bf16.gmra.mxu1 %v711_v39  ;;  %421 = vmatmul.bf16.gmra.mxu2 %v711_v39 }
  0x95   :  { %470 = vmatmul.bf16.gmra.mxu3 %v711_v39 }
  0xa0   :  { %v289_v43 = vpop.f32.mrf.mxu0 }
  0xa1   :  { %v290_v44 = vadd.f32 %v289_v43, %v983_v41  ;;  %v338_v45 = vpop.f32.mrf.mxu1 }
  0xa2   :  { %v339_v46 = vadd.f32 %v338_v45, %v985_v42 }
  0xa3   :  { %476 = vst [vmem:[%s1250_s3] sm:$0xff] %v290_v44 }
  0xa4   :  { %477 = vst [vmem:[%s1250_s3 + $0x8] sm:$0xff] %v339_v46 }
  0xa7   :  { %v387_v49 = vpop.f32.mrf.mxu2 }
  0xa8   :  { %v388_v50 = vadd.f32 %v387_v49, %v995_v47  ;;  %v436_v51 = vpop.f32.mrf.mxu3  ;;  %v291_v52 = vpop.f32.mrf.mxu0 }
  0xa9   :  { %v437_v53 = vadd.f32 %v436_v51, %v997_v48  ;;  %v292_v54 = vadd.f32 %v291_v52, %v983_v41  ;;  %v340_v55 = vpop.f32.mrf.mxu1 }
  0xaa   :  { %478 = vst [vmem:[%s1250_s3 + $0x10] sm:$0xff] %v388_v50  ;;  %v341_v56 = vadd.f32 %v340_v55, %v985_v42 }
  0xab   :  { %479 = vst [vmem:[%s1250_s3 + $0x18] sm:$0xff] %v437_v53 }
  0xac   :  { %480 = vst [vmem:[%s1250_s3 + $0x20] sm:$0xff] %v292_v54 }
  0xad   :  { %481 = vst [vmem:[%s1250_s3 + $0x28] sm:$0xff] %v341_v56 }
  0xaf   :  { %v389_v57 = vpop.f32.mrf.mxu2 }
  0xb0   :  { %v390_v58 = vadd.f32 %v389_v57, %v995_v47  ;;  %v438_v59 = vpop.f32.mrf.mxu3  ;;  %v294_v60 = vpop.f32.mrf.mxu0 }
  0xb1   :  { %v439_v61 = vadd.f32 %v438_v59, %v997_v48  ;;  %v295_v62 = vadd.f32 %v294_v60, %v983_v41  ;;  %v343_v63 = vpop.f32.mrf.mxu1 }
  0xb2   :  { %482 = vst [vmem:[%s1250_s3 + $0x30] sm:$0xff] %v390_v58  ;;  %v344_v0 = vadd.f32 %v343_v63, %v985_v42 }
  0xb3   :  { %483 = vst [vmem:[%s1250_s3 + $0x38] sm:$0xff] %v439_v61 }
  0xb4   :  { %484 = vst [vmem:[%s1250_s3 + $0x40] sm:$0xff] %v295_v62 }
  0xb5   :  { %485 = vst [vmem:[%s1250_s3 + $0x48] sm:$0xff] %v344_v0 }
  0xb7   :  { %v392_v1 = vpop.f32.mrf.mxu2 }
  0xb8   :  { %v393_v2 = vadd.f32 %v392_v1, %v995_v47  ;;  %v441_v3 = vpop.f32.mrf.mxu3  ;;  %v296_v4 = vpop.f32.mrf.mxu0 }
  0xb9   :  { %v442_v5 = vadd.f32 %v441_v3, %v997_v48  ;;  %v297_v6 = vadd.f32 %v296_v4, %v983_v41  ;;  %v345_v7 = vpop.f32.mrf.mxu1 }
  0xba   :  { %486 = vst [vmem:[%s1250_s3 + $0x50] sm:$0xff] %v393_v2  ;;  %v346_v8 = vadd.f32 %v345_v7, %v985_v42 }
  0xbb   :  { %487 = vst [vmem:[%s1250_s3 + $0x58] sm:$0xff] %v442_v5 }
  0xbc   :  { %488 = vst [vmem:[%s1250_s3 + $0x60] sm:$0xff] %v297_v6 }
  0xbd   :  { %489 = vst [vmem:[%s1250_s3 + $0x68] sm:$0xff] %v346_v8 }
  0xbf   :  { %v394_v9 = vpop.f32.mrf.mxu2 }
  0xc0   :  { %v395_v10 = vadd.f32 %v394_v9, %v995_v47  ;;  %v443_v11 = vpop.f32.mrf.mxu3  ;;  %v299_v12 = vpop.f32.mrf.mxu0 }
  0xc1   :  { %v444_v13 = vadd.f32 %v443_v11, %v997_v48  ;;  %v300_v14 = vadd.f32 %v299_v12, %v983_v41  ;;  %v348_v15 = vpop.f32.mrf.mxu1 }
  0xc2   :  { %490 = vst [vmem:[%s1250_s3 + $0x70] sm:$0xff] %v395_v10  ;;  %v349_v16 = vadd.f32 %v348_v15, %v985_v42 }
  0xc3   :  { %491 = vst [vmem:[%s1250_s3 + $0x78] sm:$0xff] %v444_v13 }
  0xc4   :  { %492 = vst [vmem:[%s1250_s3 + $0x80] sm:$0xff] %v300_v14 }
  0xc5   :  { %493 = vst [vmem:[%s1250_s3 + $0x88] sm:$0xff] %v349_v16 }
  0xc7   :  { %v397_v17 = vpop.f32.mrf.mxu2 }
  0xc8   :  { %v398_v18 = vadd.f32 %v397_v17, %v995_v47  ;;  %v446_v19 = vpop.f32.mrf.mxu3  ;;  %v301_v20 = vpop.f32.mrf.mxu0 }
  0xc9   :  { %v447_v21 = vadd.f32 %v446_v19, %v997_v48  ;;  %v302_v22 = vadd.f32 %v301_v20, %v983_v41  ;;  %v350_v23 = vpop.f32.mrf.mxu1 }
  0xca   :  { %494 = vst [vmem:[%s1250_s3 + $0x90] sm:$0xff] %v398_v18  ;;  %v351_v24 = vadd.f32 %v350_v23, %v985_v42 }
  0xcb   :  { %495 = vst [vmem:[%s1250_s3 + $0x98] sm:$0xff] %v447_v21 }
  0xcc   :  { %496 = vst [vmem:[%s1250_s3 + $0xa0] sm:$0xff] %v302_v22 }
  0xcd   :  { %497 = vst [vmem:[%s1250_s3 + $0xa8] sm:$0xff] %v351_v24 }
  0xcf   :  { %v399_v25 = vpop.f32.mrf.mxu2 }
  0xd0   :  { %v400_v26 = vadd.f32 %v399_v25, %v995_v47  ;;  %v448_v27 = vpop.f32.mrf.mxu3  ;;  %v304_v28 = vpop.f32.mrf.mxu0 }
  0xd1   :  { %v449_v29 = vadd.f32 %v448_v27, %v997_v48  ;;  %v305_v30 = vadd.f32 %v304_v28, %v983_v41  ;;  %v353_v31 = vpop.f32.mrf.mxu1 }
  0xd2   :  { %498 = vst [vmem:[%s1250_s3 + $0xb0] sm:$0xff] %v400_v26  ;;  %v354_v32 = vadd.f32 %v353_v31, %v985_v42 }
  0xd3   :  { %499 = vst [vmem:[%s1250_s3 + $0xb8] sm:$0xff] %v449_v29 }
  0xd4   :  { %500 = vst [vmem:[%s1250_s3 + $0xc0] sm:$0xff] %v305_v30 }
  0xd5   :  { %501 = vst [vmem:[%s1250_s3 + $0xc8] sm:$0xff] %v354_v32 }
  0xd7   :  { %v402_v33 = vpop.f32.mrf.mxu2 }
  0xd8   :  { %v403_v34 = vadd.f32 %v402_v33, %v995_v47  ;;  %v451_v35 = vpop.f32.mrf.mxu3  ;;  %v306_v36 = vpop.f32.mrf.mxu0 }
  0xd9   :  { %v452_v37 = vadd.f32 %v451_v35, %v997_v48  ;;  %v307_v38 = vadd.f32 %v306_v36, %v983_v41  ;;  %v355_v39 = vpop.f32.mrf.mxu1 }
  0xda   :  { %502 = vst [vmem:[%s1250_s3 + $0xd0] sm:$0xff] %v403_v34  ;;  %v356_v40 = vadd.f32 %v355_v39, %v985_v42 }
  0xdb   :  { %503 = vst [vmem:[%s1250_s3 + $0xd8] sm:$0xff] %v452_v37 }
  0xdc   :  { %504 = vst [vmem:[%s1250_s3 + $0xe0] sm:$0xff] %v307_v38 }
  0xdd   :  { %505 = vst [vmem:[%s1250_s3 + $0xe8] sm:$0xff] %v356_v40 }
  0xdf   :  { %v404_v43 = vpop.f32.mrf.mxu2 }
  0xe0   :  { %v405_v44 = vadd.f32 %v404_v43, %v995_v47  ;;  %v453_v45 = vpop.f32.mrf.mxu3  ;;  %v309_v46 = vpop.f32.mrf.mxu0 }
  0xe1   :  { %v454_v49 = vadd.f32 %v453_v45, %v997_v48  ;;  %v310_v50 = vadd.f32 %v309_v46, %v983_v41  ;;  %v358_v51 = vpop.f32.mrf.mxu1 }
  0xe2   :  { %506 = vst [vmem:[%s1250_s3 + $0xf0] sm:$0xff] %v405_v44  ;;  %v359_v52 = vadd.f32 %v358_v51, %v985_v42 }
  0xe3   :  { %507 = vst [vmem:[%s1250_s3 + $0xf8] sm:$0xff] %v454_v49 }
  0xe4   :  { %508 = vst [vmem:[%s1250_s3 + $0x100] sm:$0xff] %v310_v50 }
  0xe5   :  { %509 = vst [vmem:[%s1250_s3 + $0x108] sm:$0xff] %v359_v52 }
  0xe7   :  { %v407_v53 = vpop.f32.mrf.mxu2 }
  0xe8   :  { %v408_v54 = vadd.f32 %v407_v53, %v995_v47  ;;  %v456_v55 = vpop.f32.mrf.mxu3  ;;  %v311_v56 = vpop.f32.mrf.mxu0 }
  0xe9   :  { %v457_v57 = vadd.f32 %v456_v55, %v997_v48  ;;  %v312_v58 = vadd.f32 %v311_v56, %v983_v41  ;;  %v360_v59 = vpop.f32.mrf.mxu1 }
  0xea   :  { %510 = vst [vmem:[%s1250_s3 + $0x110] sm:$0xff] %v408_v54  ;;  %v361_v60 = vadd.f32 %v360_v59, %v985_v42 }
  0xeb   :  { %511 = vst [vmem:[%s1250_s3 + $0x118] sm:$0xff] %v457_v57 }
  0xec   :  { %512 = vst [vmem:[%s1250_s3 + $0x120] sm:$0xff] %v312_v58 }
  0xed   :  { %513 = vst [vmem:[%s1250_s3 + $0x128] sm:$0xff] %v361_v60 }
  0xef   :  { %v409_v61 = vpop.f32.mrf.mxu2 }
  0xf0   :  { %v410_v62 = vadd.f32 %v409_v61, %v995_v47  ;;  %v458_v63 = vpop.f32.mrf.mxu3  ;;  %v314_v0 = vpop.f32.mrf.mxu0 }
  0xf1   :  { %v459_v1 = vadd.f32 %v458_v63, %v997_v48  ;;  %v315_v2 = vadd.f32 %v314_v0, %v983_v41  ;;  %v363_v3 = vpop.f32.mrf.mxu1 }
  0xf2   :  { %514 = vst [vmem:[%s1250_s3 + $0x130] sm:$0xff] %v410_v62  ;;  %v364_v4 = vadd.f32 %v363_v3, %v985_v42 }
  0xf3   :  { %515 = vst [vmem:[%s1250_s3 + $0x138] sm:$0xff] %v459_v1 }
  0xf4   :  { %516 = vst [vmem:[%s1250_s3 + $0x140] sm:$0xff] %v315_v2 }
  0xf5   :  { %517 = vst [vmem:[%s1250_s3 + $0x148] sm:$0xff] %v364_v4 }
  0xf7   :  { %v412_v5 = vpop.f32.mrf.mxu2 }
  0xf8   :  { %v413_v6 = vadd.f32 %v412_v5, %v995_v47  ;;  %v461_v7 = vpop.f32.mrf.mxu3  ;;  %v316_v8 = vpop.f32.mrf.mxu0 }
  0xf9   :  { %v462_v9 = vadd.f32 %v461_v7, %v997_v48  ;;  %v317_v10 = vadd.f32 %v316_v8, %v983_v41  ;;  %v365_v11 = vpop.f32.mrf.mxu1 }
  0xfa   :  { %518 = vst [vmem:[%s1250_s3 + $0x150] sm:$0xff] %v413_v6  ;;  %v366_v12 = vadd.f32 %v365_v11, %v985_v42 }
  0xfb   :  { %519 = vst [vmem:[%s1250_s3 + $0x158] sm:$0xff] %v462_v9 }
  0xfc   :  { %520 = vst [vmem:[%s1250_s3 + $0x160] sm:$0xff] %v317_v10 }
  0xfd   :  { %521 = vst [vmem:[%s1250_s3 + $0x168] sm:$0xff] %v366_v12 }
  0xff   :  { %v414_v13 = vpop.f32.mrf.mxu2 }
 0x100   :  { %v415_v14 = vadd.f32 %v414_v13, %v995_v47  ;;  %v463_v15 = vpop.f32.mrf.mxu3  ;;  %v319_v16 = vpop.f32.mrf.mxu0 }
 0x101   :  { %v464_v17 = vadd.f32 %v463_v15, %v997_v48  ;;  %v320_v18 = vadd.f32 %v319_v16, %v983_v41  ;;  %v368_v19 = vpop.f32.mrf.mxu1 }
 0x102   :  { %522 = vst [vmem:[%s1250_s3 + $0x170] sm:$0xff] %v415_v14  ;;  %v369_v20 = vadd.f32 %v368_v19, %v985_v42 }
 0x103   :  { %523 = vst [vmem:[%s1250_s3 + $0x178] sm:$0xff] %v464_v17 }
 0x104   :  { %524 = vst [vmem:[%s1250_s3 + $0x180] sm:$0xff] %v320_v18 }
 0x105   :  { %525 = vst [vmem:[%s1250_s3 + $0x188] sm:$0xff] %v369_v20 }
 0x107   :  { %v417_v21 = vpop.f32.mrf.mxu2 }
 0x108   :  { %v418_v22 = vadd.f32 %v417_v21, %v995_v47  ;;  %v466_v23 = vpop.f32.mrf.mxu3  ;;  %v321_v24 = vpop.f32.mrf.mxu0 }
 0x109   :  { %v467_v25 = vadd.f32 %v466_v23, %v997_v48  ;;  %v322_v26 = vadd.f32 %v321_v24, %v983_v41  ;;  %v370_v27 = vpop.f32.mrf.mxu1 }
 0x10a   :  { %526 = vst [vmem:[%s1250_s3 + $0x190] sm:$0xff] %v418_v22  ;;  %v371_v28 = vadd.f32 %v370_v27, %v985_v42 }
 0x10b   :  { %527 = vst [vmem:[%s1250_s3 + $0x198] sm:$0xff] %v467_v25 }
 0x10c   :  { %528 = vst [vmem:[%s1250_s3 + $0x1a0] sm:$0xff] %v322_v26 }
 0x10d   :  { %529 = vst [vmem:[%s1250_s3 + $0x1a8] sm:$0xff] %v371_v28 }
 0x10f   :  { %v419_v29 = vpop.f32.mrf.mxu2 }
 0x110   :  { %v420_v30 = vadd.f32 %v419_v29, %v995_v47  ;;  %v468_v31 = vpop.f32.mrf.mxu3  ;;  %v324_v32 = vpop.f32.mrf.mxu0 }
 0x111   :  { %v469_v33 = vadd.f32 %v468_v31, %v997_v48  ;;  %v325_v34 = vadd.f32 %v324_v32, %v983_v41  ;;  %v373_v35 = vpop.f32.mrf.mxu1 }
 0x112   :  { %530 = vst [vmem:[%s1250_s3 + $0x1b0] sm:$0xff] %v420_v30  ;;  %v374_v36 = vadd.f32 %v373_v35, %v985_v42 }
 0x113   :  { %531 = vst [vmem:[%s1250_s3 + $0x1b8] sm:$0xff] %v469_v33 }
 0x114   :  { %532 = vst [vmem:[%s1250_s3 + $0x1c0] sm:$0xff] %v325_v34 }
 0x115   :  { %533 = vst [vmem:[%s1250_s3 + $0x1c8] sm:$0xff] %v374_v36 }
 0x117   :  { %v422_v37 = vpop.f32.mrf.mxu2 }
 0x118   :  { %v423_v38 = vadd.f32 %v422_v37, %v995_v47  ;;  %v471_v39 = vpop.f32.mrf.mxu3  ;;  %v326_v40 = vpop.f32.mrf.mxu0 }
 0x119   :  { %v472_v43 = vadd.f32 %v471_v39, %v997_v48  ;;  %v327_v44 = vadd.f32 %v326_v40, %v983_v41  ;;  %v375_v45 = vpop.f32.mrf.mxu1 }
 0x11a   :  { %534 = vst [vmem:[%s1250_s3 + $0x1d0] sm:$0xff] %v423_v38  ;;  %v376_v46 = vadd.f32 %v375_v45, %v985_v42 }
 0x11b   :  { %535 = vst [vmem:[%s1250_s3 + $0x1d8] sm:$0xff] %v472_v43 }
 0x11c   :  { %536 = vst [vmem:[%s1250_s3 + $0x1e0] sm:$0xff] %v327_v44 }
 0x11d   :  { %537 = vst [vmem:[%s1250_s3 + $0x1e8] sm:$0xff] %v376_v46 }
 0x11f   :  { %v424_v41 = vpop.f32.mrf.mxu2 }
 0x120   :  { %v425_v49 = vadd.f32 %v424_v41, %v995_v47  ;;  %v473_v50 = vpop.f32.mrf.mxu3 }
 0x121   :  { %v474_v51 = vadd.f32 %v473_v50, %v997_v48 }
 0x122   :  { %538 = vst [vmem:[%s1250_s3 + $0x1f0] sm:$0xff] %v425_v49 }
 0x123   :  { %539 = vst [vmem:[%s1250_s3 + $0x1f8] sm:$0xff] %v474_v51 }

// kernel: decoder_rnn_forward.4
= control target key start
LH: loop header
LB: loop body
LE: loop exit
PB: predicated region body
PF: predicated region fallthrough
CT: control target
= control target key end

     0   :  { %s3902_s1 = inlined_call_operand.vmem [shape: bf16[128,512], index: 1, kind: input, shape index: {}]   ;;  %s3903_s0 = inlined_call_operand.vmem [shape: f32[16,8,512], index: 0, kind: input, shape index: {}]   ;;  %s3904_s2 = inlined_call_operand.vmem [shape: bf16[8,2048], index: 2, kind: output, shape index: {}]  }
   0x1   :  { %v2407_v0 = vld [vmem:[%s3902_s1 + $0xe0] sm:$0xf]  ;;  %v2559_v1 = vld [vmem:[%s3902_s1 + $0xec] sm:$0xf0]  ;;  %v2557_v2 = vld [vmem:[%s3902_s1 + $0xe4] sm:$0xf] }
   0x2   :  { %v2843_v3 = vor.u32 %v2559_v1, %v2407_v0  ;;  %v2409_v4 = vld [vmem:[%s3902_s1 + $0xf0] sm:$0xf0]  ;;  %v2558_v5 = vld [vmem:[%s3902_s1 + $0xec] sm:$0xf]  ;;  %v2417_v6 = vld [vmem:[%s3902_s1 + $0xf8] sm:$0xf0] }
   0x3   :  { %v2854_v7 = vor.u32 %v2557_v2, %v2409_v4  ;;  %v2856_v8 = vor.u32 %v2558_v5, %v2417_v6  ;;  %v2391_v9 = vld [vmem:[%s3902_s1 + $0xc0] sm:$0xf]  ;;  %v2555_v10 = vld [vmem:[%s3902_s1 + $0xcc] sm:$0xf0]  ;;  %v2553_v11 = vld [vmem:[%s3902_s1 + $0xc4] sm:$0xf] }
   0x4   :  { %215 = vmatpush.bf16.msra.mxu0 %v2843_v3  ;;  %v2868_v12 = vor.u32 %v2555_v10, %v2391_v9  ;;  %v2393_v13 = vld [vmem:[%s3902_s1 + $0xd0] sm:$0xf0]  ;;  %v2554_v14 = vld [vmem:[%s3902_s1 + $0xcc] sm:$0xf]  ;;  %v2401_v15 = vld [vmem:[%s3902_s1 + $0xd8] sm:$0xf0] }
   0x5   :  { %228 = vmatpush.bf16.msra.mxu1 %v2854_v7  ;;  %254 = vmatpush.bf16.msra.mxu3 %v2856_v8  ;;  %v2881_v16 = vor.u32 %v2553_v11, %v2393_v13  ;;  %v2883_v17 = vor.u32 %v2554_v14, %v2401_v15  ;;  %v2415_v18 = vld [vmem:[%s3902_s1 + $0xe8] sm:$0xf]  ;;  %v2560_v19 = vld [vmem:[%s3902_s1 + $0xf4] sm:$0xf0]  ;;  %v2375_v20 = vld [vmem:[%s3902_s1 + $0xa0] sm:$0xf] }
   0x6   :  { %v2894_v21 = vor.u32 %v2560_v19, %v2415_v18  ;;  %v2551_v22 = vld [vmem:[%s3902_s1 + $0xac] sm:$0xf0]  ;;  %v2549_v23 = vld [vmem:[%s3902_s1 + $0xa4] sm:$0xf]  ;;  %v2377_v24 = vld [vmem:[%s3902_s1 + $0xb0] sm:$0xf0] }
   0x7   :  { %v2550_v25 = vld [vmem:[%s3902_s1 + $0xac] sm:$0xf]  ;;  %v2385_v26 = vld [vmem:[%s3902_s1 + $0xb8] sm:$0xf0]  ;;  %v2399_v27 = vld [vmem:[%s3902_s1 + $0xc8] sm:$0xf]  ;;  %v2916_v28 = vor.u32 %v2551_v22, %v2375_v20  ;;  %v2929_v32 = vor.u32 %v2549_v23, %v2377_v24 }
   0x8   :  { %216 = vmatpush.bf16.msra.mxu0 %v2868_v12  ;;  %241 = vmatpush.bf16.msra.mxu2 %v2894_v21  ;;  %v2556_v29 = vld [vmem:[%s3902_s1 + $0xd4] sm:$0xf0]  ;;  %v2359_v30 = vld [vmem:[%s3902_s1 + $0x80] sm:$0xf]  ;;  %v2547_v31 = vld [vmem:[%s3902_s1 + $0x8c] sm:$0xf0]  ;;  %v2931_v33 = vor.u32 %v2550_v25, %v2385_v26 }
   0x9   :  { %229 = vmatpush.bf16.msra.mxu1 %v2881_v16  ;;  %255 = vmatpush.bf16.msra.mxu3 %v2883_v17  ;;  %v2933_v34 = vor.u32 %v2556_v29, %v2399_v27  ;;  %v2545_v35 = vld [vmem:[%s3902_s1 + $0x84] sm:$0xf]  ;;  %v2361_v36 = vld [vmem:[%s3902_s1 + $0x90] sm:$0xf0]  ;;  %v2546_v37 = vld [vmem:[%s3902_s1 + $0x8c] sm:$0xf]  ;;  %v2955_v41 = vor.u32 %v2547_v31, %v2359_v30 }
   0xa   :  { %v2369_v38 = vld [vmem:[%s3902_s1 + $0x98] sm:$0xf0]  ;;  %v2383_v39 = vld [vmem:[%s3902_s1 + $0xa8] sm:$0xf]  ;;  %v2552_v40 = vld [vmem:[%s3902_s1 + $0xb4] sm:$0xf0]  ;;  %v2967_v45 = vor.u32 %v2545_v35, %v2361_v36 }
   0xb   :  { %v2957_v42 = vor.u32 %v2552_v40, %v2383_v39  ;;  %v2343_v43 = vld [vmem:[%s3902_s1 + $0x60] sm:$0xf]  ;;  %v2543_v44 = vld [vmem:[%s3902_s1 + $0x6c] sm:$0xf0]  ;;  %v2969_v46 = vor.u32 %v2546_v37, %v2369_v38  ;;  %v2541_v47 = vld [vmem:[%s3902_s1 + $0x64] sm:$0xf] }
   0xc   :  { %217 = vmatpush.bf16.msra.mxu0 %v2916_v28  ;;  %242 = vmatpush.bf16.msra.mxu2 %v2933_v34  ;;  %v2367_v48 = vld [vmem:[%s3902_s1 + $0x88] sm:$0xf]  ;;  %v2548_v49 = vld [vmem:[%s3902_s1 + $0x94] sm:$0xf0]  ;;  %v2345_v50 = vld [vmem:[%s3902_s1 + $0x70] sm:$0xf0]  ;;  %v2991_v53 = vor.u32 %v2543_v44, %v2343_v43 }
   0xd   :  { %230 = vmatpush.bf16.msra.mxu1 %v2929_v32  ;;  %256 = vmatpush.bf16.msra.mxu3 %v2931_v33  ;;  %v2542_v51 = vld [vmem:[%s3902_s1 + $0x6c] sm:$0xf]  ;;  %v2353_v52 = vld [vmem:[%s3902_s1 + $0x78] sm:$0xf0]  ;;  %v2993_v54 = vor.u32 %v2548_v49, %v2367_v48  ;;  %v2327_v55 = vld [vmem:[%s3902_s1 + $0x40] sm:$0xf]  ;;  %v3003_v57 = vor.u32 %v2541_v47, %v2345_v50 }
   0xe   :  { %v2539_v56 = vld [vmem:[%s3902_s1 + $0x4c] sm:$0xf0]  ;;  %v3005_v58 = vor.u32 %v2542_v51, %v2353_v52  ;;  %v2537_v59 = vld [vmem:[%s3902_s1 + $0x44] sm:$0xf]  ;;  %v2351_v60 = vld [vmem:[%s3902_s1 + $0x68] sm:$0xf] }
   0xf   :  { %v2544_v61 = vld [vmem:[%s3902_s1 + $0x74] sm:$0xf0]  ;;  %v2329_v62 = vld [vmem:[%s3902_s1 + $0x50] sm:$0xf0]  ;;  %v2538_v63 = vld [vmem:[%s3902_s1 + $0x4c] sm:$0xf]  ;;  %v3027_v1 = vor.u32 %v2539_v56, %v2327_v55 }
  0x10   :  { %218 = vmatpush.bf16.msra.mxu0 %v2955_v41  ;;  %243 = vmatpush.bf16.msra.mxu2 %v2957_v42  ;;  %v2337_v0 = vld [vmem:[%s3902_s1 + $0x58] sm:$0xf0]  ;;  %v3029_v2 = vor.u32 %v2544_v61, %v2351_v60  ;;  %v2311_v4 = vld [vmem:[%s3902_s1 + $0x20] sm:$0xf]  ;;  %v2535_v5 = vld [vmem:[%s3902_s1 + $0x2c] sm:$0xf0]  ;;  %v3042_v9 = vor.u32 %v2537_v59, %v2329_v62 }
  0x11   :  { %231 = vmatpush.bf16.msra.mxu1 %v2967_v45  ;;  %257 = vmatpush.bf16.msra.mxu3 %v2969_v46  ;;  %v2533_v6 = vld [vmem:[%s3902_s1 + $0x24] sm:$0xf]  ;;  %v3044_v10 = vor.u32 %v2538_v63, %v2337_v0  ;;  %v2335_v11 = vld [vmem:[%s3902_s1 + $0x48] sm:$0xf]  ;;  %v2540_v13 = vld [vmem:[%s3902_s1 + $0x54] sm:$0xf0]  ;;  %v3063_v20 = vor.u32 %v2535_v5, %v2311_v4 }
  0x12   :  { %v2818_v14 = vmov 0   ;;  %v2313_v15 = vld [vmem:[%s3902_s1 + $0x30] sm:$0xf0]  ;;  %v2534_v18 = vld [vmem:[%s3902_s1 + $0x2c] sm:$0xf]  ;;  %v3065_v22 = vor.u32 %v2540_v13, %v2335_v11  ;;  %v50_v49 = vld [vmem:[%s3903_s0] sm:$0xff] }
  0x13   :  { %16 = vst [vmem:[#allocation2] sm:$0xf] %v2818_v14  ;;  %v2321_v19 = vld [vmem:[%s3902_s1 + $0x38] sm:$0xf0]  ;;  %v2295_v23 = vld [vmem:[%s3902_s1] sm:$0xf]  ;;  %v3075_v25 = vor.u32 %v2533_v6, %v2313_v15 }
  0x14   :  { %219 = vmatpush.bf16.msra.mxu0 %v2991_v53  ;;  %244 = vmatpush.bf16.msra.mxu2 %v2993_v54  ;;  %v2531_v24 = vld [vmem:[%s3902_s1 + $0xc] sm:$0xf0]  ;;  %v3077_v26 = vor.u32 %v2534_v18, %v2321_v19  ;;  %v2529_v27 = vld [vmem:[%s3902_s1 + $0x4] sm:$0xf]  ;;  %v2319_v29 = vld [vmem:[%s3902_s1 + $0x28] sm:$0xf] }
  0x15   :  { %232 = vmatpush.bf16.msra.mxu1 %v3003_v57  ;;  %258 = vmatpush.bf16.msra.mxu3 %v3005_v58  ;;  %v2536_v30 = vld [vmem:[%s3902_s1 + $0x34] sm:$0xf0]  ;;  %v2297_v31 = vld [vmem:[%s3902_s1 + $0x10] sm:$0xf0]  ;;  %v2530_v35 = vld [vmem:[%s3902_s1 + $0xc] sm:$0xf]  ;;  %v3099_v37 = vor.u32 %v2531_v24, %v2295_v23 }
  0x16   :  { %v2305_v36 = vld [vmem:[%s3902_s1 + $0x18] sm:$0xf0]  ;;  %v3101_v38 = vor.u32 %v2536_v30, %v2319_v29  ;;  %v3105_v39 = vor.u32 %v2529_v27, %v2297_v31  ;;  %v2303_v43 = vld [vmem:[%s3902_s1 + $0x8] sm:$0xf]  ;;  %v2532_v44 = vld [vmem:[%s3902_s1 + $0x14] sm:$0xf0] }
  0x17   :  { %v3107_v40 = vor.u32 %v2530_v35, %v2305_v36  ;;  %v3119_v48 = vor.u32 %v2532_v44, %v2303_v43  ;;  %v51_v50 = vld [vmem:[%s3903_s0 + $0x8] sm:$0xff]  ;;  %v53_v61 = vld [vmem:[%s3903_s0 + $0x18] sm:$0xff]  ;;  %v52_v18 = vld [vmem:[%s3903_s0 + $0x10] sm:$0xff] }
  0x18   :  { %220 = vmatpush.bf16.msra.mxu0 %v3027_v1  ;;  %245 = vmatpush.bf16.msra.mxu2 %v3029_v2 }
  0x19   :  { %233 = vmatpush.bf16.msra.mxu1 %v3042_v9  ;;  %259 = vmatpush.bf16.msra.mxu3 %v3044_v10 }
  0x1a   :  { %v54_v47 = vld [vmem:[#allocation2] sm:$0xf] }
  0x1c   :  { %221 = vmatpush.bf16.msra.mxu0 %v3063_v20  ;;  %246 = vmatpush.bf16.msra.mxu2 %v3065_v22 }
  0x1d   :  { %234 = vmatpush.bf16.msra.mxu1 %v3075_v25  ;;  %260 = vmatpush.bf16.msra.mxu3 %v3077_v26 }
  0x20   :  { %222 = vmatpush.bf16.msra.mxu0 %v3099_v37  ;;  %247 = vmatpush.bf16.msra.mxu2 %v3101_v38 }
  0x21   :  { %235 = vmatpush.bf16.msra.mxu1 %v3105_v39  ;;  %261 = vmatpush.bf16.msra.mxu3 %v3107_v40 }
  0x23   :  { %223 = vmatmul.bf16.vlgmr.msra.gmra.mxu0 %v54_v47 }
  0x24   :  { %345 = vmatpush.bf16.msrb.mxu0 %v2843_v3  ;;  %236 = vmatmul.bf16.vlgmr.msra.gmra.mxu1 %v54_v47 }
  0x25   :  { %358 = vmatpush.bf16.msrb.mxu1 %v2854_v7  ;;  %384 = vmatpush.bf16.msrb.mxu3 %v2856_v8 }
  0x26   :  { %262 = vmatmul.bf16.vlgmr.msra.gmra.mxu3 %v54_v47  ;;  %248 = vmatpush.bf16.msra.mxu2 %v3119_v48 }
  0x28   :  { %346 = vmatpush.bf16.msrb.mxu0 %v2868_v12 }
  0x29   :  { %359 = vmatpush.bf16.msrb.mxu1 %v2881_v16  ;;  %385 = vmatpush.bf16.msrb.mxu3 %v2883_v17 }
  0x2a   :  { %371 = vmatpush.bf16.msrb.mxu2 %v2894_v21 }
  0x2b   :  { %249 = vmatmul.bf16.vlgmr.msra.gmra.mxu2 %v54_v47 }
  0x2c   :  { %347 = vmatpush.bf16.msrb.mxu0 %v2916_v28 }
  0x2d   :  { %360 = vmatpush.bf16.msrb.mxu1 %v2929_v32  ;;  %386 = vmatpush.bf16.msrb.mxu3 %v2931_v33 }
  0x2e   :  { %372 = vmatpush.bf16.msrb.mxu2 %v2933_v34 }
  0x30   :  { %348 = vmatpush.bf16.msrb.mxu0 %v2955_v41 }
  0x31   :  { %361 = vmatpush.bf16.msrb.mxu1 %v2967_v45  ;;  %387 = vmatpush.bf16.msrb.mxu3 %v2969_v46 }
  0x32   :  { %373 = vmatpush.bf16.msrb.mxu2 %v2957_v42 }
  0x34   :  { %349 = vmatpush.bf16.msrb.mxu0 %v2991_v53 }
  0x35   :  { %362 = vmatpush.bf16.msrb.mxu1 %v3003_v57  ;;  %388 = vmatpush.bf16.msrb.mxu3 %v3005_v58 }
  0x36   :  { %374 = vmatpush.bf16.msrb.mxu2 %v2993_v54 }
  0x38   :  { %350 = vmatpush.bf16.msrb.mxu0 %v3027_v1 }
  0x39   :  { %363 = vmatpush.bf16.msrb.mxu1 %v3042_v9  ;;  %389 = vmatpush.bf16.msrb.mxu3 %v3044_v10 }
  0x3a   :  { %375 = vmatpush.bf16.msrb.mxu2 %v3029_v2 }
  0x3c   :  { %351 = vmatpush.bf16.msrb.mxu0 %v3063_v20 }
  0x3d   :  { %364 = vmatpush.bf16.msrb.mxu1 %v3075_v25  ;;  %390 = vmatpush.bf16.msrb.mxu3 %v3077_v26 }
  0x3e   :  { %376 = vmatpush.bf16.msrb.mxu2 %v3065_v22 }
  0x40   :  { %352 = vmatpush.bf16.msrb.mxu0 %v3099_v37 }
  0x41   :  { %365 = vmatpush.bf16.msrb.mxu1 %v3105_v39  ;;  %391 = vmatpush.bf16.msrb.mxu3 %v3107_v40 }
  0x42   :  { %377 = vmatpush.bf16.msrb.mxu2 %v3101_v38 }
  0x44   :  { %475 = vmatpush.bf16.msra.mxu0 %v2843_v3 }
  0x45   :  { %488 = vmatpush.bf16.msra.mxu1 %v2854_v7  ;;  %514 = vmatpush.bf16.msra.mxu3 %v2856_v8 }
  0x46   :  { %378 = vmatpush.bf16.msrb.mxu2 %v3119_v48 }
  0x48   :  { %476 = vmatpush.bf16.msra.mxu0 %v2868_v12 }
  0x49   :  { %489 = vmatpush.bf16.msra.mxu1 %v2881_v16  ;;  %515 = vmatpush.bf16.msra.mxu3 %v2883_v17 }
  0x4a   :  { %501 = vmatpush.bf16.msra.mxu2 %v2894_v21 }
  0x4c   :  { %477 = vmatpush.bf16.msra.mxu0 %v2916_v28 }
  0x4d   :  { %490 = vmatpush.bf16.msra.mxu1 %v2929_v32  ;;  %516 = vmatpush.bf16.msra.mxu3 %v2931_v33 }
  0x4e   :  { %502 = vmatpush.bf16.msra.mxu2 %v2933_v34 }
  0x50   :  { %478 = vmatpush.bf16.msra.mxu0 %v2955_v41 }
  0x51   :  { %491 = vmatpush.bf16.msra.mxu1 %v2967_v45  ;;  %517 = vmatpush.bf16.msra.mxu3 %v2969_v46 }
  0x52   :  { %503 = vmatpush.bf16.msra.mxu2 %v2957_v42 }
  0x54   :  { %479 = vmatpush.bf16.msra.mxu0 %v2991_v53 }
  0x55   :  { %492 = vmatpush.bf16.msra.mxu1 %v3003_v57  ;;  %518 = vmatpush.bf16.msra.mxu3 %v3005_v58 }
  0x56   :  { %504 = vmatpush.bf16.msra.mxu2 %v2993_v54 }
  0x58   :  { %480 = vmatpush.bf16.msra.mxu0 %v3027_v1 }
  0x59   :  { %493 = vmatpush.bf16.msra.mxu1 %v3042_v9  ;;  %519 = vmatpush.bf16.msra.mxu3 %v3044_v10 }
  0x5a   :  { %505 = vmatpush.bf16.msra.mxu2 %v3029_v2 }
  0x5c   :  { %481 = vmatpush.bf16.msra.mxu0 %v3063_v20 }
  0x5d   :  { %494 = vmatpush.bf16.msra.mxu1 %v3075_v25  ;;  %520 = vmatpush.bf16.msra.mxu3 %v3077_v26 }
  0x5e   :  { %506 = vmatpush.bf16.msra.mxu2 %v3065_v22 }
  0x60   :  { %482 = vmatpush.bf16.msra.mxu0 %v3099_v37 }
  0x61   :  { %495 = vmatpush.bf16.msra.mxu1 %v3105_v39  ;;  %521 = vmatpush.bf16.msra.mxu3 %v3107_v40 }
  0x62   :  { %507 = vmatpush.bf16.msra.mxu2 %v3101_v38 }
  0x66   :  { %508 = vmatpush.bf16.msra.mxu2 %v3119_v48 }
  0xa0   :  { %v224_v51 = vpop.f32.mrf.mxu0 }
  0xa1   :  { %v267_v52 = vadd.f32 %v224_v51, %v50_v49  ;;  %v237_v55 = vpop.f32.mrf.mxu1 }
  0xa2   :  { %v268_v56 = vadd.f32 %v237_v55, %v51_v50 }
  0xa3   :  { %v2421_v59 = vmul.f32 -1.442695, %v267_v52 }
  0xa4   :  { %v2422_v60 = vmul.f32 -1.442695, %v268_v56 }
  0xa5   :  { %2562 = vpow2.f32 %v2421_v59 }
  0xa6   :  { %2564 = vpow2.f32 %v2422_v60 }
  0xa8   :  { %v226_v0 = vpop.f32.mrf.mxu0 }
  0xa9   :  { %v263_v62 = vpop.f32.mrf.mxu3  ;;  %v239_v4 = vpop.f32.mrf.mxu1 }
  0xaa   :  { %v270_v63 = vadd.f32 %v263_v62, %v53_v61 }
  0xab   :  { %v2563_v6 = vpop.eup %2562 }
  0xac   :  { %v2423_v5 = vmul.f32 -1.442695, %v270_v63  ;;  %v2565_v13 = vpop.eup %2564  ;;  %v274_v14 = vadd.f32 1.0, %v2563_v6 }
  0xad   :  { %v293_v15 = vadd.f32 1.0, %v2565_v13 }
  0xae   :  { %v250_v11 = vpop.f32.mrf.mxu2  ;;  %2566 = vpow2.f32 %v2423_v5  ;;  %v286_v47 = vand.u32 2147483648, %v274_v14  ;;  %v284_v51 = vand.u32 2147483647, %v274_v14  ;;  %vm280_vm2 = vweird.f32 %v274_v14 }
  0xaf   :  { %2568 = vrcp.f32 %v274_v14  ;;  %v269_v24 = vadd.f32 %v250_v11, %v52_v18  ;;  %v305_v49 = vand.u32 2147483648, %v293_v15  ;;  %v303_v55 = vand.u32 2147483647, %v293_v15 }
  0xb0   :  { %2570 = vrcp.f32 %v293_v15  ;;  %vm299_vm3 = vweird.f32 %v293_v15  ;;  %v287_v62 = vor.u32 1.1754944e-38, %v286_v47  ;;  %vm285_vm5 = vcmp.eq.f32.partialorder %v284_v51, 8.507059e+37 }
  0xb1   :  { %v265_v19 = vpop.f32.mrf.mxu3  ;;  %v306_v0 = vor.u32 1.1754944e-38, %v305_v49  ;;  %vm304_vm7 = vcmp.eq.f32.partialorder %v303_v55, 8.507059e+37  ;;  %v2425_v49 = vld [vmem:[%s3903_s0 + $0x28] sm:$0xff] }
  0xb4   :  { %v2567_v23 = vpop.eup %2566 }
  0xb5   :  { %v313_v27 = vadd.f32 1.0, %v2567_v23  ;;  %v2569_v30 = vpop.eup %2568 }
  0xb6   :  { %v252_v29 = vpop.f32.mrf.mxu2  ;;  %v2571_v31 = vpop.eup %2570  ;;  %v276_v35 = vmul.f32 %v2569_v30, %v274_v14  ;;  %vm281_vm0 = vweird.f32 %v2569_v30 }
  0xb7   :  { %2572 = vrcp.f32 %v313_v27  ;;  %v295_v36 = vmul.f32 %v2571_v31, %v293_v15  ;;  %vm300_vm1 = vweird.f32 %v2571_v31  ;;  %vm282_vm4 = vmor %vm280_vm2, %vm281_vm0  ;;  %v325_v15 = vand.u32 2147483648, %v313_v27 }
  0xb8   :  { %2574 = vtanh.f32 %v269_v24  ;;  %v277_v43 = vsub.f32 1.0, %v276_v35  ;;  %vm301_vm6 = vmor %vm299_vm3, %vm300_vm1  ;;  %vm319_vm9 = vweird.f32 %v313_v27  ;;  %v323_v29 = vand.u32 2147483647, %v313_v27 }
  0xb9   :  { %v296_v44 = vsub.f32 1.0, %v295_v36  ;;  %v326_v35 = vor.u32 1.1754944e-38, %v325_v15 }
  0xba   :  { %v278_v50 = vmul.f32 %v2569_v30, %v277_v43  ;;  %vm324_vm11 = vcmp.eq.f32.partialorder %v323_v29, 8.507059e+37 }
  0xbb   :  { %v297_v52 = vmul.f32 %v2571_v31, %v296_v44 }
  0xbc   :  { %v279_v59 = vadd.f32 %v2569_v30, %v278_v50 }
  0xbd   :  { %v2573_v56 = vpop.eup %2572  ;;  %v298_v63 = vadd.f32 %v2571_v31, %v297_v52 }
  0xbe   :  { %v2575_v60 = vpop.eup %2574  ;;  %v315_v61 = vmul.f32 %v2573_v56, %v313_v27  ;;  %v283_v4 = vsel %vm282_vm4, %v2569_v30, %v279_v59  ;;  %vm320_vm8 = vweird.f32 %v2573_v56  ;;  %v2424_v27 = vld [vmem:[%s3903_s0 + $0x20] sm:$0xff] }
  0xbf   :  { %v288_v6 = vsel %vm285_vm5, %v287_v62, %v283_v4  ;;  %v302_v11 = vsel %vm301_vm6, %v2571_v31, %v298_v63  ;;  %vm321_vm10 = vmor %vm319_vm9, %vm320_vm8 }
  0xc0   :  { %v316_v5 = vsub.f32 1.0, %v315_v61  ;;  %v307_v13 = vsel %vm304_vm7, %v306_v0, %v302_v11  ;;  %v331_v18 = vmul.f32 %v2575_v60, %v288_v6  ;;  %v2427_v60 = vld [vmem:[%s3903_s0 + $0x38] sm:$0xff] }
  0xc1   :  { %v330_v23 = vmul.f32 0.0, %v307_v13 }
  0xc2   :  { %v317_v19 = vmul.f32 %v2573_v56, %v316_v5 }
  0xc3   :  { %v3198_v24 = vadd.f32 %v331_v18, %v330_v23 }
  0xc4   :  { %v318_v14 = vadd.f32 %v2573_v56, %v317_v19 }
  0xc5   :  { %2576 = vtanh.f32 %v3198_v24 }
  0xc6   :  { %v322_v30 = vsel %vm321_vm10, %v2573_v56, %v318_v14  ;;  %v2426_v14 = vld [vmem:[%s3903_s0 + $0x30] sm:$0xff] }
  0xc7   :  { %v327_v31 = vsel %vm324_vm11, %v326_v35, %v322_v30 }
  0xcb   :  { %v2577_v36 = vpop.eup %2576 }
  0xcc   :  { %v334_v43 = vmul.f32 %v2577_v36, %v327_v31 }
  0xce   :  { %v335_v44 = vpack.c.bf16 %v334_v43, %v334_v43 }
  0xd0   :  { %337 = vst [vmem:[#allocation2] sm:$0xf] %v335_v44 }
  0xd1   :  { %338 = vst [vmem:[%s3904_s2] sm:$0xf] %v335_v44 }
  0xd7   :  { %v344_v47 = vld [vmem:[#allocation2] sm:$0xf] }
  0xd8   :  { %353 = vmatmul.bf16.vlgmr.msrb.gmra.mxu0 %v344_v47  ;;  %366 = vmatmul.bf16.vlgmr.msrb.gmra.mxu1 %v344_v47 }
  0xd9   :  { %379 = vmatmul.bf16.vlgmr.msrb.gmra.mxu2 %v344_v47  ;;  %392 = vmatmul.bf16.vlgmr.msrb.gmra.mxu3 %v344_v47 }
  0xda   :  { %605 = vmatpush.bf16.msrb.mxu0 %v2843_v3  ;;  %618 = vmatpush.bf16.msrb.mxu1 %v2854_v7 }
  0xdb   :  { %631 = vmatpush.bf16.msrb.mxu2 %v2894_v21  ;;  %644 = vmatpush.bf16.msrb.mxu3 %v2856_v8 }
  0xde   :  { %606 = vmatpush.bf16.msrb.mxu0 %v2868_v12  ;;  %619 = vmatpush.bf16.msrb.mxu1 %v2881_v16 }
  0xdf   :  { %632 = vmatpush.bf16.msrb.mxu2 %v2933_v34  ;;  %645 = vmatpush.bf16.msrb.mxu3 %v2883_v17 }
  0xe2   :  { %607 = vmatpush.bf16.msrb.mxu0 %v2916_v28  ;;  %620 = vmatpush.bf16.msrb.mxu1 %v2929_v32 }
  0xe3   :  { %633 = vmatpush.bf16.msrb.mxu2 %v2957_v42  ;;  %646 = vmatpush.bf16.msrb.mxu3 %v2931_v33 }
  0xe6   :  { %608 = vmatpush.bf16.msrb.mxu0 %v2955_v41  ;;  %621 = vmatpush.bf16.msrb.mxu1 %v2967_v45 }
  0xe7   :  { %634 = vmatpush.bf16.msrb.mxu2 %v2993_v54  ;;  %647 = vmatpush.bf16.msrb.mxu3 %v2969_v46 }
  0xea   :  { %609 = vmatpush.bf16.msrb.mxu0 %v2991_v53  ;;  %622 = vmatpush.bf16.msrb.mxu1 %v3003_v57 }
  0xeb   :  { %635 = vmatpush.bf16.msrb.mxu2 %v3029_v2  ;;  %648 = vmatpush.bf16.msrb.mxu3 %v3005_v58 }
  0xee   :  { %610 = vmatpush.bf16.msrb.mxu0 %v3027_v1  ;;  %623 = vmatpush.bf16.msrb.mxu1 %v3042_v9 }
  0xef   :  { %636 = vmatpush.bf16.msrb.mxu2 %v3065_v22  ;;  %649 = vmatpush.bf16.msrb.mxu3 %v3044_v10 }
  0xf2   :  { %611 = vmatpush.bf16.msrb.mxu0 %v3063_v20  ;;  %624 = vmatpush.bf16.msrb.mxu1 %v3075_v25 }
  0xf3   :  { %637 = vmatpush.bf16.msrb.mxu2 %v3101_v38  ;;  %650 = vmatpush.bf16.msrb.mxu3 %v3077_v26 }
  0xf6   :  { %612 = vmatpush.bf16.msrb.mxu0 %v3099_v37  ;;  %625 = vmatpush.bf16.msrb.mxu1 %v3105_v39 }
  0xf7   :  { %638 = vmatpush.bf16.msrb.mxu2 %v3119_v48  ;;  %651 = vmatpush.bf16.msrb.mxu3 %v3107_v40 }
 0x155   :  { %v354_v50 = vpop.f32.mrf.mxu0  ;;  %v367_v51 = vpop.f32.mrf.mxu1 }
 0x156   :  { %v397_v52 = vadd.f32 %v2424_v27, %v354_v50  ;;  %v398_v55 = vadd.f32 %v2425_v49, %v367_v51 }
 0x158   :  { %v2428_v56 = vmul.f32 -1.442695, %v397_v52  ;;  %v2429_v59 = vmul.f32 -1.442695, %v398_v55 }
 0x15a   :  { %2578 = vpow2.f32 %v2428_v56 }
 0x15b   :  { %2580 = vpow2.f32 %v2429_v59 }
 0x15c   :  { %v380_v61 = vpop.f32.mrf.mxu2  ;;  %v393_v62 = vpop.f32.mrf.mxu3 }
 0x15d   :  { %v400_v63 = vadd.f32 %v2427_v60, %v393_v62  ;;  %v356_v0 = vpop.f32.mrf.mxu0  ;;  %v369_v4 = vpop.f32.mrf.mxu1  ;;  %v399_v35 = vadd.f32 %v2426_v14, %v380_v61 }
 0x15f   :  { %v2430_v5 = vmul.f32 -1.442695, %v400_v63 }
 0x160   :  { %v2579_v6 = vpop.eup %2578 }
 0x161   :  { %v2581_v11 = vpop.eup %2580  ;;  %v404_v13 = vadd.f32 1.0, %v2579_v6  ;;  %2582 = vpow2.f32 %v2430_v5 }
 0x162   :  { %v423_v18 = vadd.f32 1.0, %v2581_v11 }
 0x163   :  { %2584 = vrcp.f32 %v404_v13  ;;  %v416_v27 = vand.u32 2147483648, %v404_v13  ;;  %v414_v51 = vand.u32 2147483647, %v404_v13  ;;  %vm410_vm14 = vweird.f32 %v404_v13 }
 0x164   :  { %2586 = vrcp.f32 %v423_v18  ;;  %v382_v19 = vpop.f32.mrf.mxu2  ;;  %v395_v23 = vpop.f32.mrf.mxu3  ;;  %v435_v49 = vand.u32 2147483648, %v423_v18  ;;  %v433_v55 = vand.u32 2147483647, %v423_v18  ;;  %vm429_vm15 = vweird.f32 %v423_v18 }
 0x165   :  { %v417_v60 = vor.u32 1.1754944e-38, %v416_v27  ;;  %vm415_vm2 = vcmp.eq.f32.partialorder %v414_v51, 8.507059e+37 }
 0x166   :  { %v436_v63 = vor.u32 1.1754944e-38, %v435_v49  ;;  %vm434_vm3 = vcmp.eq.f32.partialorder %v433_v55, 8.507059e+37  ;;  %v2432_v49 = vld [vmem:[%s3903_s0 + $0x48] sm:$0xff] }
 0x167   :  { %v2583_v15 = vpop.eup %2582 }
 0x168   :  { %v443_v29 = vadd.f32 1.0, %v2583_v15 }
 0x169   :  { %v2585_v30 = vpop.eup %2584 }
 0x16a   :  { %v2587_v36 = vpop.eup %2586  ;;  %v406_v31 = vmul.f32 %v2585_v30, %v404_v13  ;;  %2588 = vrcp.f32 %v443_v29  ;;  %vm411_vm12 = vweird.f32 %v2585_v30  ;;  %vm449_vm5 = vweird.f32 %v443_v29 }
 0x16b   :  { %v425_v43 = vmul.f32 %v2587_v36, %v423_v18  ;;  %2590 = vtanh.f32 %v399_v35  ;;  %vm430_vm13 = vweird.f32 %v2587_v36  ;;  %vm412_vm0 = vmor %vm410_vm14, %vm411_vm12  ;;  %v455_v35 = vand.u32 2147483648, %v443_v29 }
 0x16c   :  { %v407_v44 = vsub.f32 1.0, %v406_v31  ;;  %vm431_vm1 = vmor %vm429_vm15, %vm430_vm13 }
 0x16d   :  { %v426_v47 = vsub.f32 1.0, %v425_v43  ;;  %v456_v43 = vor.u32 1.1754944e-38, %v455_v35 }
 0x16e   :  { %v408_v50 = vmul.f32 %v2585_v30, %v407_v44 }
 0x16f   :  { %v427_v52 = vmul.f32 %v2587_v36, %v426_v47 }
 0x170   :  { %v2589_v56 = vpop.eup %2588  ;;  %v409_v59 = vadd.f32 %v2585_v30, %v408_v50 }
 0x171   :  { %v428_v61 = vadd.f32 %v2587_v36, %v427_v52  ;;  %v445_v62 = vmul.f32 %v2589_v56, %v443_v29  ;;  %v2591_v4 = vpop.eup %2590  ;;  %vm450_vm4 = vweird.f32 %v2589_v56 }
 0x172   :  { %v413_v0 = vsel %vm412_vm0, %v2585_v30, %v409_v59  ;;  %v453_v30 = vand.u32 2147483647, %v443_v29  ;;  %vm451_vm6 = vmor %vm449_vm5, %vm450_vm4  ;;  %v2431_v29 = vld [vmem:[%s3903_s0 + $0x40] sm:$0xff] }
 0x173   :  { %v418_v5 = vsel %vm415_vm2, %v417_v60, %v413_v0  ;;  %v432_v6 = vsel %vm431_vm1, %v2587_v36, %v428_v61  ;;  %v446_v11 = vsub.f32 1.0, %v445_v62  ;;  %v2434_v60 = vld [vmem:[%s3903_s0 + $0x58] sm:$0xff] }
 0x174   :  { %v437_v19 = vsel %vm434_vm3, %v436_v63, %v432_v6  ;;  %v461_v23 = vmul.f32 %v2591_v4, %v418_v5  ;;  %vm454_vm7 = vcmp.eq.f32.partialorder %v453_v30, 8.507059e+37 }
 0x175   :  { %v460_v14 = vmul.f32 %v437_v19, %v3198_v24  ;;  %v447_v15 = vmul.f32 %v2589_v56, %v446_v11 }
 0x177   :  { %v3249_v13 = vadd.f32 %v461_v23, %v460_v14  ;;  %v448_v18 = vadd.f32 %v2589_v56, %v447_v15 }
 0x179   :  { %2592 = vtanh.f32 %v3249_v13  ;;  %v452_v31 = vsel %vm451_vm6, %v2589_v56, %v448_v18  ;;  %v2433_v18 = vld [vmem:[%s3903_s0 + $0x50] sm:$0xff] }
 0x17a   :  { %v457_v44 = vsel %vm454_vm7, %v456_v43, %v452_v31 }
 0x17f   :  { %v2593_v36 = vpop.eup %2592 }
 0x180   :  { %v464_v47 = vmul.f32 %v2593_v36, %v457_v44 }
 0x182   :  { %v465_v27 = vpack.c.bf16 %v464_v47, %v464_v47 }
 0x184   :  { %467 = vst [vmem:[#allocation2] sm:$0xf] %v465_v27 }
 0x185   :  { %468 = vst [vmem:[%s3904_s2 + $0x4] sm:$0xf] %v465_v27 }
 0x18b   :  { %v474_v24 = vld [vmem:[#allocation2] sm:$0xf] }
 0x18c   :  { %483 = vmatmul.bf16.vlgmr.msra.gmra.mxu0 %v474_v24  ;;  %496 = vmatmul.bf16.vlgmr.msra.gmra.mxu1 %v474_v24 }
 0x18d   :  { %509 = vmatmul.bf16.vlgmr.msra.gmra.mxu2 %v474_v24  ;;  %522 = vmatmul.bf16.vlgmr.msra.gmra.mxu3 %v474_v24 }
 0x18e   :  { %735 = vmatpush.bf16.msra.mxu0 %v2843_v3  ;;  %748 = vmatpush.bf16.msra.mxu1 %v2854_v7 }
 0x18f   :  { %761 = vmatpush.bf16.msra.mxu2 %v2894_v21  ;;  %774 = vmatpush.bf16.msra.mxu3 %v2856_v8 }
 0x192   :  { %736 = vmatpush.bf16.msra.mxu0 %v2868_v12  ;;  %749 = vmatpush.bf16.msra.mxu1 %v2881_v16 }
 0x193   :  { %762 = vmatpush.bf16.msra.mxu2 %v2933_v34  ;;  %775 = vmatpush.bf16.msra.mxu3 %v2883_v17 }
 0x196   :  { %737 = vmatpush.bf16.msra.mxu0 %v2916_v28  ;;  %750 = vmatpush.bf16.msra.mxu1 %v2929_v32 }
 0x197   :  { %763 = vmatpush.bf16.msra.mxu2 %v2957_v42  ;;  %776 = vmatpush.bf16.msra.mxu3 %v2931_v33 }
 0x19a   :  { %738 = vmatpush.bf16.msra.mxu0 %v2955_v41  ;;  %751 = vmatpush.bf16.msra.mxu1 %v2967_v45 }
 0x19b   :  { %764 = vmatpush.bf16.msra.mxu2 %v2993_v54  ;;  %777 = vmatpush.bf16.msra.mxu3 %v2969_v46 }
 0x19e   :  { %739 = vmatpush.bf16.msra.mxu0 %v2991_v53  ;;  %752 = vmatpush.bf16.msra.mxu1 %v3003_v57 }
 0x19f   :  { %765 = vmatpush.bf16.msra.mxu2 %v3029_v2  ;;  %778 = vmatpush.bf16.msra.mxu3 %v3005_v58 }
 0x1a2   :  { %740 = vmatpush.bf16.msra.mxu0 %v3027_v1  ;;  %753 = vmatpush.bf16.msra.mxu1 %v3042_v9 }
 0x1a3   :  { %766 = vmatpush.bf16.msra.mxu2 %v3065_v22  ;;  %779 = vmatpush.bf16.msra.mxu3 %v3044_v10 }
 0x1a6   :  { %741 = vmatpush.bf16.msra.mxu0 %v3063_v20  ;;  %754 = vmatpush.bf16.msra.mxu1 %v3075_v25 }
 0x1a7   :  { %767 = vmatpush.bf16.msra.mxu2 %v3101_v38  ;;  %780 = vmatpush.bf16.msra.mxu3 %v3077_v26 }
 0x1aa   :  { %742 = vmatpush.bf16.msra.mxu0 %v3099_v37  ;;  %755 = vmatpush.bf16.msra.mxu1 %v3105_v39 }
 0x1ab   :  { %768 = vmatpush.bf16.msra.mxu2 %v3119_v48  ;;  %781 = vmatpush.bf16.msra.mxu3 %v3107_v40 }
 0x209   :  { %v484_v50 = vpop.f32.mrf.mxu0  ;;  %v497_v51 = vpop.f32.mrf.mxu1 }
 0x20a   :  { %v527_v52 = vadd.f32 %v2431_v29, %v484_v50  ;;  %v528_v55 = vadd.f32 %v2432_v49, %v497_v51 }
 0x20c   :  { %v2435_v56 = vmul.f32 -1.442695, %v527_v52  ;;  %v2436_v59 = vmul.f32 -1.442695, %v528_v55 }
 0x20e   :  { %2594 = vpow2.f32 %v2435_v56 }
 0x20f   :  { %2596 = vpow2.f32 %v2436_v59 }
 0x210   :  { %v510_v61 = vpop.f32.mrf.mxu2  ;;  %v523_v62 = vpop.f32.mrf.mxu3 }
 0x211   :  { %v530_v63 = vadd.f32 %v2434_v60, %v523_v62  ;;  %v486_v0 = vpop.f32.mrf.mxu0  ;;  %v499_v4 = vpop.f32.mrf.mxu1  ;;  %v529_v43 = vadd.f32 %v2433_v18, %v510_v61 }
 0x213   :  { %v2437_v5 = vmul.f32 -1.442695, %v530_v63 }
 0x214   :  { %v2595_v6 = vpop.eup %2594 }
 0x215   :  { %v2597_v11 = vpop.eup %2596  ;;  %v534_v19 = vadd.f32 1.0, %v2595_v6  ;;  %2598 = vpow2.f32 %v2437_v5 }
 0x216   :  { %v553_v23 = vadd.f32 1.0, %v2597_v11 }
 0x217   :  { %2600 = vrcp.f32 %v534_v19  ;;  %v546_v29 = vand.u32 2147483648, %v534_v19  ;;  %v544_v51 = vand.u32 2147483647, %v534_v19  ;;  %vm540_vm10 = vweird.f32 %v534_v19 }
 0x218   :  { %2602 = vrcp.f32 %v553_v23  ;;  %v512_v14 = vpop.f32.mrf.mxu2  ;;  %v525_v15 = vpop.f32.mrf.mxu3  ;;  %v565_v49 = vand.u32 2147483648, %v553_v23  ;;  %v563_v55 = vand.u32 2147483647, %v553_v23  ;;  %vm559_vm11 = vweird.f32 %v553_v23 }
 0x219   :  { %v547_v60 = vor.u32 1.1754944e-38, %v546_v29  ;;  %vm545_vm14 = vcmp.eq.f32.partialorder %v544_v51, 8.507059e+37 }
 0x21a   :  { %v566_v63 = vor.u32 1.1754944e-38, %v565_v49  ;;  %vm564_vm15 = vcmp.eq.f32.partialorder %v563_v55, 8.507059e+37  ;;  %v2439_v49 = vld [vmem:[%s3903_s0 + $0x68] sm:$0xff] }
 0x21b   :  { %v2599_v35 = vpop.eup %2598 }
 0x21c   :  { %v573_v30 = vadd.f32 1.0, %v2599_v35 }
 0x21d   :  { %v2601_v31 = vpop.eup %2600 }
 0x21e   :  { %v2603_v36 = vpop.eup %2602  ;;  %v536_v44 = vmul.f32 %v2601_v31, %v534_v19  ;;  %2604 = vrcp.f32 %v573_v30  ;;  %vm541_vm8 = vweird.f32 %v2601_v31  ;;  %vm579_vm1 = vweird.f32 %v573_v30 }
 0x21f   :  { %v555_v47 = vmul.f32 %v2603_v36, %v553_v23  ;;  %2606 = vtanh.f32 %v529_v43  ;;  %vm560_vm9 = vweird.f32 %v2603_v36  ;;  %vm542_vm12 = vmor %vm540_vm10, %vm541_vm8  ;;  %v585_v43 = vand.u32 2147483648, %v573_v30 }
 0x220   :  { %v537_v27 = vsub.f32 1.0, %v536_v44  ;;  %vm561_vm13 = vmor %vm559_vm11, %vm560_vm9 }
 0x221   :  { %v556_v24 = vsub.f32 1.0, %v555_v47  ;;  %v586_v47 = vor.u32 1.1754944e-38, %v585_v43 }
 0x222   :  { %v538_v50 = vmul.f32 %v2601_v31, %v537_v27 }
 0x223   :  { %v557_v52 = vmul.f32 %v2603_v36, %v556_v24 }
 0x224   :  { %v2605_v56 = vpop.eup %2604  ;;  %v539_v59 = vadd.f32 %v2601_v31, %v538_v50 }
 0x225   :  { %v558_v61 = vadd.f32 %v2603_v36, %v557_v52  ;;  %v575_v62 = vmul.f32 %v2605_v56, %v573_v30  ;;  %v2607_v4 = vpop.eup %2606  ;;  %vm580_vm0 = vweird.f32 %v2605_v56 }
 0x226   :  { %v543_v0 = vsel %vm542_vm12, %v2601_v31, %v539_v59  ;;  %v583_v31 = vand.u32 2147483647, %v573_v30  ;;  %vm581_vm2 = vmor %vm579_vm1, %vm580_vm0  ;;  %v2438_v30 = vld [vmem:[%s3903_s0 + $0x60] sm:$0xff] }
 0x227   :  { %v548_v5 = vsel %vm545_vm14, %v547_v60, %v543_v0  ;;  %v562_v6 = vsel %vm561_vm13, %v2603_v36, %v558_v61  ;;  %v576_v11 = vsub.f32 1.0, %v575_v62  ;;  %v2441_v60 = vld [vmem:[%s3903_s0 + $0x78] sm:$0xff] }
 0x228   :  { %v567_v14 = vsel %vm564_vm15, %v566_v63, %v562_v6  ;;  %v591_v15 = vmul.f32 %v2607_v4, %v548_v5  ;;  %vm584_vm3 = vcmp.eq.f32.partialorder %v583_v31, 8.507059e+37 }
 0x229   :  { %v590_v18 = vmul.f32 %v567_v14, %v3249_v13  ;;  %v577_v35 = vmul.f32 %v2605_v56, %v576_v11 }
 0x22b   :  { %v3300_v19 = vadd.f32 %v591_v15, %v590_v18  ;;  %v578_v23 = vadd.f32 %v2605_v56, %v577_v35 }
 0x22d   :  { %2608 = vtanh.f32 %v3300_v19  ;;  %v582_v44 = vsel %vm581_vm2, %v2605_v56, %v578_v23  ;;  %v2440_v23 = vld [vmem:[%s3903_s0 + $0x70] sm:$0xff] }
 0x22e   :  { %v587_v27 = vsel %vm584_vm3, %v586_v47, %v582_v44 }
 0x233   :  { %v2609_v36 = vpop.eup %2608 }
 0x234   :  { %v594_v24 = vmul.f32 %v2609_v36, %v587_v27 }
 0x236   :  { %v595_v29 = vpack.c.bf16 %v594_v24, %v594_v24 }
 0x238   :  { %597 = vst [vmem:[#allocation2] sm:$0xf] %v595_v29 }
 0x239   :  { %598 = vst [vmem:[%s3904_s2 + $0x8] sm:$0xf] %v595_v29 }
 0x23f   :  { %v604_v13 = vld [vmem:[#allocation2] sm:$0xf] }
 0x240   :  { %613 = vmatmul.bf16.vlgmr.msrb.gmra.mxu0 %v604_v13  ;;  %626 = vmatmul.bf16.vlgmr.msrb.gmra.mxu1 %v604_v13 }
 0x241   :  { %639 = vmatmul.bf16.vlgmr.msrb.gmra.mxu2 %v604_v13  ;;  %652 = vmatmul.bf16.vlgmr.msrb.gmra.mxu3 %v604_v13 }
 0x242   :  { %865 = vmatpush.bf16.msrb.mxu0 %v2843_v3  ;;  %878 = vmatpush.bf16.msrb.mxu1 %v2854_v7 }
 0x243   :  { %891 = vmatpush.bf16.msrb.mxu2 %v2894_v21  ;;  %904 = vmatpush.bf16.msrb.mxu3 %v2856_v8 }
 0x246   :  { %866 = vmatpush.bf16.msrb.mxu0 %v2868_v12  ;;  %879 = vmatpush.bf16.msrb.mxu1 %v2881_v16 }
 0x247   :  { %892 = vmatpush.bf16.msrb.mxu2 %v2933_v34  ;;  %905 = vmatpush.bf16.msrb.mxu3 %v2883_v17 }
 0x24a   :  { %867 = vmatpush.bf16.msrb.mxu0 %v2916_v28  ;;  %880 = vmatpush.bf16.msrb.mxu1 %v2929_v32 }
 0x24b   :  { %893 = vmatpush.bf16.msrb.mxu2 %v2957_v42  ;;  %906 = vmatpush.bf16.msrb.mxu3 %v2931_v33 }
 0x24e   :  { %868 = vmatpush.bf16.msrb.mxu0 %v2955_v41  ;;  %881 = vmatpush.bf16.msrb.mxu1 %v2967_v45 }
 0x24f   :  { %894 = vmatpush.bf16.msrb.mxu2 %v2993_v54  ;;  %907 = vmatpush.bf16.msrb.mxu3 %v2969_v46 }
 0x252   :  { %869 = vmatpush.bf16.msrb.mxu0 %v2991_v53  ;;  %882 = vmatpush.bf16.msrb.mxu1 %v3003_v57 }
 0x253   :  { %895 = vmatpush.bf16.msrb.mxu2 %v3029_v2  ;;  %908 = vmatpush.bf16.msrb.mxu3 %v3005_v58 }
 0x256   :  { %870 = vmatpush.bf16.msrb.mxu0 %v3027_v1  ;;  %883 = vmatpush.bf16.msrb.mxu1 %v3042_v9 }
 0x257   :  { %896 = vmatpush.bf16.msrb.mxu2 %v3065_v22  ;;  %909 = vmatpush.bf16.msrb.mxu3 %v3044_v10 }
 0x25a   :  { %871 = vmatpush.bf16.msrb.mxu0 %v3063_v20  ;;  %884 = vmatpush.bf16.msrb.mxu1 %v3075_v25 }
 0x25b   :  { %897 = vmatpush.bf16.msrb.mxu2 %v3101_v38  ;;  %910 = vmatpush.bf16.msrb.mxu3 %v3077_v26 }
 0x25e   :  { %872 = vmatpush.bf16.msrb.mxu0 %v3099_v37  ;;  %885 = vmatpush.bf16.msrb.mxu1 %v3105_v39 }
 0x25f   :  { %898 = vmatpush.bf16.msrb.mxu2 %v3119_v48  ;;  %911 = vmatpush.bf16.msrb.mxu3 %v3107_v40 }
 0x2bd   :  { %v614_v50 = vpop.f32.mrf.mxu0  ;;  %v627_v51 = vpop.f32.mrf.mxu1 }
 0x2be   :  { %v657_v52 = vadd.f32 %v2438_v30, %v614_v50  ;;  %v658_v55 = vadd.f32 %v2439_v49, %v627_v51 }
 0x2c0   :  { %v2442_v56 = vmul.f32 -1.442695, %v657_v52  ;;  %v2443_v59 = vmul.f32 -1.442695, %v658_v55 }
 0x2c2   :  { %2610 = vpow2.f32 %v2442_v56 }
 0x2c3   :  { %2612 = vpow2.f32 %v2443_v59 }
 0x2c4   :  { %v640_v61 = vpop.f32.mrf.mxu2  ;;  %v653_v62 = vpop.f32.mrf.mxu3 }
 0x2c5   :  { %v660_v63 = vadd.f32 %v2441_v60, %v653_v62  ;;  %v616_v0 = vpop.f32.mrf.mxu0  ;;  %v629_v4 = vpop.f32.mrf.mxu1  ;;  %v659_v47 = vadd.f32 %v2440_v23, %v640_v61 }
 0x2c7   :  { %v2444_v5 = vmul.f32 -1.442695, %v660_v63 }
 0x2c8   :  { %v2611_v6 = vpop.eup %2610 }
 0x2c9   :  { %v2613_v11 = vpop.eup %2612  ;;  %v664_v14 = vadd.f32 1.0, %v2611_v6  ;;  %2614 = vpow2.f32 %v2444_v5 }
 0x2ca   :  { %v683_v15 = vadd.f32 1.0, %v2613_v11 }
 0x2cb   :  { %2616 = vrcp.f32 %v664_v14  ;;  %v676_v30 = vand.u32 2147483648, %v664_v14  ;;  %v674_v51 = vand.u32 2147483647, %v664_v14  ;;  %vm670_vm6 = vweird.f32 %v664_v14 }
 0x2cc   :  { %2618 = vrcp.f32 %v683_v15  ;;  %v642_v18 = vpop.f32.mrf.mxu2  ;;  %v655_v35 = vpop.f32.mrf.mxu3  ;;  %v695_v49 = vand.u32 2147483648, %v683_v15  ;;  %v693_v55 = vand.u32 2147483647, %v683_v15  ;;  %vm689_vm7 = vweird.f32 %v683_v15 }
 0x2cd   :  { %v677_v60 = vor.u32 1.1754944e-38, %v676_v30  ;;  %vm675_vm10 = vcmp.eq.f32.partialorder %v674_v51, 8.507059e+37 }
 0x2ce   :  { %v696_v63 = vor.u32 1.1754944e-38, %v695_v49  ;;  %vm694_vm11 = vcmp.eq.f32.partialorder %v693_v55, 8.507059e+37  ;;  %v2446_v49 = vld [vmem:[%s3903_s0 + $0x88] sm:$0xff] }
 0x2cf   :  { %v2615_v43 = vpop.eup %2614 }
 0x2d0   :  { %v703_v31 = vadd.f32 1.0, %v2615_v43 }
 0x2d1   :  { %v2617_v44 = vpop.eup %2616 }
 0x2d2   :  { %v2619_v36 = vpop.eup %2618  ;;  %v666_v27 = vmul.f32 %v2617_v44, %v664_v14  ;;  %2620 = vrcp.f32 %v703_v31  ;;  %vm671_vm4 = vweird.f32 %v2617_v44  ;;  %vm709_vm13 = vweird.f32 %v703_v31 }
 0x2d3   :  { %v685_v24 = vmul.f32 %v2619_v36, %v683_v15  ;;  %2622 = vtanh.f32 %v659_v47  ;;  %vm690_vm5 = vweird.f32 %v2619_v36  ;;  %vm672_vm8 = vmor %vm670_vm6, %vm671_vm4  ;;  %v715_v47 = vand.u32 2147483648, %v703_v31 }
 0x2d4   :  { %v667_v29 = vsub.f32 1.0, %v666_v27  ;;  %vm691_vm9 = vmor %vm689_vm7, %vm690_vm5 }
 0x2d5   :  { %v686_v13 = vsub.f32 1.0, %v685_v24  ;;  %v716_v24 = vor.u32 1.1754944e-38, %v715_v47 }
 0x2d6   :  { %v668_v50 = vmul.f32 %v2617_v44, %v667_v29 }
 0x2d7   :  { %v687_v52 = vmul.f32 %v2619_v36, %v686_v13 }
 0x2d8   :  { %v2621_v56 = vpop.eup %2620  ;;  %v669_v59 = vadd.f32 %v2617_v44, %v668_v50 }
 0x2d9   :  { %v688_v61 = vadd.f32 %v2619_v36, %v687_v52  ;;  %v705_v62 = vmul.f32 %v2621_v56, %v703_v31  ;;  %v2623_v4 = vpop.eup %2622  ;;  %vm710_vm12 = vweird.f32 %v2621_v56 }
 0x2da   :  { %v673_v0 = vsel %vm672_vm8, %v2617_v44, %v669_v59  ;;  %v713_v44 = vand.u32 2147483647, %v703_v31  ;;  %vm711_vm14 = vmor %vm709_vm13, %vm710_vm12  ;;  %v2445_v31 = vld [vmem:[%s3903_s0 + $0x80] sm:$0xff] }
 0x2db   :  { %v678_v5 = vsel %vm675_vm10, %v677_v60, %v673_v0  ;;  %v692_v6 = vsel %vm691_vm9, %v2619_v36, %v688_v61  ;;  %v706_v11 = vsub.f32 1.0, %v705_v62  ;;  %v2448_v60 = vld [vmem:[%s3903_s0 + $0x98] sm:$0xff] }
 0x2dc   :  { %v697_v18 = vsel %vm694_vm11, %v696_v63, %v692_v6  ;;  %v721_v35 = vmul.f32 %v2623_v4, %v678_v5  ;;  %vm714_vm15 = vcmp.eq.f32.partialorder %v713_v44, 8.507059e+37 }
 0x2dd   :  { %v720_v23 = vmul.f32 %v697_v18, %v3300_v19  ;;  %v707_v43 = vmul.f32 %v2621_v56, %v706_v11 }
 0x2df   :  { %v3351_v14 = vadd.f32 %v721_v35, %v720_v23  ;;  %v708_v15 = vadd.f32 %v2621_v56, %v707_v43 }
 0x2e1   :  { %2624 = vtanh.f32 %v3351_v14  ;;  %v712_v27 = vsel %vm711_vm14, %v2621_v56, %v708_v15  ;;  %v2447_v15 = vld [vmem:[%s3903_s0 + $0x90] sm:$0xff] }
 0x2e2   :  { %v717_v29 = vsel %vm714_vm15, %v716_v24, %v712_v27 }
 0x2e7   :  { %v2625_v36 = vpop.eup %2624 }
 0x2e8   :  { %v724_v13 = vmul.f32 %v2625_v36, %v717_v29 }
 0x2ea   :  { %v725_v30 = vpack.c.bf16 %v724_v13, %v724_v13 }
 0x2ec   :  { %727 = vst [vmem:[#allocation2] sm:$0xf] %v725_v30 }
 0x2ed   :  { %728 = vst [vmem:[%s3904_s2 + $0xc] sm:$0xf] %v725_v30 }
 0x2f3   :  { %v734_v19 = vld [vmem:[#allocation2] sm:$0xf] }
 0x2f4   :  { %743 = vmatmul.bf16.vlgmr.msra.gmra.mxu0 %v734_v19  ;;  %756 = vmatmul.bf16.vlgmr.msra.gmra.mxu1 %v734_v19 }
 0x2f5   :  { %769 = vmatmul.bf16.vlgmr.msra.gmra.mxu2 %v734_v19  ;;  %782 = vmatmul.bf16.vlgmr.msra.gmra.mxu3 %v734_v19 }
 0x2f6   :  { %995 = vmatpush.bf16.msra.mxu0 %v2843_v3  ;;  %1008 = vmatpush.bf16.msra.mxu1 %v2854_v7 }
 0x2f7   :  { %1021 = vmatpush.bf16.msra.mxu2 %v2894_v21  ;;  %1034 = vmatpush.bf16.msra.mxu3 %v2856_v8 }
 0x2fa   :  { %996 = vmatpush.bf16.msra.mxu0 %v2868_v12  ;;  %1009 = vmatpush.bf16.msra.mxu1 %v2881_v16 }
 0x2fb   :  { %1022 = vmatpush.bf16.msra.mxu2 %v2933_v34  ;;  %1035 = vmatpush.bf16.msra.mxu3 %v2883_v17 }
 0x2fe   :  { %997 = vmatpush.bf16.msra.mxu0 %v2916_v28  ;;  %1010 = vmatpush.bf16.msra.mxu1 %v2929_v32 }
 0x2ff   :  { %1023 = vmatpush.bf16.msra.mxu2 %v2957_v42  ;;  %1036 = vmatpush.bf16.msra.mxu3 %v2931_v33 }
 0x302   :  { %998 = vmatpush.bf16.msra.mxu0 %v2955_v41  ;;  %1011 = vmatpush.bf16.msra.mxu1 %v2967_v45 }
 0x303   :  { %1024 = vmatpush.bf16.msra.mxu2 %v2993_v54  ;;  %1037 = vmatpush.bf16.msra.mxu3 %v2969_v46 }
 0x306   :  { %999 = vmatpush.bf16.msra.mxu0 %v2991_v53  ;;  %1012 = vmatpush.bf16.msra.mxu1 %v3003_v57 }
 0x307   :  { %1025 = vmatpush.bf16.msra.mxu2 %v3029_v2  ;;  %1038 = vmatpush.bf16.msra.mxu3 %v3005_v58 }
 0x30a   :  { %1000 = vmatpush.bf16.msra.mxu0 %v3027_v1  ;;  %1013 = vmatpush.bf16.msra.mxu1 %v3042_v9 }
 0x30b   :  { %1026 = vmatpush.bf16.msra.mxu2 %v3065_v22  ;;  %1039 = vmatpush.bf16.msra.mxu3 %v3044_v10 }
 0x30e   :  { %1001 = vmatpush.bf16.msra.mxu0 %v3063_v20  ;;  %1014 = vmatpush.bf16.msra.mxu1 %v3075_v25 }
 0x30f   :  { %1027 = vmatpush.bf16.msra.mxu2 %v3101_v38  ;;  %1040 = vmatpush.bf16.msra.mxu3 %v3077_v26 }
 0x312   :  { %1002 = vmatpush.bf16.msra.mxu0 %v3099_v37  ;;  %1015 = vmatpush.bf16.msra.mxu1 %v3105_v39 }
 0x313   :  { %1028 = vmatpush.bf16.msra.mxu2 %v3119_v48  ;;  %1041 = vmatpush.bf16.msra.mxu3 %v3107_v40 }
 0x371   :  { %v744_v50 = vpop.f32.mrf.mxu0  ;;  %v757_v51 = vpop.f32.mrf.mxu1 }
 0x372   :  { %v787_v52 = vadd.f32 %v2445_v31, %v744_v50  ;;  %v788_v55 = vadd.f32 %v2446_v49, %v757_v51 }
 0x374   :  { %v2449_v56 = vmul.f32 -1.442695, %v787_v52  ;;  %v2450_v59 = vmul.f32 -1.442695, %v788_v55 }
 0x376   :  { %2626 = vpow2.f32 %v2449_v56 }
 0x377   :  { %2628 = vpow2.f32 %v2450_v59 }
 0x378   :  { %v770_v61 = vpop.f32.mrf.mxu2  ;;  %v783_v62 = vpop.f32.mrf.mxu3 }
 0x379   :  { %v790_v63 = vadd.f32 %v2448_v60, %v783_v62  ;;  %v746_v0 = vpop.f32.mrf.mxu0  ;;  %v759_v4 = vpop.f32.mrf.mxu1  ;;  %v789_v24 = vadd.f32 %v2447_v15, %v770_v61 }
 0x37b   :  { %v2451_v5 = vmul.f32 -1.442695, %v790_v63 }
 0x37c   :  { %v2627_v6 = vpop.eup %2626 }
 0x37d   :  { %v2629_v11 = vpop.eup %2628  ;;  %v794_v18 = vadd.f32 1.0, %v2627_v6  ;;  %2630 = vpow2.f32 %v2451_v5 }
 0x37e   :  { %v813_v35 = vadd.f32 1.0, %v2629_v11 }
 0x37f   :  { %2632 = vrcp.f32 %v794_v18  ;;  %v806_v31 = vand.u32 2147483648, %v794_v18  ;;  %v804_v51 = vand.u32 2147483647, %v794_v18  ;;  %vm800_vm2 = vweird.f32 %v794_v18 }
 0x380   :  { %2634 = vrcp.f32 %v813_v35  ;;  %v772_v23 = vpop.f32.mrf.mxu2  ;;  %v785_v43 = vpop.f32.mrf.mxu3  ;;  %v825_v49 = vand.u32 2147483648, %v813_v35  ;;  %v823_v55 = vand.u32 2147483647, %v813_v35  ;;  %vm819_vm3 = vweird.f32 %v813_v35 }
 0x381   :  { %v807_v60 = vor.u32 1.1754944e-38, %v806_v31  ;;  %vm805_vm6 = vcmp.eq.f32.partialorder %v804_v51, 8.507059e+37 }
 0x382   :  { %v826_v63 = vor.u32 1.1754944e-38, %v825_v49  ;;  %vm824_vm7 = vcmp.eq.f32.partialorder %v823_v55, 8.507059e+37  ;;  %v2453_v49 = vld [vmem:[%s3903_s0 + $0xa8] sm:$0xff] }
 0x383   :  { %v2631_v47 = vpop.eup %2630 }
 0x384   :  { %v833_v44 = vadd.f32 1.0, %v2631_v47 }
 0x385   :  { %v2633_v27 = vpop.eup %2632 }
 0x386   :  { %v2635_v36 = vpop.eup %2634  ;;  %v796_v29 = vmul.f32 %v2633_v27, %v794_v18  ;;  %2636 = vrcp.f32 %v833_v44  ;;  %vm801_vm0 = vweird.f32 %v2633_v27  ;;  %vm839_vm9 = vweird.f32 %v833_v44 }
 0x387   :  { %v815_v13 = vmul.f32 %v2635_v36, %v813_v35  ;;  %2638 = vtanh.f32 %v789_v24  ;;  %vm820_vm1 = vweird.f32 %v2635_v36  ;;  %vm802_vm4 = vmor %vm800_vm2, %vm801_vm0  ;;  %v845_v24 = vand.u32 2147483648, %v833_v44 }
 0x388   :  { %v797_v30 = vsub.f32 1.0, %v796_v29  ;;  %vm821_vm5 = vmor %vm819_vm3, %vm820_vm1 }
 0x389   :  { %v816_v19 = vsub.f32 1.0, %v815_v13  ;;  %v846_v13 = vor.u32 1.1754944e-38, %v845_v24 }
 0x38a   :  { %v798_v50 = vmul.f32 %v2633_v27, %v797_v30 }
 0x38b   :  { %v817_v52 = vmul.f32 %v2635_v36, %v816_v19 }
 0x38c   :  { %v2637_v56 = vpop.eup %2636  ;;  %v799_v59 = vadd.f32 %v2633_v27, %v798_v50 }
 0x38d   :  { %v818_v61 = vadd.f32 %v2635_v36, %v817_v52  ;;  %v835_v62 = vmul.f32 %v2637_v56, %v833_v44  ;;  %v2639_v4 = vpop.eup %2638  ;;  %vm840_vm8 = vweird.f32 %v2637_v56 }
 0x38e   :  { %v803_v0 = vsel %vm802_vm4, %v2633_v27, %v799_v59  ;;  %v843_v27 = vand.u32 2147483647, %v833_v44  ;;  %vm841_vm10 = vmor %vm839_vm9, %vm840_vm8  ;;  %v2452_v44 = vld [vmem:[%s3903_s0 + $0xa0] sm:$0xff] }
 0x38f   :  { %v808_v5 = vsel %vm805_vm6, %v807_v60, %v803_v0  ;;  %v822_v6 = vsel %vm821_vm5, %v2635_v36, %v818_v61  ;;  %v836_v11 = vsub.f32 1.0, %v835_v62  ;;  %v2455_v60 = vld [vmem:[%s3903_s0 + $0xb8] sm:$0xff] }
 0x390   :  { %v827_v23 = vsel %vm824_vm7, %v826_v63, %v822_v6  ;;  %v851_v43 = vmul.f32 %v2639_v4, %v808_v5  ;;  %vm844_vm11 = vcmp.eq.f32.partialorder %v843_v27, 8.507059e+37 }
 0x391   :  { %v850_v15 = vmul.f32 %v827_v23, %v3351_v14  ;;  %v837_v47 = vmul.f32 %v2637_v56, %v836_v11 }
 0x393   :  { %v3402_v18 = vadd.f32 %v851_v43, %v850_v15  ;;  %v838_v35 = vadd.f32 %v2637_v56, %v837_v47 }
 0x395   :  { %2640 = vtanh.f32 %v3402_v18  ;;  %v842_v29 = vsel %vm841_vm10, %v2637_v56, %v838_v35  ;;  %v2454_v35 = vld [vmem:[%s3903_s0 + $0xb0] sm:$0xff] }
 0x396   :  { %v847_v30 = vsel %vm844_vm11, %v846_v13, %v842_v29 }
 0x39b   :  { %v2641_v36 = vpop.eup %2640 }
 0x39c   :  { %v854_v19 = vmul.f32 %v2641_v36, %v847_v30 }
 0x39e   :  { %v855_v31 = vpack.c.bf16 %v854_v19, %v854_v19 }
 0x3a0   :  { %857 = vst [vmem:[#allocation2] sm:$0xf] %v855_v31 }
 0x3a1   :  { %858 = vst [vmem:[%s3904_s2 + $0x10] sm:$0xf] %v855_v31 }
 0x3a7   :  { %v864_v14 = vld [vmem:[#allocation2] sm:$0xf] }
 0x3a8   :  { %873 = vmatmul.bf16.vlgmr.msrb.gmra.mxu0 %v864_v14  ;;  %886 = vmatmul.bf16.vlgmr.msrb.gmra.mxu1 %v864_v14 }
 0x3a9   :  { %899 = vmatmul.bf16.vlgmr.msrb.gmra.mxu2 %v864_v14  ;;  %912 = vmatmul.bf16.vlgmr.msrb.gmra.mxu3 %v864_v14 }
 0x3aa   :  { %1125 = vmatpush.bf16.msrb.mxu0 %v2843_v3  ;;  %1138 = vmatpush.bf16.msrb.mxu1 %v2854_v7 }
 0x3ab   :  { %1151 = vmatpush.bf16.msrb.mxu2 %v2894_v21  ;;  %1164 = vmatpush.bf16.msrb.mxu3 %v2856_v8 }
 0x3ae   :  { %1126 = vmatpush.bf16.msrb.mxu0 %v2868_v12  ;;  %1139 = vmatpush.bf16.msrb.mxu1 %v2881_v16 }
 0x3af   :  { %1152 = vmatpush.bf16.msrb.mxu2 %v2933_v34  ;;  %1165 = vmatpush.bf16.msrb.mxu3 %v2883_v17 }
 0x3b2   :  { %1127 = vmatpush.bf16.msrb.mxu0 %v2916_v28  ;;  %1140 = vmatpush.bf16.msrb.mxu1 %v2929_v32 }
 0x3b3   :  { %1153 = vmatpush.bf16.msrb.mxu2 %v2957_v42  ;;  %1166 = vmatpush.bf16.msrb.mxu3 %v2931_v33 }
 0x3b6   :  { %1128 = vmatpush.bf16.msrb.mxu0 %v2955_v41  ;;  %1141 = vmatpush.bf16.msrb.mxu1 %v2967_v45 }
 0x3b7   :  { %1154 = vmatpush.bf16.msrb.mxu2 %v2993_v54  ;;  %1167 = vmatpush.bf16.msrb.mxu3 %v2969_v46 }
 0x3ba   :  { %1129 = vmatpush.bf16.msrb.mxu0 %v2991_v53  ;;  %1142 = vmatpush.bf16.msrb.mxu1 %v3003_v57 }
 0x3bb   :  { %1155 = vmatpush.bf16.msrb.mxu2 %v3029_v2  ;;  %1168 = vmatpush.bf16.msrb.mxu3 %v3005_v58 }
 0x3be   :  { %1130 = vmatpush.bf16.msrb.mxu0 %v3027_v1  ;;  %1143 = vmatpush.bf16.msrb.mxu1 %v3042_v9 }
 0x3bf   :  { %1156 = vmatpush.bf16.msrb.mxu2 %v3065_v22  ;;  %1169 = vmatpush.bf16.msrb.mxu3 %v3044_v10 }
 0x3c2   :  { %1131 = vmatpush.bf16.msrb.mxu0 %v3063_v20  ;;  %1144 = vmatpush.bf16.msrb.mxu1 %v3075_v25 }
 0x3c3   :  { %1157 = vmatpush.bf16.msrb.mxu2 %v3101_v38  ;;  %1170 = vmatpush.bf16.msrb.mxu3 %v3077_v26 }
 0x3c6   :  { %1132 = vmatpush.bf16.msrb.mxu0 %v3099_v37  ;;  %1145 = vmatpush.bf16.msrb.mxu1 %v3105_v39 }
 0x3c7   :  { %1158 = vmatpush.bf16.msrb.mxu2 %v3119_v48  ;;  %1171 = vmatpush.bf16.msrb.mxu3 %v3107_v40 }
 0x425   :  { %v874_v50 = vpop.f32.mrf.mxu0  ;;  %v887_v51 = vpop.f32.mrf.mxu1 }
 0x426   :  { %v917_v52 = vadd.f32 %v2452_v44, %v874_v50  ;;  %v918_v55 = vadd.f32 %v2453_v49, %v887_v51 }
 0x428   :  { %v2456_v56 = vmul.f32 -1.442695, %v917_v52  ;;  %v2457_v59 = vmul.f32 -1.442695, %v918_v55 }
 0x42a   :  { %2642 = vpow2.f32 %v2456_v56 }
 0x42b   :  { %2644 = vpow2.f32 %v2457_v59 }
 0x42c   :  { %v900_v61 = vpop.f32.mrf.mxu2  ;;  %v913_v62 = vpop.f32.mrf.mxu3 }
 0x42d   :  { %v920_v63 = vadd.f32 %v2455_v60, %v913_v62  ;;  %v876_v0 = vpop.f32.mrf.mxu0  ;;  %v889_v4 = vpop.f32.mrf.mxu1  ;;  %v919_v13 = vadd.f32 %v2454_v35, %v900_v61 }
 0x42f   :  { %v2458_v5 = vmul.f32 -1.442695, %v920_v63 }
 0x430   :  { %v2643_v6 = vpop.eup %2642 }
 0x431   :  { %v2645_v11 = vpop.eup %2644  ;;  %v924_v23 = vadd.f32 1.0, %v2643_v6  ;;  %2646 = vpow2.f32 %v2458_v5 }
 0x432   :  { %v943_v43 = vadd.f32 1.0, %v2645_v11 }
 0x433   :  { %2648 = vrcp.f32 %v924_v23  ;;  %v936_v44 = vand.u32 2147483648, %v924_v23  ;;  %v934_v51 = vand.u32 2147483647, %v924_v23  ;;  %vm930_vm14 = vweird.f32 %v924_v23 }
 0x434   :  { %2650 = vrcp.f32 %v943_v43  ;;  %v902_v15 = vpop.f32.mrf.mxu2  ;;  %v915_v47 = vpop.f32.mrf.mxu3  ;;  %v955_v49 = vand.u32 2147483648, %v943_v43  ;;  %v953_v55 = vand.u32 2147483647, %v943_v43  ;;  %vm949_vm15 = vweird.f32 %v943_v43 }
 0x435   :  { %v937_v60 = vor.u32 1.1754944e-38, %v936_v44  ;;  %vm935_vm2 = vcmp.eq.f32.partialorder %v934_v51, 8.507059e+37 }
 0x436   :  { %v956_v63 = vor.u32 1.1754944e-38, %v955_v49  ;;  %vm954_vm3 = vcmp.eq.f32.partialorder %v953_v55, 8.507059e+37  ;;  %v2460_v49 = vld [vmem:[%s3903_s0 + $0xc8] sm:$0xff] }
 0x437   :  { %v2647_v24 = vpop.eup %2646 }
 0x438   :  { %v963_v27 = vadd.f32 1.0, %v2647_v24 }
 0x439   :  { %v2649_v29 = vpop.eup %2648 }
 0x43a   :  { %v2651_v36 = vpop.eup %2650  ;;  %v926_v30 = vmul.f32 %v2649_v29, %v924_v23  ;;  %2652 = vrcp.f32 %v963_v27  ;;  %vm931_vm12 = vweird.f32 %v2649_v29  ;;  %vm969_vm5 = vweird.f32 %v963_v27 }
 0x43b   :  { %v945_v19 = vmul.f32 %v2651_v36, %v943_v43  ;;  %2654 = vtanh.f32 %v919_v13  ;;  %vm950_vm13 = vweird.f32 %v2651_v36  ;;  %vm932_vm0 = vmor %vm930_vm14, %vm931_vm12  ;;  %v975_v13 = vand.u32 2147483648, %v963_v27 }
 0x43c   :  { %v927_v31 = vsub.f32 1.0, %v926_v30  ;;  %vm951_vm1 = vmor %vm949_vm15, %vm950_vm13 }
 0x43d   :  { %v946_v14 = vsub.f32 1.0, %v945_v19  ;;  %v976_v19 = vor.u32 1.1754944e-38, %v975_v13 }
 0x43e   :  { %v928_v50 = vmul.f32 %v2649_v29, %v927_v31 }
 0x43f   :  { %v947_v52 = vmul.f32 %v2651_v36, %v946_v14 }
 0x440   :  { %v2653_v56 = vpop.eup %2652  ;;  %v929_v59 = vadd.f32 %v2649_v29, %v928_v50 }
 0x441   :  { %v948_v61 = vadd.f32 %v2651_v36, %v947_v52  ;;  %v965_v62 = vmul.f32 %v2653_v56, %v963_v27  ;;  %v2655_v4 = vpop.eup %2654  ;;  %vm970_vm4 = vweird.f32 %v2653_v56 }
 0x442   :  { %v933_v0 = vsel %vm932_vm0, %v2649_v29, %v929_v59  ;;  %v973_v29 = vand.u32 2147483647, %v963_v27  ;;  %vm971_vm6 = vmor %vm969_vm5, %vm970_vm4  ;;  %v2459_v27 = vld [vmem:[%s3903_s0 + $0xc0] sm:$0xff] }
 0x443   :  { %v938_v5 = vsel %vm935_vm2, %v937_v60, %v933_v0  ;;  %v952_v6 = vsel %vm951_vm1, %v2651_v36, %v948_v61  ;;  %v966_v11 = vsub.f32 1.0, %v965_v62  ;;  %v2462_v60 = vld [vmem:[%s3903_s0 + $0xd8] sm:$0xff] }
 0x444   :  { %v957_v15 = vsel %vm954_vm3, %v956_v63, %v952_v6  ;;  %v981_v47 = vmul.f32 %v2655_v4, %v938_v5  ;;  %vm974_vm7 = vcmp.eq.f32.partialorder %v973_v29, 8.507059e+37 }
 0x445   :  { %v980_v35 = vmul.f32 %v957_v15, %v3402_v18  ;;  %v967_v24 = vmul.f32 %v2653_v56, %v966_v11 }
 0x447   :  { %v3453_v23 = vadd.f32 %v981_v47, %v980_v35  ;;  %v968_v43 = vadd.f32 %v2653_v56, %v967_v24 }
 0x449   :  { %2656 = vtanh.f32 %v3453_v23  ;;  %v972_v30 = vsel %vm971_vm6, %v2653_v56, %v968_v43  ;;  %v2461_v43 = vld [vmem:[%s3903_s0 + $0xd0] sm:$0xff] }
 0x44a   :  { %v977_v31 = vsel %vm974_vm7, %v976_v19, %v972_v30 }
 0x44f   :  { %v2657_v36 = vpop.eup %2656 }
 0x450   :  { %v984_v14 = vmul.f32 %v2657_v36, %v977_v31 }
 0x452   :  { %v985_v44 = vpack.c.bf16 %v984_v14, %v984_v14 }
 0x454   :  { %987 = vst [vmem:[#allocation2] sm:$0xf] %v985_v44 }
 0x455   :  { %988 = vst [vmem:[%s3904_s2 + $0x14] sm:$0xf] %v985_v44 }
 0x45b   :  { %v994_v18 = vld [vmem:[#allocation2] sm:$0xf] }
 0x45c   :  { %1003 = vmatmul.bf16.vlgmr.msra.gmra.mxu0 %v994_v18  ;;  %1016 = vmatmul.bf16.vlgmr.msra.gmra.mxu1 %v994_v18 }
 0x45d   :  { %1029 = vmatmul.bf16.vlgmr.msra.gmra.mxu2 %v994_v18  ;;  %1042 = vmatmul.bf16.vlgmr.msra.gmra.mxu3 %v994_v18 }
 0x45e   :  { %1255 = vmatpush.bf16.msra.mxu0 %v2843_v3  ;;  %1268 = vmatpush.bf16.msra.mxu1 %v2854_v7 }
 0x45f   :  { %1281 = vmatpush.bf16.msra.mxu2 %v2894_v21  ;;  %1294 = vmatpush.bf16.msra.mxu3 %v2856_v8 }
 0x462   :  { %1256 = vmatpush.bf16.msra.mxu0 %v2868_v12  ;;  %1269 = vmatpush.bf16.msra.mxu1 %v2881_v16 }
 0x463   :  { %1282 = vmatpush.bf16.msra.mxu2 %v2933_v34  ;;  %1295 = vmatpush.bf16.msra.mxu3 %v2883_v17 }
 0x466   :  { %1257 = vmatpush.bf16.msra.mxu0 %v2916_v28  ;;  %1270 = vmatpush.bf16.msra.mxu1 %v2929_v32 }
 0x467   :  { %1283 = vmatpush.bf16.msra.mxu2 %v2957_v42  ;;  %1296 = vmatpush.bf16.msra.mxu3 %v2931_v33 }
 0x46a   :  { %1258 = vmatpush.bf16.msra.mxu0 %v2955_v41  ;;  %1271 = vmatpush.bf16.msra.mxu1 %v2967_v45 }
 0x46b   :  { %1284 = vmatpush.bf16.msra.mxu2 %v2993_v54  ;;  %1297 = vmatpush.bf16.msra.mxu3 %v2969_v46 }
 0x46e   :  { %1259 = vmatpush.bf16.msra.mxu0 %v2991_v53  ;;  %1272 = vmatpush.bf16.msra.mxu1 %v3003_v57 }
 0x46f   :  { %1285 = vmatpush.bf16.msra.mxu2 %v3029_v2  ;;  %1298 = vmatpush.bf16.msra.mxu3 %v3005_v58 }
 0x472   :  { %1260 = vmatpush.bf16.msra.mxu0 %v3027_v1  ;;  %1273 = vmatpush.bf16.msra.mxu1 %v3042_v9 }
 0x473   :  { %1286 = vmatpush.bf16.msra.mxu2 %v3065_v22  ;;  %1299 = vmatpush.bf16.msra.mxu3 %v3044_v10 }
 0x476   :  { %1261 = vmatpush.bf16.msra.mxu0 %v3063_v20  ;;  %1274 = vmatpush.bf16.msra.mxu1 %v3075_v25 }
 0x477   :  { %1287 = vmatpush.bf16.msra.mxu2 %v3101_v38  ;;  %1300 = vmatpush.bf16.msra.mxu3 %v3077_v26 }
 0x47a   :  { %1262 = vmatpush.bf16.msra.mxu0 %v3099_v37  ;;  %1275 = vmatpush.bf16.msra.mxu1 %v3105_v39 }
 0x47b   :  { %1288 = vmatpush.bf16.msra.mxu2 %v3119_v48  ;;  %1301 = vmatpush.bf16.msra.mxu3 %v3107_v40 }
 0x4d9   :  { %v1004_v50 = vpop.f32.mrf.mxu0  ;;  %v1017_v51 = vpop.f32.mrf.mxu1 }
 0x4da   :  { %v1047_v52 = vadd.f32 %v2459_v27, %v1004_v50  ;;  %v1048_v55 = vadd.f32 %v2460_v49, %v1017_v51 }
 0x4dc   :  { %v2463_v56 = vmul.f32 -1.442695, %v1047_v52  ;;  %v2464_v59 = vmul.f32 -1.442695, %v1048_v55 }
 0x4de   :  { %2658 = vpow2.f32 %v2463_v56 }
 0x4df   :  { %2660 = vpow2.f32 %v2464_v59 }
 0x4e0   :  { %v1030_v61 = vpop.f32.mrf.mxu2  ;;  %v1043_v62 = vpop.f32.mrf.mxu3 }
 0x4e1   :  { %v1050_v63 = vadd.f32 %v2462_v60, %v1043_v62  ;;  %v1006_v0 = vpop.f32.mrf.mxu0  ;;  %v1019_v4 = vpop.f32.mrf.mxu1  ;;  %v1049_v19 = vadd.f32 %v2461_v43, %v1030_v61 }
 0x4e3   :  { %v2465_v5 = vmul.f32 -1.442695, %v1050_v63 }
 0x4e4   :  { %v2659_v6 = vpop.eup %2658 }
 0x4e5   :  { %v2661_v11 = vpop.eup %2660  ;;  %v1054_v15 = vadd.f32 1.0, %v2659_v6  ;;  %2662 = vpow2.f32 %v2465_v5 }
 0x4e6   :  { %v1073_v47 = vadd.f32 1.0, %v2661_v11 }
 0x4e7   :  { %2664 = vrcp.f32 %v1054_v15  ;;  %v1066_v27 = vand.u32 2147483648, %v1054_v15  ;;  %v1064_v51 = vand.u32 2147483647, %v1054_v15  ;;  %vm1060_vm10 = vweird.f32 %v1054_v15 }
 0x4e8   :  { %2666 = vrcp.f32 %v1073_v47  ;;  %v1032_v35 = vpop.f32.mrf.mxu2  ;;  %v1045_v24 = vpop.f32.mrf.mxu3  ;;  %v1085_v49 = vand.u32 2147483648, %v1073_v47  ;;  %v1083_v55 = vand.u32 2147483647, %v1073_v47  ;;  %vm1079_vm11 = vweird.f32 %v1073_v47 }
 0x4e9   :  { %v1067_v60 = vor.u32 1.1754944e-38, %v1066_v27  ;;  %vm1065_vm14 = vcmp.eq.f32.partialorder %v1064_v51, 8.507059e+37 }
 0x4ea   :  { %v1086_v63 = vor.u32 1.1754944e-38, %v1085_v49  ;;  %vm1084_vm15 = vcmp.eq.f32.partialorder %v1083_v55, 8.507059e+37  ;;  %v2467_v49 = vld [vmem:[%s3903_s0 + $0xe8] sm:$0xff] }
 0x4eb   :  { %v2663_v13 = vpop.eup %2662 }
 0x4ec   :  { %v1093_v29 = vadd.f32 1.0, %v2663_v13 }
 0x4ed   :  { %v2665_v30 = vpop.eup %2664 }
 0x4ee   :  { %v2667_v36 = vpop.eup %2666  ;;  %v1056_v31 = vmul.f32 %v2665_v30, %v1054_v15  ;;  %2668 = vrcp.f32 %v1093_v29  ;;  %vm1061_vm8 = vweird.f32 %v2665_v30  ;;  %vm1099_vm1 = vweird.f32 %v1093_v29 }
 0x4ef   :  { %v1075_v14 = vmul.f32 %v2667_v36, %v1073_v47  ;;  %2670 = vtanh.f32 %v1049_v19  ;;  %vm1080_vm9 = vweird.f32 %v2667_v36  ;;  %vm1062_vm12 = vmor %vm1060_vm10, %vm1061_vm8  ;;  %v1105_v19 = vand.u32 2147483648, %v1093_v29 }
 0x4f0   :  { %v1057_v44 = vsub.f32 1.0, %v1056_v31  ;;  %vm1081_vm13 = vmor %vm1079_vm11, %vm1080_vm9 }
 0x4f1   :  { %v1076_v18 = vsub.f32 1.0, %v1075_v14  ;;  %v1106_v14 = vor.u32 1.1754944e-38, %v1105_v19 }
 0x4f2   :  { %v1058_v50 = vmul.f32 %v2665_v30, %v1057_v44 }
 0x4f3   :  { %v1077_v52 = vmul.f32 %v2667_v36, %v1076_v18 }
 0x4f4   :  { %v2669_v56 = vpop.eup %2668  ;;  %v1059_v59 = vadd.f32 %v2665_v30, %v1058_v50 }
 0x4f5   :  { %v1078_v61 = vadd.f32 %v2667_v36, %v1077_v52  ;;  %v1095_v62 = vmul.f32 %v2669_v56, %v1093_v29  ;;  %v2671_v4 = vpop.eup %2670  ;;  %vm1100_vm0 = vweird.f32 %v2669_v56 }
 0x4f6   :  { %v1063_v0 = vsel %vm1062_vm12, %v2665_v30, %v1059_v59  ;;  %v1103_v30 = vand.u32 2147483647, %v1093_v29  ;;  %vm1101_vm2 = vmor %vm1099_vm1, %vm1100_vm0  ;;  %v2466_v29 = vld [vmem:[%s3903_s0 + $0xe0] sm:$0xff] }
 0x4f7   :  { %v1068_v5 = vsel %vm1065_vm14, %v1067_v60, %v1063_v0  ;;  %v1082_v6 = vsel %vm1081_vm13, %v2667_v36, %v1078_v61  ;;  %v1096_v11 = vsub.f32 1.0, %v1095_v62  ;;  %v2469_v60 = vld [vmem:[%s3903_s0 + $0xf8] sm:$0xff] }
 0x4f8   :  { %v1087_v35 = vsel %vm1084_vm15, %v1086_v63, %v1082_v6  ;;  %v1111_v24 = vmul.f32 %v2671_v4, %v1068_v5  ;;  %vm1104_vm3 = vcmp.eq.f32.partialorder %v1103_v30, 8.507059e+37 }
 0x4f9   :  { %v1110_v43 = vmul.f32 %v1087_v35, %v3453_v23  ;;  %v1097_v13 = vmul.f32 %v2669_v56, %v1096_v11 }
 0x4fb   :  { %v3504_v15 = vadd.f32 %v1111_v24, %v1110_v43  ;;  %v1098_v47 = vadd.f32 %v2669_v56, %v1097_v13 }
 0x4fd   :  { %2672 = vtanh.f32 %v3504_v15  ;;  %v1102_v31 = vsel %vm1101_vm2, %v2669_v56, %v1098_v47  ;;  %v2468_v47 = vld [vmem:[%s3903_s0 + $0xf0] sm:$0xff] }
 0x4fe   :  { %v1107_v44 = vsel %vm1104_vm3, %v1106_v14, %v1102_v31 }
 0x503   :  { %v2673_v36 = vpop.eup %2672 }
 0x504   :  { %v1114_v18 = vmul.f32 %v2673_v36, %v1107_v44 }
 0x506   :  { %v1115_v27 = vpack.c.bf16 %v1114_v18, %v1114_v18 }
 0x508   :  { %1117 = vst [vmem:[#allocation2] sm:$0xf] %v1115_v27 }
 0x509   :  { %1118 = vst [vmem:[%s3904_s2 + $0x18] sm:$0xf] %v1115_v27 }
 0x50f   :  { %v1124_v23 = vld [vmem:[#allocation2] sm:$0xf] }
 0x510   :  { %1133 = vmatmul.bf16.vlgmr.msrb.gmra.mxu0 %v1124_v23  ;;  %1146 = vmatmul.bf16.vlgmr.msrb.gmra.mxu1 %v1124_v23 }
 0x511   :  { %1159 = vmatmul.bf16.vlgmr.msrb.gmra.mxu2 %v1124_v23  ;;  %1172 = vmatmul.bf16.vlgmr.msrb.gmra.mxu3 %v1124_v23 }
 0x512   :  { %1385 = vmatpush.bf16.msrb.mxu0 %v2843_v3  ;;  %1398 = vmatpush.bf16.msrb.mxu1 %v2854_v7 }
 0x513   :  { %1411 = vmatpush.bf16.msrb.mxu2 %v2894_v21  ;;  %1424 = vmatpush.bf16.msrb.mxu3 %v2856_v8 }
 0x516   :  { %1386 = vmatpush.bf16.msrb.mxu0 %v2868_v12  ;;  %1399 = vmatpush.bf16.msrb.mxu1 %v2881_v16 }
 0x517   :  { %1412 = vmatpush.bf16.msrb.mxu2 %v2933_v34  ;;  %1425 = vmatpush.bf16.msrb.mxu3 %v2883_v17 }
 0x51a   :  { %1387 = vmatpush.bf16.msrb.mxu0 %v2916_v28  ;;  %1400 = vmatpush.bf16.msrb.mxu1 %v2929_v32 }
 0x51b   :  { %1413 = vmatpush.bf16.msrb.mxu2 %v2957_v42  ;;  %1426 = vmatpush.bf16.msrb.mxu3 %v2931_v33 }
 0x51e   :  { %1388 = vmatpush.bf16.msrb.mxu0 %v2955_v41  ;;  %1401 = vmatpush.bf16.msrb.mxu1 %v2967_v45 }
 0x51f   :  { %1414 = vmatpush.bf16.msrb.mxu2 %v2993_v54  ;;  %1427 = vmatpush.bf16.msrb.mxu3 %v2969_v46 }
 0x522   :  { %1389 = vmatpush.bf16.msrb.mxu0 %v2991_v53  ;;  %1402 = vmatpush.bf16.msrb.mxu1 %v3003_v57 }
 0x523   :  { %1415 = vmatpush.bf16.msrb.mxu2 %v3029_v2  ;;  %1428 = vmatpush.bf16.msrb.mxu3 %v3005_v58 }
 0x526   :  { %1390 = vmatpush.bf16.msrb.mxu0 %v3027_v1  ;;  %1403 = vmatpush.bf16.msrb.mxu1 %v3042_v9 }
 0x527   :  { %1416 = vmatpush.bf16.msrb.mxu2 %v3065_v22  ;;  %1429 = vmatpush.bf16.msrb.mxu3 %v3044_v10 }
 0x52a   :  { %1391 = vmatpush.bf16.msrb.mxu0 %v3063_v20  ;;  %1404 = vmatpush.bf16.msrb.mxu1 %v3075_v25 }
 0x52b   :  { %1417 = vmatpush.bf16.msrb.mxu2 %v3101_v38  ;;  %1430 = vmatpush.bf16.msrb.mxu3 %v3077_v26 }
 0x52e   :  { %1392 = vmatpush.bf16.msrb.mxu0 %v3099_v37  ;;  %1405 = vmatpush.bf16.msrb.mxu1 %v3105_v39 }
 0x52f   :  { %1418 = vmatpush.bf16.msrb.mxu2 %v3119_v48  ;;  %1431 = vmatpush.bf16.msrb.mxu3 %v3107_v40 }
 0x58d   :  { %v1134_v50 = vpop.f32.mrf.mxu0  ;;  %v1147_v51 = vpop.f32.mrf.mxu1 }
 0x58e   :  { %v1177_v52 = vadd.f32 %v2466_v29, %v1134_v50  ;;  %v1178_v55 = vadd.f32 %v2467_v49, %v1147_v51 }
 0x590   :  { %v2470_v56 = vmul.f32 -1.442695, %v1177_v52  ;;  %v2471_v59 = vmul.f32 -1.442695, %v1178_v55 }
 0x592   :  { %2674 = vpow2.f32 %v2470_v56 }
 0x593   :  { %2676 = vpow2.f32 %v2471_v59 }
 0x594   :  { %v1160_v61 = vpop.f32.mrf.mxu2  ;;  %v1173_v62 = vpop.f32.mrf.mxu3 }
 0x595   :  { %v1180_v63 = vadd.f32 %v2469_v60, %v1173_v62  ;;  %v1136_v0 = vpop.f32.mrf.mxu0  ;;  %v1149_v4 = vpop.f32.mrf.mxu1  ;;  %v1179_v14 = vadd.f32 %v2468_v47, %v1160_v61 }
 0x597   :  { %v2472_v5 = vmul.f32 -1.442695, %v1180_v63 }
 0x598   :  { %v2675_v6 = vpop.eup %2674 }
 0x599   :  { %v2677_v11 = vpop.eup %2676  ;;  %v1184_v35 = vadd.f32 1.0, %v2675_v6  ;;  %2678 = vpow2.f32 %v2472_v5 }
 0x59a   :  { %v1203_v24 = vadd.f32 1.0, %v2677_v11 }
 0x59b   :  { %2680 = vrcp.f32 %v1184_v35  ;;  %v1196_v29 = vand.u32 2147483648, %v1184_v35  ;;  %v1194_v51 = vand.u32 2147483647, %v1184_v35  ;;  %vm1190_vm6 = vweird.f32 %v1184_v35 }
 0x59c   :  { %2682 = vrcp.f32 %v1203_v24  ;;  %v1162_v43 = vpop.f32.mrf.mxu2  ;;  %v1175_v13 = vpop.f32.mrf.mxu3  ;;  %v1215_v49 = vand.u32 2147483648, %v1203_v24  ;;  %v1213_v55 = vand.u32 2147483647, %v1203_v24  ;;  %vm1209_vm7 = vweird.f32 %v1203_v24 }
 0x59d   :  { %v1197_v60 = vor.u32 1.1754944e-38, %v1196_v29  ;;  %vm1195_vm10 = vcmp.eq.f32.partialorder %v1194_v51, 8.507059e+37 }
 0x59e   :  { %v1216_v63 = vor.u32 1.1754944e-38, %v1215_v49  ;;  %vm1214_vm11 = vcmp.eq.f32.partialorder %v1213_v55, 8.507059e+37  ;;  %v2474_v49 = vld [vmem:[%s3903_s0 + $0x108] sm:$0xff] }
 0x59f   :  { %v2679_v19 = vpop.eup %2678 }
 0x5a0   :  { %v1223_v30 = vadd.f32 1.0, %v2679_v19 }
 0x5a1   :  { %v2681_v31 = vpop.eup %2680 }
 0x5a2   :  { %v2683_v36 = vpop.eup %2682  ;;  %v1186_v44 = vmul.f32 %v2681_v31, %v1184_v35  ;;  %2684 = vrcp.f32 %v1223_v30  ;;  %vm1191_vm4 = vweird.f32 %v2681_v31  ;;  %vm1229_vm13 = vweird.f32 %v1223_v30 }
 0x5a3   :  { %v1205_v18 = vmul.f32 %v2683_v36, %v1203_v24  ;;  %2686 = vtanh.f32 %v1179_v14  ;;  %vm1210_vm5 = vweird.f32 %v2683_v36  ;;  %vm1192_vm8 = vmor %vm1190_vm6, %vm1191_vm4  ;;  %v1235_v14 = vand.u32 2147483648, %v1223_v30 }
 0x5a4   :  { %v1187_v27 = vsub.f32 1.0, %v1186_v44  ;;  %vm1211_vm9 = vmor %vm1209_vm7, %vm1210_vm5 }
 0x5a5   :  { %v1206_v23 = vsub.f32 1.0, %v1205_v18  ;;  %v1236_v18 = vor.u32 1.1754944e-38, %v1235_v14 }
 0x5a6   :  { %v1188_v50 = vmul.f32 %v2681_v31, %v1187_v27 }
 0x5a7   :  { %v1207_v52 = vmul.f32 %v2683_v36, %v1206_v23 }
 0x5a8   :  { %v2685_v56 = vpop.eup %2684  ;;  %v1189_v59 = vadd.f32 %v2681_v31, %v1188_v50 }
 0x5a9   :  { %v1208_v61 = vadd.f32 %v2683_v36, %v1207_v52  ;;  %v1225_v62 = vmul.f32 %v2685_v56, %v1223_v30  ;;  %v2687_v4 = vpop.eup %2686  ;;  %vm1230_vm12 = vweird.f32 %v2685_v56 }
 0x5aa   :  { %v1193_v0 = vsel %vm1192_vm8, %v2681_v31, %v1189_v59  ;;  %v1233_v31 = vand.u32 2147483647, %v1223_v30  ;;  %vm1231_vm14 = vmor %vm1229_vm13, %vm1230_vm12  ;;  %v2473_v30 = vld [vmem:[%s3903_s0 + $0x100] sm:$0xff] }
 0x5ab   :  { %v1198_v5 = vsel %vm1195_vm10, %v1197_v60, %v1193_v0  ;;  %v1212_v6 = vsel %vm1211_vm9, %v2683_v36, %v1208_v61  ;;  %v1226_v11 = vsub.f32 1.0, %v1225_v62  ;;  %v2476_v60 = vld [vmem:[%s3903_s0 + $0x118] sm:$0xff] }
 0x5ac   :  { %v1217_v43 = vsel %vm1214_vm11, %v1216_v63, %v1212_v6  ;;  %v1241_v13 = vmul.f32 %v2687_v4, %v1198_v5  ;;  %vm1234_vm15 = vcmp.eq.f32.partialorder %v1233_v31, 8.507059e+37 }
 0x5ad   :  { %v1240_v47 = vmul.f32 %v1217_v43, %v3504_v15  ;;  %v1227_v19 = vmul.f32 %v2685_v56, %v1226_v11 }
 0x5af   :  { %v3555_v35 = vadd.f32 %v1241_v13, %v1240_v47  ;;  %v1228_v24 = vadd.f32 %v2685_v56, %v1227_v19 }
 0x5b1   :  { %2688 = vtanh.f32 %v3555_v35  ;;  %v1232_v44 = vsel %vm1231_vm14, %v2685_v56, %v1228_v24  ;;  %v2475_v24 = vld [vmem:[%s3903_s0 + $0x110] sm:$0xff] }
 0x5b2   :  { %v1237_v27 = vsel %vm1234_vm15, %v1236_v18, %v1232_v44 }
 0x5b7   :  { %v2689_v36 = vpop.eup %2688 }
 0x5b8   :  { %v1244_v23 = vmul.f32 %v2689_v36, %v1237_v27 }
 0x5ba   :  { %v1245_v29 = vpack.c.bf16 %v1244_v23, %v1244_v23 }
 0x5bc   :  { %1248 = vst [vmem:[%s3904_s2 + $0x1c] sm:$0xf] %v1245_v29 }
 0x5bd   :  { %1247 = vst [vmem:[#allocation2] sm:$0xf] %v1245_v29 }
 0x5c4   :  { %v1254_v15 = vld [vmem:[#allocation2] sm:$0xf] }
 0x5c5   :  { %1263 = vmatmul.bf16.vlgmr.msra.gmra.mxu0 %v1254_v15  ;;  %1276 = vmatmul.bf16.vlgmr.msra.gmra.mxu1 %v1254_v15 }
 0x5c6   :  { %1289 = vmatmul.bf16.vlgmr.msra.gmra.mxu2 %v1254_v15  ;;  %1302 = vmatmul.bf16.vlgmr.msra.gmra.mxu3 %v1254_v15 }
 0x5c7   :  { %1515 = vmatpush.bf16.msra.mxu0 %v2843_v3  ;;  %1528 = vmatpush.bf16.msra.mxu1 %v2854_v7 }
 0x5c8   :  { %1541 = vmatpush.bf16.msra.mxu2 %v2894_v21  ;;  %1554 = vmatpush.bf16.msra.mxu3 %v2856_v8 }
 0x5cb   :  { %1516 = vmatpush.bf16.msra.mxu0 %v2868_v12  ;;  %1529 = vmatpush.bf16.msra.mxu1 %v2881_v16 }
 0x5cc   :  { %1542 = vmatpush.bf16.msra.mxu2 %v2933_v34  ;;  %1555 = vmatpush.bf16.msra.mxu3 %v2883_v17 }
 0x5cf   :  { %1517 = vmatpush.bf16.msra.mxu0 %v2916_v28  ;;  %1530 = vmatpush.bf16.msra.mxu1 %v2929_v32 }
 0x5d0   :  { %1543 = vmatpush.bf16.msra.mxu2 %v2957_v42  ;;  %1556 = vmatpush.bf16.msra.mxu3 %v2931_v33 }
 0x5d3   :  { %1518 = vmatpush.bf16.msra.mxu0 %v2955_v41  ;;  %1531 = vmatpush.bf16.msra.mxu1 %v2967_v45 }
 0x5d4   :  { %1544 = vmatpush.bf16.msra.mxu2 %v2993_v54  ;;  %1557 = vmatpush.bf16.msra.mxu3 %v2969_v46 }
 0x5d7   :  { %1519 = vmatpush.bf16.msra.mxu0 %v2991_v53  ;;  %1532 = vmatpush.bf16.msra.mxu1 %v3003_v57 }
 0x5d8   :  { %1545 = vmatpush.bf16.msra.mxu2 %v3029_v2  ;;  %1558 = vmatpush.bf16.msra.mxu3 %v3005_v58 }
 0x5db   :  { %1520 = vmatpush.bf16.msra.mxu0 %v3027_v1  ;;  %1533 = vmatpush.bf16.msra.mxu1 %v3042_v9 }
 0x5dc   :  { %1546 = vmatpush.bf16.msra.mxu2 %v3065_v22  ;;  %1559 = vmatpush.bf16.msra.mxu3 %v3044_v10 }
 0x5df   :  { %1521 = vmatpush.bf16.msra.mxu0 %v3063_v20  ;;  %1534 = vmatpush.bf16.msra.mxu1 %v3075_v25 }
 0x5e0   :  { %1547 = vmatpush.bf16.msra.mxu2 %v3101_v38  ;;  %1560 = vmatpush.bf16.msra.mxu3 %v3077_v26 }
 0x5e3   :  { %1522 = vmatpush.bf16.msra.mxu0 %v3099_v37  ;;  %1535 = vmatpush.bf16.msra.mxu1 %v3105_v39 }
 0x5e4   :  { %1548 = vmatpush.bf16.msra.mxu2 %v3119_v48  ;;  %1561 = vmatpush.bf16.msra.mxu3 %v3107_v40 }
 0x642   :  { %v1264_v50 = vpop.f32.mrf.mxu0  ;;  %v1277_v51 = vpop.f32.mrf.mxu1 }
 0x643   :  { %v1307_v52 = vadd.f32 %v2473_v30, %v1264_v50  ;;  %v1308_v55 = vadd.f32 %v2474_v49, %v1277_v51 }
 0x645   :  { %v2477_v56 = vmul.f32 -1.442695, %v1307_v52  ;;  %v2478_v59 = vmul.f32 -1.442695, %v1308_v55 }
 0x647   :  { %2690 = vpow2.f32 %v2477_v56 }
 0x648   :  { %2692 = vpow2.f32 %v2478_v59 }
 0x649   :  { %v1290_v61 = vpop.f32.mrf.mxu2  ;;  %v1303_v62 = vpop.f32.mrf.mxu3 }
 0x64a   :  { %v1310_v63 = vadd.f32 %v2476_v60, %v1303_v62  ;;  %v1266_v0 = vpop.f32.mrf.mxu0  ;;  %v1279_v4 = vpop.f32.mrf.mxu1  ;;  %v1309_v18 = vadd.f32 %v2475_v24, %v1290_v61 }
 0x64c   :  { %v2479_v5 = vmul.f32 -1.442695, %v1310_v63 }
 0x64d   :  { %v2691_v6 = vpop.eup %2690 }
 0x64e   :  { %v2693_v11 = vpop.eup %2692  ;;  %v1314_v43 = vadd.f32 1.0, %v2691_v6  ;;  %2694 = vpow2.f32 %v2479_v5 }
 0x64f   :  { %v1333_v13 = vadd.f32 1.0, %v2693_v11 }
 0x650   :  { %2696 = vrcp.f32 %v1314_v43  ;;  %v1326_v30 = vand.u32 2147483648, %v1314_v43  ;;  %v1324_v51 = vand.u32 2147483647, %v1314_v43  ;;  %vm1320_vm2 = vweird.f32 %v1314_v43 }
 0x651   :  { %2698 = vrcp.f32 %v1333_v13  ;;  %v1292_v47 = vpop.f32.mrf.mxu2  ;;  %v1305_v19 = vpop.f32.mrf.mxu3  ;;  %v1345_v49 = vand.u32 2147483648, %v1333_v13  ;;  %v1343_v55 = vand.u32 2147483647, %v1333_v13  ;;  %vm1339_vm3 = vweird.f32 %v1333_v13 }
 0x652   :  { %v1327_v60 = vor.u32 1.1754944e-38, %v1326_v30  ;;  %vm1325_vm6 = vcmp.eq.f32.partialorder %v1324_v51, 8.507059e+37 }
 0x653   :  { %v1346_v63 = vor.u32 1.1754944e-38, %v1345_v49  ;;  %vm1344_vm7 = vcmp.eq.f32.partialorder %v1343_v55, 8.507059e+37  ;;  %v2481_v49 = vld [vmem:[%s3903_s0 + $0x128] sm:$0xff] }
 0x654   :  { %v2695_v14 = vpop.eup %2694 }
 0x655   :  { %v1353_v31 = vadd.f32 1.0, %v2695_v14 }
 0x656   :  { %v2697_v44 = vpop.eup %2696 }
 0x657   :  { %v2699_v36 = vpop.eup %2698  ;;  %v1316_v27 = vmul.f32 %v2697_v44, %v1314_v43  ;;  %2700 = vrcp.f32 %v1353_v31  ;;  %vm1321_vm0 = vweird.f32 %v2697_v44  ;;  %vm1359_vm9 = vweird.f32 %v1353_v31 }
 0x658   :  { %v1335_v23 = vmul.f32 %v2699_v36, %v1333_v13  ;;  %2702 = vtanh.f32 %v1309_v18  ;;  %vm1340_vm1 = vweird.f32 %v2699_v36  ;;  %vm1322_vm4 = vmor %vm1320_vm2, %vm1321_vm0  ;;  %v1365_v18 = vand.u32 2147483648, %v1353_v31 }
 0x659   :  { %v1317_v29 = vsub.f32 1.0, %v1316_v27  ;;  %vm1341_vm5 = vmor %vm1339_vm3, %vm1340_vm1 }
 0x65a   :  { %v1336_v15 = vsub.f32 1.0, %v1335_v23  ;;  %v1366_v23 = vor.u32 1.1754944e-38, %v1365_v18 }
 0x65b   :  { %v1318_v50 = vmul.f32 %v2697_v44, %v1317_v29 }
 0x65c   :  { %v1337_v52 = vmul.f32 %v2699_v36, %v1336_v15 }
 0x65d   :  { %v2701_v56 = vpop.eup %2700  ;;  %v1319_v59 = vadd.f32 %v2697_v44, %v1318_v50 }
 0x65e   :  { %v1338_v61 = vadd.f32 %v2699_v36, %v1337_v52  ;;  %v1355_v62 = vmul.f32 %v2701_v56, %v1353_v31  ;;  %v2703_v4 = vpop.eup %2702  ;;  %vm1360_vm8 = vweird.f32 %v2701_v56 }
 0x65f   :  { %v1323_v0 = vsel %vm1322_vm4, %v2697_v44, %v1319_v59  ;;  %v1363_v44 = vand.u32 2147483647, %v1353_v31  ;;  %vm1361_vm10 = vmor %vm1359_vm9, %vm1360_vm8  ;;  %v2480_v31 = vld [vmem:[%s3903_s0 + $0x120] sm:$0xff] }
 0x660   :  { %v1328_v5 = vsel %vm1325_vm6, %v1327_v60, %v1323_v0  ;;  %v1342_v6 = vsel %vm1341_vm5, %v2699_v36, %v1338_v61  ;;  %v1356_v11 = vsub.f32 1.0, %v1355_v62  ;;  %v2483_v60 = vld [vmem:[%s3903_s0 + $0x138] sm:$0xff] }
 0x661   :  { %v1347_v47 = vsel %vm1344_vm7, %v1346_v63, %v1342_v6  ;;  %v1371_v19 = vmul.f32 %v2703_v4, %v1328_v5  ;;  %vm1364_vm11 = vcmp.eq.f32.partialorder %v1363_v44, 8.507059e+37 }
 0x662   :  { %v1370_v24 = vmul.f32 %v1347_v47, %v3555_v35  ;;  %v1357_v14 = vmul.f32 %v2701_v56, %v1356_v11 }
 0x664   :  { %v3606_v43 = vadd.f32 %v1371_v19, %v1370_v24  ;;  %v1358_v13 = vadd.f32 %v2701_v56, %v1357_v14 }
 0x666   :  { %2704 = vtanh.f32 %v3606_v43  ;;  %v1362_v27 = vsel %vm1361_vm10, %v2701_v56, %v1358_v13  ;;  %v2482_v13 = vld [vmem:[%s3903_s0 + $0x130] sm:$0xff] }
 0x667   :  { %v1367_v29 = vsel %vm1364_vm11, %v1366_v23, %v1362_v27 }
 0x66c   :  { %v2705_v36 = vpop.eup %2704 }
 0x66d   :  { %v1374_v15 = vmul.f32 %v2705_v36, %v1367_v29 }
 0x66f   :  { %v1375_v30 = vpack.c.bf16 %v1374_v15, %v1374_v15 }
 0x671   :  { %1378 = vst [vmem:[%s3904_s2 + $0x20] sm:$0xf] %v1375_v30 }
 0x672   :  { %1377 = vst [vmem:[#allocation2] sm:$0xf] %v1375_v30 }
 0x679   :  { %v1384_v35 = vld [vmem:[#allocation2] sm:$0xf] }
 0x67a   :  { %1393 = vmatmul.bf16.vlgmr.msrb.gmra.mxu0 %v1384_v35  ;;  %1406 = vmatmul.bf16.vlgmr.msrb.gmra.mxu1 %v1384_v35 }
 0x67b   :  { %1419 = vmatmul.bf16.vlgmr.msrb.gmra.mxu2 %v1384_v35  ;;  %1432 = vmatmul.bf16.vlgmr.msrb.gmra.mxu3 %v1384_v35 }
 0x67c   :  { %1645 = vmatpush.bf16.msrb.mxu0 %v2843_v3  ;;  %1658 = vmatpush.bf16.msrb.mxu1 %v2854_v7 }
 0x67d   :  { %1671 = vmatpush.bf16.msrb.mxu2 %v2894_v21  ;;  %1684 = vmatpush.bf16.msrb.mxu3 %v2856_v8 }
 0x680   :  { %1646 = vmatpush.bf16.msrb.mxu0 %v2868_v12  ;;  %1659 = vmatpush.bf16.msrb.mxu1 %v2881_v16 }
 0x681   :  { %1672 = vmatpush.bf16.msrb.mxu2 %v2933_v34  ;;  %1685 = vmatpush.bf16.msrb.mxu3 %v2883_v17 }
 0x684   :  { %1647 = vmatpush.bf16.msrb.mxu0 %v2916_v28  ;;  %1660 = vmatpush.bf16.msrb.mxu1 %v2929_v32 }
 0x685   :  { %1673 = vmatpush.bf16.msrb.mxu2 %v2957_v42  ;;  %1686 = vmatpush.bf16.msrb.mxu3 %v2931_v33 }
 0x688   :  { %1648 = vmatpush.bf16.msrb.mxu0 %v2955_v41  ;;  %1661 = vmatpush.bf16.msrb.mxu1 %v2967_v45 }
 0x689   :  { %1674 = vmatpush.bf16.msrb.mxu2 %v2993_v54  ;;  %1687 = vmatpush.bf16.msrb.mxu3 %v2969_v46 }
 0x68c   :  { %1649 = vmatpush.bf16.msrb.mxu0 %v2991_v53  ;;  %1662 = vmatpush.bf16.msrb.mxu1 %v3003_v57 }
 0x68d   :  { %1675 = vmatpush.bf16.msrb.mxu2 %v3029_v2  ;;  %1688 = vmatpush.bf16.msrb.mxu3 %v3005_v58 }
 0x690   :  { %1650 = vmatpush.bf16.msrb.mxu0 %v3027_v1  ;;  %1663 = vmatpush.bf16.msrb.mxu1 %v3042_v9 }
 0x691   :  { %1676 = vmatpush.bf16.msrb.mxu2 %v3065_v22  ;;  %1689 = vmatpush.bf16.msrb.mxu3 %v3044_v10 }
 0x694   :  { %1651 = vmatpush.bf16.msrb.mxu0 %v3063_v20  ;;  %1664 = vmatpush.bf16.msrb.mxu1 %v3075_v25 }
 0x695   :  { %1677 = vmatpush.bf16.msrb.mxu2 %v3101_v38  ;;  %1690 = vmatpush.bf16.msrb.mxu3 %v3077_v26 }
 0x698   :  { %1652 = vmatpush.bf16.msrb.mxu0 %v3099_v37  ;;  %1665 = vmatpush.bf16.msrb.mxu1 %v3105_v39 }
 0x699   :  { %1678 = vmatpush.bf16.msrb.mxu2 %v3119_v48  ;;  %1691 = vmatpush.bf16.msrb.mxu3 %v3107_v40 }
 0x6f7   :  { %v1394_v50 = vpop.f32.mrf.mxu0  ;;  %v1407_v51 = vpop.f32.mrf.mxu1 }
 0x6f8   :  { %v1437_v52 = vadd.f32 %v2480_v31, %v1394_v50  ;;  %v1438_v55 = vadd.f32 %v2481_v49, %v1407_v51 }
 0x6fa   :  { %v2484_v56 = vmul.f32 -1.442695, %v1437_v52  ;;  %v2485_v59 = vmul.f32 -1.442695, %v1438_v55 }
 0x6fc   :  { %2706 = vpow2.f32 %v2484_v56 }
 0x6fd   :  { %2708 = vpow2.f32 %v2485_v59 }
 0x6fe   :  { %v1420_v61 = vpop.f32.mrf.mxu2  ;;  %v1433_v62 = vpop.f32.mrf.mxu3 }
 0x6ff   :  { %v1440_v63 = vadd.f32 %v2483_v60, %v1433_v62  ;;  %v1396_v0 = vpop.f32.mrf.mxu0  ;;  %v1409_v4 = vpop.f32.mrf.mxu1  ;;  %v1439_v23 = vadd.f32 %v2482_v13, %v1420_v61 }
 0x701   :  { %v2486_v5 = vmul.f32 -1.442695, %v1440_v63 }
 0x702   :  { %v2707_v6 = vpop.eup %2706 }
 0x703   :  { %v2709_v11 = vpop.eup %2708  ;;  %v1444_v47 = vadd.f32 1.0, %v2707_v6  ;;  %2710 = vpow2.f32 %v2486_v5 }
 0x704   :  { %v1463_v19 = vadd.f32 1.0, %v2709_v11 }
 0x705   :  { %2712 = vrcp.f32 %v1444_v47  ;;  %v1456_v31 = vand.u32 2147483648, %v1444_v47  ;;  %v1454_v51 = vand.u32 2147483647, %v1444_v47  ;;  %vm1450_vm14 = vweird.f32 %v1444_v47 }
 0x706   :  { %2714 = vrcp.f32 %v1463_v19  ;;  %v1422_v24 = vpop.f32.mrf.mxu2  ;;  %v1435_v14 = vpop.f32.mrf.mxu3  ;;  %v1475_v49 = vand.u32 2147483648, %v1463_v19  ;;  %v1473_v55 = vand.u32 2147483647, %v1463_v19  ;;  %vm1469_vm15 = vweird.f32 %v1463_v19 }
 0x707   :  { %v1457_v60 = vor.u32 1.1754944e-38, %v1456_v31  ;;  %vm1455_vm2 = vcmp.eq.f32.partialorder %v1454_v51, 8.507059e+37 }
 0x708   :  { %v1476_v63 = vor.u32 1.1754944e-38, %v1475_v49  ;;  %vm1474_vm3 = vcmp.eq.f32.partialorder %v1473_v55, 8.507059e+37  ;;  %v2488_v49 = vld [vmem:[%s3903_s0 + $0x148] sm:$0xff] }
 0x709   :  { %v2711_v18 = vpop.eup %2710 }
 0x70a   :  { %v1483_v44 = vadd.f32 1.0, %v2711_v18 }
 0x70b   :  { %v2713_v27 = vpop.eup %2712 }
 0x70c   :  { %v2715_v36 = vpop.eup %2714  ;;  %v1446_v29 = vmul.f32 %v2713_v27, %v1444_v47  ;;  %2716 = vrcp.f32 %v1483_v44  ;;  %vm1451_vm12 = vweird.f32 %v2713_v27  ;;  %vm1489_vm5 = vweird.f32 %v1483_v44 }
 0x70d   :  { %v1465_v15 = vmul.f32 %v2715_v36, %v1463_v19  ;;  %2718 = vtanh.f32 %v1439_v23  ;;  %vm1470_vm13 = vweird.f32 %v2715_v36  ;;  %vm1452_vm0 = vmor %vm1450_vm14, %vm1451_vm12  ;;  %v1495_v23 = vand.u32 2147483648, %v1483_v44 }
 0x70e   :  { %v1447_v30 = vsub.f32 1.0, %v1446_v29  ;;  %vm1471_vm1 = vmor %vm1469_vm15, %vm1470_vm13 }
 0x70f   :  { %v1466_v35 = vsub.f32 1.0, %v1465_v15  ;;  %v1496_v15 = vor.u32 1.1754944e-38, %v1495_v23 }
 0x710   :  { %v1448_v50 = vmul.f32 %v2713_v27, %v1447_v30 }
 0x711   :  { %v1467_v52 = vmul.f32 %v2715_v36, %v1466_v35 }
 0x712   :  { %v2717_v56 = vpop.eup %2716  ;;  %v1449_v59 = vadd.f32 %v2713_v27, %v1448_v50 }
 0x713   :  { %v1468_v61 = vadd.f32 %v2715_v36, %v1467_v52  ;;  %v1485_v62 = vmul.f32 %v2717_v56, %v1483_v44  ;;  %v2719_v4 = vpop.eup %2718  ;;  %vm1490_vm4 = vweird.f32 %v2717_v56 }
 0x714   :  { %v1453_v0 = vsel %vm1452_vm0, %v2713_v27, %v1449_v59  ;;  %v1493_v27 = vand.u32 2147483647, %v1483_v44  ;;  %vm1491_vm6 = vmor %vm1489_vm5, %vm1490_vm4  ;;  %v2487_v44 = vld [vmem:[%s3903_s0 + $0x140] sm:$0xff] }
 0x715   :  { %v1458_v5 = vsel %vm1455_vm2, %v1457_v60, %v1453_v0  ;;  %v1472_v6 = vsel %vm1471_vm1, %v2715_v36, %v1468_v61  ;;  %v1486_v11 = vsub.f32 1.0, %v1485_v62  ;;  %v2490_v60 = vld [vmem:[%s3903_s0 + $0x158] sm:$0xff] }
 0x716   :  { %v1477_v24 = vsel %vm1474_vm3, %v1476_v63, %v1472_v6  ;;  %v1501_v14 = vmul.f32 %v2719_v4, %v1458_v5  ;;  %vm1494_vm7 = vcmp.eq.f32.partialorder %v1493_v27, 8.507059e+37 }
 0x717   :  { %v1500_v13 = vmul.f32 %v1477_v24, %v3606_v43  ;;  %v1487_v18 = vmul.f32 %v2717_v56, %v1486_v11 }
 0x719   :  { %v3657_v47 = vadd.f32 %v1501_v14, %v1500_v13  ;;  %v1488_v19 = vadd.f32 %v2717_v56, %v1487_v18 }
 0x71b   :  { %2720 = vtanh.f32 %v3657_v47  ;;  %v1492_v29 = vsel %vm1491_vm6, %v2717_v56, %v1488_v19  ;;  %v2489_v19 = vld [vmem:[%s3903_s0 + $0x150] sm:$0xff] }
 0x71c   :  { %v1497_v30 = vsel %vm1494_vm7, %v1496_v15, %v1492_v29 }
 0x721   :  { %v2721_v36 = vpop.eup %2720 }
 0x722   :  { %v1504_v35 = vmul.f32 %v2721_v36, %v1497_v30 }
 0x724   :  { %v1505_v31 = vpack.c.bf16 %v1504_v35, %v1504_v35 }
 0x726   :  { %1508 = vst [vmem:[%s3904_s2 + $0x24] sm:$0xf] %v1505_v31 }
 0x727   :  { %1507 = vst [vmem:[#allocation2] sm:$0xf] %v1505_v31 }
 0x72e   :  { %v1514_v43 = vld [vmem:[#allocation2] sm:$0xf] }
 0x72f   :  { %1523 = vmatmul.bf16.vlgmr.msra.gmra.mxu0 %v1514_v43  ;;  %1536 = vmatmul.bf16.vlgmr.msra.gmra.mxu1 %v1514_v43 }
 0x730   :  { %1549 = vmatmul.bf16.vlgmr.msra.gmra.mxu2 %v1514_v43  ;;  %1562 = vmatmul.bf16.vlgmr.msra.gmra.mxu3 %v1514_v43 }
 0x731   :  { %1775 = vmatpush.bf16.msra.mxu0 %v2843_v3  ;;  %1788 = vmatpush.bf16.msra.mxu1 %v2854_v7 }
 0x732   :  { %1801 = vmatpush.bf16.msra.mxu2 %v2894_v21  ;;  %1814 = vmatpush.bf16.msra.mxu3 %v2856_v8 }
 0x735   :  { %1776 = vmatpush.bf16.msra.mxu0 %v2868_v12  ;;  %1789 = vmatpush.bf16.msra.mxu1 %v2881_v16 }
 0x736   :  { %1802 = vmatpush.bf16.msra.mxu2 %v2933_v34  ;;  %1815 = vmatpush.bf16.msra.mxu3 %v2883_v17 }
 0x739   :  { %1777 = vmatpush.bf16.msra.mxu0 %v2916_v28  ;;  %1790 = vmatpush.bf16.msra.mxu1 %v2929_v32 }
 0x73a   :  { %1803 = vmatpush.bf16.msra.mxu2 %v2957_v42  ;;  %1816 = vmatpush.bf16.msra.mxu3 %v2931_v33 }
 0x73d   :  { %1778 = vmatpush.bf16.msra.mxu0 %v2955_v41  ;;  %1791 = vmatpush.bf16.msra.mxu1 %v2967_v45 }
 0x73e   :  { %1804 = vmatpush.bf16.msra.mxu2 %v2993_v54  ;;  %1817 = vmatpush.bf16.msra.mxu3 %v2969_v46 }
 0x741   :  { %1779 = vmatpush.bf16.msra.mxu0 %v2991_v53  ;;  %1792 = vmatpush.bf16.msra.mxu1 %v3003_v57 }
 0x742   :  { %1805 = vmatpush.bf16.msra.mxu2 %v3029_v2  ;;  %1818 = vmatpush.bf16.msra.mxu3 %v3005_v58 }
 0x745   :  { %1780 = vmatpush.bf16.msra.mxu0 %v3027_v1  ;;  %1793 = vmatpush.bf16.msra.mxu1 %v3042_v9 }
 0x746   :  { %1806 = vmatpush.bf16.msra.mxu2 %v3065_v22  ;;  %1819 = vmatpush.bf16.msra.mxu3 %v3044_v10 }
 0x749   :  { %1781 = vmatpush.bf16.msra.mxu0 %v3063_v20  ;;  %1794 = vmatpush.bf16.msra.mxu1 %v3075_v25 }
 0x74a   :  { %1807 = vmatpush.bf16.msra.mxu2 %v3101_v38  ;;  %1820 = vmatpush.bf16.msra.mxu3 %v3077_v26 }
 0x74d   :  { %1782 = vmatpush.bf16.msra.mxu0 %v3099_v37  ;;  %1795 = vmatpush.bf16.msra.mxu1 %v3105_v39 }
 0x74e   :  { %1808 = vmatpush.bf16.msra.mxu2 %v3119_v48  ;;  %1821 = vmatpush.bf16.msra.mxu3 %v3107_v40 }
 0x7ac   :  { %v1524_v50 = vpop.f32.mrf.mxu0  ;;  %v1537_v51 = vpop.f32.mrf.mxu1 }
 0x7ad   :  { %v1567_v52 = vadd.f32 %v2487_v44, %v1524_v50  ;;  %v1568_v55 = vadd.f32 %v2488_v49, %v1537_v51 }
 0x7af   :  { %v2491_v56 = vmul.f32 -1.442695, %v1567_v52  ;;  %v2492_v59 = vmul.f32 -1.442695, %v1568_v55 }
 0x7b1   :  { %2722 = vpow2.f32 %v2491_v56 }
 0x7b2   :  { %2724 = vpow2.f32 %v2492_v59 }
 0x7b3   :  { %v1550_v61 = vpop.f32.mrf.mxu2  ;;  %v1563_v62 = vpop.f32.mrf.mxu3 }
 0x7b4   :  { %v1570_v63 = vadd.f32 %v2490_v60, %v1563_v62  ;;  %v1526_v0 = vpop.f32.mrf.mxu0  ;;  %v1539_v4 = vpop.f32.mrf.mxu1  ;;  %v1569_v15 = vadd.f32 %v2489_v19, %v1550_v61 }
 0x7b6   :  { %v2493_v5 = vmul.f32 -1.442695, %v1570_v63 }
 0x7b7   :  { %v2723_v6 = vpop.eup %2722 }
 0x7b8   :  { %v2725_v11 = vpop.eup %2724  ;;  %v1574_v24 = vadd.f32 1.0, %v2723_v6  ;;  %2726 = vpow2.f32 %v2493_v5 }
 0x7b9   :  { %v1593_v14 = vadd.f32 1.0, %v2725_v11 }
 0x7ba   :  { %2728 = vrcp.f32 %v1574_v24  ;;  %v1586_v44 = vand.u32 2147483648, %v1574_v24  ;;  %v1584_v51 = vand.u32 2147483647, %v1574_v24  ;;  %vm1580_vm10 = vweird.f32 %v1574_v24 }
 0x7bb   :  { %2730 = vrcp.f32 %v1593_v14  ;;  %v1552_v13 = vpop.f32.mrf.mxu2  ;;  %v1565_v18 = vpop.f32.mrf.mxu3  ;;  %v1605_v49 = vand.u32 2147483648, %v1593_v14  ;;  %v1603_v55 = vand.u32 2147483647, %v1593_v14  ;;  %vm1599_vm11 = vweird.f32 %v1593_v14 }
 0x7bc   :  { %v1587_v60 = vor.u32 1.1754944e-38, %v1586_v44  ;;  %vm1585_vm14 = vcmp.eq.f32.partialorder %v1584_v51, 8.507059e+37 }
 0x7bd   :  { %v1606_v63 = vor.u32 1.1754944e-38, %v1605_v49  ;;  %vm1604_vm15 = vcmp.eq.f32.partialorder %v1603_v55, 8.507059e+37  ;;  %v2495_v49 = vld [vmem:[%s3903_s0 + $0x168] sm:$0xff] }
 0x7be   :  { %v2727_v23 = vpop.eup %2726 }
 0x7bf   :  { %v1613_v27 = vadd.f32 1.0, %v2727_v23 }
 0x7c0   :  { %v2729_v29 = vpop.eup %2728 }
 0x7c1   :  { %v2731_v36 = vpop.eup %2730  ;;  %v1576_v30 = vmul.f32 %v2729_v29, %v1574_v24  ;;  %2732 = vrcp.f32 %v1613_v27  ;;  %vm1581_vm8 = vweird.f32 %v2729_v29  ;;  %vm1619_vm1 = vweird.f32 %v1613_v27 }
 0x7c2   :  { %v1595_v35 = vmul.f32 %v2731_v36, %v1593_v14  ;;  %2734 = vtanh.f32 %v1569_v15  ;;  %vm1600_vm9 = vweird.f32 %v2731_v36  ;;  %vm1582_vm12 = vmor %vm1580_vm10, %vm1581_vm8  ;;  %v1625_v15 = vand.u32 2147483648, %v1613_v27 }
 0x7c3   :  { %v1577_v31 = vsub.f32 1.0, %v1576_v30  ;;  %vm1601_vm13 = vmor %vm1599_vm11, %vm1600_vm9 }
 0x7c4   :  { %v1596_v43 = vsub.f32 1.0, %v1595_v35  ;;  %v1626_v35 = vor.u32 1.1754944e-38, %v1625_v15 }
 0x7c5   :  { %v1578_v50 = vmul.f32 %v2729_v29, %v1577_v31 }
 0x7c6   :  { %v1597_v52 = vmul.f32 %v2731_v36, %v1596_v43 }
 0x7c7   :  { %v2733_v56 = vpop.eup %2732  ;;  %v1579_v59 = vadd.f32 %v2729_v29, %v1578_v50 }
 0x7c8   :  { %v1598_v61 = vadd.f32 %v2731_v36, %v1597_v52  ;;  %v1615_v62 = vmul.f32 %v2733_v56, %v1613_v27  ;;  %v2735_v4 = vpop.eup %2734  ;;  %vm1620_vm0 = vweird.f32 %v2733_v56 }
 0x7c9   :  { %v1583_v0 = vsel %vm1582_vm12, %v2729_v29, %v1579_v59  ;;  %v1623_v29 = vand.u32 2147483647, %v1613_v27  ;;  %vm1621_vm2 = vmor %vm1619_vm1, %vm1620_vm0  ;;  %v2494_v27 = vld [vmem:[%s3903_s0 + $0x160] sm:$0xff] }
 0x7ca   :  { %v1588_v5 = vsel %vm1585_vm14, %v1587_v60, %v1583_v0  ;;  %v1602_v6 = vsel %vm1601_vm13, %v2731_v36, %v1598_v61  ;;  %v1616_v11 = vsub.f32 1.0, %v1615_v62  ;;  %v2497_v60 = vld [vmem:[%s3903_s0 + $0x178] sm:$0xff] }
 0x7cb   :  { %v1607_v13 = vsel %vm1604_vm15, %v1606_v63, %v1602_v6  ;;  %v1631_v18 = vmul.f32 %v2735_v4, %v1588_v5  ;;  %vm1624_vm3 = vcmp.eq.f32.partialorder %v1623_v29, 8.507059e+37 }
 0x7cc   :  { %v1630_v19 = vmul.f32 %v1607_v13, %v3657_v47  ;;  %v1617_v23 = vmul.f32 %v2733_v56, %v1616_v11 }
 0x7ce   :  { %v3708_v24 = vadd.f32 %v1631_v18, %v1630_v19  ;;  %v1618_v14 = vadd.f32 %v2733_v56, %v1617_v23 }
 0x7d0   :  { %2736 = vtanh.f32 %v3708_v24  ;;  %v1622_v30 = vsel %vm1621_vm2, %v2733_v56, %v1618_v14  ;;  %v2496_v14 = vld [vmem:[%s3903_s0 + $0x170] sm:$0xff] }
 0x7d1   :  { %v1627_v31 = vsel %vm1624_vm3, %v1626_v35, %v1622_v30 }
 0x7d6   :  { %v2737_v36 = vpop.eup %2736 }
 0x7d7   :  { %v1634_v43 = vmul.f32 %v2737_v36, %v1627_v31 }
 0x7d9   :  { %v1635_v44 = vpack.c.bf16 %v1634_v43, %v1634_v43 }
 0x7db   :  { %1638 = vst [vmem:[%s3904_s2 + $0x28] sm:$0xf] %v1635_v44 }
 0x7dc   :  { %1637 = vst [vmem:[#allocation2] sm:$0xf] %v1635_v44 }
 0x7e3   :  { %v1644_v47 = vld [vmem:[#allocation2] sm:$0xf] }
 0x7e4   :  { %1653 = vmatmul.bf16.vlgmr.msrb.gmra.mxu0 %v1644_v47  ;;  %1666 = vmatmul.bf16.vlgmr.msrb.gmra.mxu1 %v1644_v47 }
 0x7e5   :  { %1679 = vmatmul.bf16.vlgmr.msrb.gmra.mxu2 %v1644_v47  ;;  %1692 = vmatmul.bf16.vlgmr.msrb.gmra.mxu3 %v1644_v47 }
 0x7e6   :  { %1905 = vmatpush.bf16.msrb.mxu0 %v2843_v3  ;;  %1918 = vmatpush.bf16.msrb.mxu1 %v2854_v7 }
 0x7e7   :  { %1931 = vmatpush.bf16.msrb.mxu2 %v2894_v21  ;;  %1944 = vmatpush.bf16.msrb.mxu3 %v2856_v8 }
 0x7ea   :  { %1906 = vmatpush.bf16.msrb.mxu0 %v2868_v12  ;;  %1919 = vmatpush.bf16.msrb.mxu1 %v2881_v16 }
 0x7eb   :  { %1932 = vmatpush.bf16.msrb.mxu2 %v2933_v34  ;;  %1945 = vmatpush.bf16.msrb.mxu3 %v2883_v17 }
 0x7ee   :  { %1907 = vmatpush.bf16.msrb.mxu0 %v2916_v28  ;;  %1920 = vmatpush.bf16.msrb.mxu1 %v2929_v32 }
 0x7ef   :  { %1933 = vmatpush.bf16.msrb.mxu2 %v2957_v42  ;;  %1946 = vmatpush.bf16.msrb.mxu3 %v2931_v33 }
 0x7f2   :  { %1908 = vmatpush.bf16.msrb.mxu0 %v2955_v41  ;;  %1921 = vmatpush.bf16.msrb.mxu1 %v2967_v45 }
 0x7f3   :  { %1934 = vmatpush.bf16.msrb.mxu2 %v2993_v54  ;;  %1947 = vmatpush.bf16.msrb.mxu3 %v2969_v46 }
 0x7f6   :  { %1909 = vmatpush.bf16.msrb.mxu0 %v2991_v53  ;;  %1922 = vmatpush.bf16.msrb.mxu1 %v3003_v57 }
 0x7f7   :  { %1935 = vmatpush.bf16.msrb.mxu2 %v3029_v2  ;;  %1948 = vmatpush.bf16.msrb.mxu3 %v3005_v58 }
 0x7fa   :  { %1910 = vmatpush.bf16.msrb.mxu0 %v3027_v1  ;;  %1923 = vmatpush.bf16.msrb.mxu1 %v3042_v9 }
 0x7fb   :  { %1936 = vmatpush.bf16.msrb.mxu2 %v3065_v22  ;;  %1949 = vmatpush.bf16.msrb.mxu3 %v3044_v10 }
 0x7fe   :  { %1911 = vmatpush.bf16.msrb.mxu0 %v3063_v20  ;;  %1924 = vmatpush.bf16.msrb.mxu1 %v3075_v25 }
 0x7ff   :  { %1937 = vmatpush.bf16.msrb.mxu2 %v3101_v38  ;;  %1950 = vmatpush.bf16.msrb.mxu3 %v3077_v26 }
 0x802   :  { %1912 = vmatpush.bf16.msrb.mxu0 %v3099_v37  ;;  %1925 = vmatpush.bf16.msrb.mxu1 %v3105_v39 }
 0x803   :  { %1938 = vmatpush.bf16.msrb.mxu2 %v3119_v48  ;;  %1951 = vmatpush.bf16.msrb.mxu3 %v3107_v40 }
 0x861   :  { %v1654_v50 = vpop.f32.mrf.mxu0  ;;  %v1667_v51 = vpop.f32.mrf.mxu1 }
 0x862   :  { %v1697_v52 = vadd.f32 %v2494_v27, %v1654_v50  ;;  %v1698_v55 = vadd.f32 %v2495_v49, %v1667_v51 }
 0x864   :  { %v2498_v56 = vmul.f32 -1.442695, %v1697_v52  ;;  %v2499_v59 = vmul.f32 -1.442695, %v1698_v55 }
 0x866   :  { %2738 = vpow2.f32 %v2498_v56 }
 0x867   :  { %2740 = vpow2.f32 %v2499_v59 }
 0x868   :  { %v1680_v61 = vpop.f32.mrf.mxu2  ;;  %v1693_v62 = vpop.f32.mrf.mxu3 }
 0x869   :  { %v1700_v63 = vadd.f32 %v2497_v60, %v1693_v62  ;;  %v1656_v0 = vpop.f32.mrf.mxu0  ;;  %v1669_v4 = vpop.f32.mrf.mxu1  ;;  %v1699_v35 = vadd.f32 %v2496_v14, %v1680_v61 }
 0x86b   :  { %v2500_v5 = vmul.f32 -1.442695, %v1700_v63 }
 0x86c   :  { %v2739_v6 = vpop.eup %2738 }
 0x86d   :  { %v2741_v11 = vpop.eup %2740  ;;  %v1704_v13 = vadd.f32 1.0, %v2739_v6  ;;  %2742 = vpow2.f32 %v2500_v5 }
 0x86e   :  { %v1723_v18 = vadd.f32 1.0, %v2741_v11 }
 0x86f   :  { %2744 = vrcp.f32 %v1704_v13  ;;  %v1716_v27 = vand.u32 2147483648, %v1704_v13  ;;  %v1714_v51 = vand.u32 2147483647, %v1704_v13  ;;  %vm1710_vm6 = vweird.f32 %v1704_v13 }
 0x870   :  { %2746 = vrcp.f32 %v1723_v18  ;;  %v1682_v19 = vpop.f32.mrf.mxu2  ;;  %v1695_v23 = vpop.f32.mrf.mxu3  ;;  %v1735_v49 = vand.u32 2147483648, %v1723_v18  ;;  %v1733_v55 = vand.u32 2147483647, %v1723_v18  ;;  %vm1729_vm7 = vweird.f32 %v1723_v18 }
 0x871   :  { %v1717_v60 = vor.u32 1.1754944e-38, %v1716_v27  ;;  %vm1715_vm10 = vcmp.eq.f32.partialorder %v1714_v51, 8.507059e+37 }
 0x872   :  { %v1736_v63 = vor.u32 1.1754944e-38, %v1735_v49  ;;  %vm1734_vm11 = vcmp.eq.f32.partialorder %v1733_v55, 8.507059e+37  ;;  %v2502_v49 = vld [vmem:[%s3903_s0 + $0x188] sm:$0xff] }
 0x873   :  { %v2743_v15 = vpop.eup %2742 }
 0x874   :  { %v1743_v29 = vadd.f32 1.0, %v2743_v15 }
 0x875   :  { %v2745_v30 = vpop.eup %2744 }
 0x876   :  { %v2747_v36 = vpop.eup %2746  ;;  %v1706_v31 = vmul.f32 %v2745_v30, %v1704_v13  ;;  %2748 = vrcp.f32 %v1743_v29  ;;  %vm1711_vm4 = vweird.f32 %v2745_v30  ;;  %vm1749_vm13 = vweird.f32 %v1743_v29 }
 0x877   :  { %v1725_v43 = vmul.f32 %v2747_v36, %v1723_v18  ;;  %2750 = vtanh.f32 %v1699_v35  ;;  %vm1730_vm5 = vweird.f32 %v2747_v36  ;;  %vm1712_vm8 = vmor %vm1710_vm6, %vm1711_vm4  ;;  %v1755_v35 = vand.u32 2147483648, %v1743_v29 }
 0x878   :  { %v1707_v44 = vsub.f32 1.0, %v1706_v31  ;;  %vm1731_vm9 = vmor %vm1729_vm7, %vm1730_vm5 }
 0x879   :  { %v1726_v47 = vsub.f32 1.0, %v1725_v43  ;;  %v1756_v43 = vor.u32 1.1754944e-38, %v1755_v35 }
 0x87a   :  { %v1708_v50 = vmul.f32 %v2745_v30, %v1707_v44 }
 0x87b   :  { %v1727_v52 = vmul.f32 %v2747_v36, %v1726_v47 }
 0x87c   :  { %v2749_v56 = vpop.eup %2748  ;;  %v1709_v59 = vadd.f32 %v2745_v30, %v1708_v50 }
 0x87d   :  { %v1728_v61 = vadd.f32 %v2747_v36, %v1727_v52  ;;  %v1745_v62 = vmul.f32 %v2749_v56, %v1743_v29  ;;  %v2751_v4 = vpop.eup %2750  ;;  %vm1750_vm12 = vweird.f32 %v2749_v56 }
 0x87e   :  { %v1713_v0 = vsel %vm1712_vm8, %v2745_v30, %v1709_v59  ;;  %v1753_v30 = vand.u32 2147483647, %v1743_v29  ;;  %vm1751_vm14 = vmor %vm1749_vm13, %vm1750_vm12  ;;  %v2501_v29 = vld [vmem:[%s3903_s0 + $0x180] sm:$0xff] }
 0x87f   :  { %v1718_v5 = vsel %vm1715_vm10, %v1717_v60, %v1713_v0  ;;  %v1732_v6 = vsel %vm1731_vm9, %v2747_v36, %v1728_v61  ;;  %v1746_v11 = vsub.f32 1.0, %v1745_v62  ;;  %v2504_v60 = vld [vmem:[%s3903_s0 + $0x198] sm:$0xff] }
 0x880   :  { %v1737_v19 = vsel %vm1734_vm11, %v1736_v63, %v1732_v6  ;;  %v1761_v23 = vmul.f32 %v2751_v4, %v1718_v5  ;;  %vm1754_vm15 = vcmp.eq.f32.partialorder %v1753_v30, 8.507059e+37 }
 0x881   :  { %v1760_v14 = vmul.f32 %v1737_v19, %v3708_v24  ;;  %v1747_v15 = vmul.f32 %v2749_v56, %v1746_v11 }
 0x883   :  { %v3759_v13 = vadd.f32 %v1761_v23, %v1760_v14  ;;  %v1748_v18 = vadd.f32 %v2749_v56, %v1747_v15 }
 0x885   :  { %2752 = vtanh.f32 %v3759_v13  ;;  %v1752_v31 = vsel %vm1751_vm14, %v2749_v56, %v1748_v18  ;;  %v2503_v18 = vld [vmem:[%s3903_s0 + $0x190] sm:$0xff] }
 0x886   :  { %v1757_v44 = vsel %vm1754_vm15, %v1756_v43, %v1752_v31 }
 0x88b   :  { %v2753_v36 = vpop.eup %2752 }
 0x88c   :  { %v1764_v47 = vmul.f32 %v2753_v36, %v1757_v44 }
 0x88e   :  { %v1765_v27 = vpack.c.bf16 %v1764_v47, %v1764_v47 }
 0x890   :  { %1768 = vst [vmem:[%s3904_s2 + $0x2c] sm:$0xf] %v1765_v27 }
 0x891   :  { %1767 = vst [vmem:[#allocation2] sm:$0xf] %v1765_v27 }
 0x898   :  { %v1774_v24 = vld [vmem:[#allocation2] sm:$0xf] }
 0x899   :  { %1783 = vmatmul.bf16.vlgmr.msra.gmra.mxu0 %v1774_v24  ;;  %1796 = vmatmul.bf16.vlgmr.msra.gmra.mxu1 %v1774_v24 }
 0x89a   :  { %1809 = vmatmul.bf16.vlgmr.msra.gmra.mxu2 %v1774_v24  ;;  %1822 = vmatmul.bf16.vlgmr.msra.gmra.mxu3 %v1774_v24 }
 0x89b   :  { %2035 = vmatpush.bf16.msra.mxu0 %v2843_v3  ;;  %2048 = vmatpush.bf16.msra.mxu1 %v2854_v7 }
 0x89c   :  { %2061 = vmatpush.bf16.msra.mxu2 %v2894_v21  ;;  %2074 = vmatpush.bf16.msra.mxu3 %v2856_v8 }
 0x89f   :  { %2036 = vmatpush.bf16.msra.mxu0 %v2868_v12  ;;  %2049 = vmatpush.bf16.msra.mxu1 %v2881_v16 }
 0x8a0   :  { %2062 = vmatpush.bf16.msra.mxu2 %v2933_v34  ;;  %2075 = vmatpush.bf16.msra.mxu3 %v2883_v17 }
 0x8a3   :  { %2037 = vmatpush.bf16.msra.mxu0 %v2916_v28  ;;  %2050 = vmatpush.bf16.msra.mxu1 %v2929_v32 }
 0x8a4   :  { %2063 = vmatpush.bf16.msra.mxu2 %v2957_v42  ;;  %2076 = vmatpush.bf16.msra.mxu3 %v2931_v33 }
 0x8a7   :  { %2038 = vmatpush.bf16.msra.mxu0 %v2955_v41  ;;  %2051 = vmatpush.bf16.msra.mxu1 %v2967_v45 }
 0x8a8   :  { %2064 = vmatpush.bf16.msra.mxu2 %v2993_v54  ;;  %2077 = vmatpush.bf16.msra.mxu3 %v2969_v46 }
 0x8ab   :  { %2039 = vmatpush.bf16.msra.mxu0 %v2991_v53  ;;  %2052 = vmatpush.bf16.msra.mxu1 %v3003_v57 }
 0x8ac   :  { %2065 = vmatpush.bf16.msra.mxu2 %v3029_v2  ;;  %2078 = vmatpush.bf16.msra.mxu3 %v3005_v58 }
 0x8af   :  { %2040 = vmatpush.bf16.msra.mxu0 %v3027_v1  ;;  %2053 = vmatpush.bf16.msra.mxu1 %v3042_v9 }
 0x8b0   :  { %2066 = vmatpush.bf16.msra.mxu2 %v3065_v22  ;;  %2079 = vmatpush.bf16.msra.mxu3 %v3044_v10 }
 0x8b3   :  { %2041 = vmatpush.bf16.msra.mxu0 %v3063_v20  ;;  %2054 = vmatpush.bf16.msra.mxu1 %v3075_v25 }
 0x8b4   :  { %2067 = vmatpush.bf16.msra.mxu2 %v3101_v38  ;;  %2080 = vmatpush.bf16.msra.mxu3 %v3077_v26 }
 0x8b7   :  { %2042 = vmatpush.bf16.msra.mxu0 %v3099_v37  ;;  %2055 = vmatpush.bf16.msra.mxu1 %v3105_v39 }
 0x8b8   :  { %2068 = vmatpush.bf16.msra.mxu2 %v3119_v48  ;;  %2081 = vmatpush.bf16.msra.mxu3 %v3107_v40 }
 0x916   :  { %v1784_v50 = vpop.f32.mrf.mxu0  ;;  %v1797_v51 = vpop.f32.mrf.mxu1 }
 0x917   :  { %v1827_v52 = vadd.f32 %v2501_v29, %v1784_v50  ;;  %v1828_v55 = vadd.f32 %v2502_v49, %v1797_v51 }
 0x919   :  { %v2505_v56 = vmul.f32 -1.442695, %v1827_v52  ;;  %v2506_v59 = vmul.f32 -1.442695, %v1828_v55 }
 0x91b   :  { %2754 = vpow2.f32 %v2505_v56 }
 0x91c   :  { %2756 = vpow2.f32 %v2506_v59 }
 0x91d   :  { %v1810_v61 = vpop.f32.mrf.mxu2  ;;  %v1823_v62 = vpop.f32.mrf.mxu3 }
 0x91e   :  { %v1830_v63 = vadd.f32 %v2504_v60, %v1823_v62  ;;  %v1786_v0 = vpop.f32.mrf.mxu0  ;;  %v1799_v4 = vpop.f32.mrf.mxu1  ;;  %v1829_v43 = vadd.f32 %v2503_v18, %v1810_v61 }
 0x920   :  { %v2507_v5 = vmul.f32 -1.442695, %v1830_v63 }
 0x921   :  { %v2755_v6 = vpop.eup %2754 }
 0x922   :  { %v2757_v11 = vpop.eup %2756  ;;  %v1834_v19 = vadd.f32 1.0, %v2755_v6  ;;  %2758 = vpow2.f32 %v2507_v5 }
 0x923   :  { %v1853_v23 = vadd.f32 1.0, %v2757_v11 }
 0x924   :  { %2760 = vrcp.f32 %v1834_v19  ;;  %v1846_v29 = vand.u32 2147483648, %v1834_v19  ;;  %v1844_v51 = vand.u32 2147483647, %v1834_v19  ;;  %vm1840_vm2 = vweird.f32 %v1834_v19 }
 0x925   :  { %2762 = vrcp.f32 %v1853_v23  ;;  %v1812_v14 = vpop.f32.mrf.mxu2  ;;  %v1825_v15 = vpop.f32.mrf.mxu3  ;;  %v1865_v49 = vand.u32 2147483648, %v1853_v23  ;;  %v1863_v55 = vand.u32 2147483647, %v1853_v23  ;;  %vm1859_vm3 = vweird.f32 %v1853_v23 }
 0x926   :  { %v1847_v60 = vor.u32 1.1754944e-38, %v1846_v29  ;;  %vm1845_vm6 = vcmp.eq.f32.partialorder %v1844_v51, 8.507059e+37 }
 0x927   :  { %v1866_v63 = vor.u32 1.1754944e-38, %v1865_v49  ;;  %vm1864_vm7 = vcmp.eq.f32.partialorder %v1863_v55, 8.507059e+37 }
 0x928   :  { %v2759_v35 = vpop.eup %2758 }
 0x929   :  { %v1873_v30 = vadd.f32 1.0, %v2759_v35 }
 0x92a   :  { %v2761_v31 = vpop.eup %2760 }
 0x92b   :  { %v2763_v36 = vpop.eup %2762  ;;  %v1836_v44 = vmul.f32 %v2761_v31, %v1834_v19  ;;  %2764 = vrcp.f32 %v1873_v30  ;;  %vm1841_vm0 = vweird.f32 %v2761_v31  ;;  %vm1879_vm9 = vweird.f32 %v1873_v30 }
 0x92c   :  { %v1855_v47 = vmul.f32 %v2763_v36, %v1853_v23  ;;  %2766 = vtanh.f32 %v1829_v43  ;;  %vm1860_vm1 = vweird.f32 %v2763_v36  ;;  %vm1842_vm4 = vmor %vm1840_vm2, %vm1841_vm0  ;;  %v1885_v43 = vand.u32 2147483648, %v1873_v30 }
 0x92d   :  { %v1837_v27 = vsub.f32 1.0, %v1836_v44  ;;  %vm1861_vm5 = vmor %vm1859_vm3, %vm1860_vm1 }
 0x92e   :  { %v1856_v24 = vsub.f32 1.0, %v1855_v47  ;;  %v1886_v47 = vor.u32 1.1754944e-38, %v1885_v43 }
 0x92f   :  { %v1838_v50 = vmul.f32 %v2761_v31, %v1837_v27 }
 0x930   :  { %v1857_v52 = vmul.f32 %v2763_v36, %v1856_v24 }
 0x931   :  { %v2765_v56 = vpop.eup %2764  ;;  %v1839_v59 = vadd.f32 %v2761_v31, %v1838_v50 }
 0x932   :  { %v1858_v61 = vadd.f32 %v2763_v36, %v1857_v52  ;;  %v1875_v62 = vmul.f32 %v2765_v56, %v1873_v30  ;;  %v2767_v4 = vpop.eup %2766  ;;  %vm1880_vm8 = vweird.f32 %v2765_v56 }
 0x933   :  { %v1843_v0 = vsel %vm1842_vm4, %v2761_v31, %v1839_v59  ;;  %v1883_v31 = vand.u32 2147483647, %v1873_v30  ;;  %vm1881_vm10 = vmor %vm1879_vm9, %vm1880_vm8 }
 0x934   :  { %v1848_v5 = vsel %vm1845_vm6, %v1847_v60, %v1843_v0  ;;  %v1862_v6 = vsel %vm1861_vm5, %v2763_v36, %v1858_v61  ;;  %v1876_v11 = vsub.f32 1.0, %v1875_v62 }
 0x935   :  { %v1867_v14 = vsel %vm1864_vm7, %v1866_v63, %v1862_v6  ;;  %v1891_v15 = vmul.f32 %v2767_v4, %v1848_v5  ;;  %vm1884_vm11 = vcmp.eq.f32.partialorder %v1883_v31, 8.507059e+37 }
 0x936   :  { %v1890_v18 = vmul.f32 %v1867_v14, %v3759_v13  ;;  %v1877_v35 = vmul.f32 %v2765_v56, %v1876_v11 }
 0x938   :  { %v3810_v19 = vadd.f32 %v1891_v15, %v1890_v18  ;;  %v1878_v23 = vadd.f32 %v2765_v56, %v1877_v35 }
 0x93a   :  { %2768 = vtanh.f32 %v3810_v19  ;;  %v1882_v44 = vsel %vm1881_vm10, %v2765_v56, %v1878_v23 }
 0x93b   :  { %v1887_v27 = vsel %vm1884_vm11, %v1886_v47, %v1882_v44 }
 0x940   :  { %v2769_v36 = vpop.eup %2768 }
 0x941   :  { %v1894_v24 = vmul.f32 %v2769_v36, %v1887_v27 }
 0x943   :  { %v1895_v29 = vpack.c.bf16 %v1894_v24, %v1894_v24 }
 0x945   :  { %1898 = vst [vmem:[%s3904_s2 + $0x30] sm:$0xf] %v1895_v29 }
 0x946   :  { %1897 = vst [vmem:[#allocation2] sm:$0xf] %v1895_v29 }
 0x94d   :  { %v1904_v13 = vld [vmem:[#allocation2] sm:$0xf] }
 0x94e   :  { %1913 = vmatmul.bf16.vlgmr.msrb.gmra.mxu0 %v1904_v13  ;;  %1926 = vmatmul.bf16.vlgmr.msrb.gmra.mxu1 %v1904_v13 }
 0x94f   :  { %1939 = vmatmul.bf16.vlgmr.msrb.gmra.mxu2 %v1904_v13  ;;  %1952 = vmatmul.bf16.vlgmr.msrb.gmra.mxu3 %v1904_v13  ;;  %v2515_v13 = vld [vmem:[%s3903_s0 + $0x1c0] sm:$0xff] }
 0x950   :  { %2165 = vmatpush.bf16.msrb.mxu0 %v2843_v3  ;;  %2178 = vmatpush.bf16.msrb.mxu1 %v2854_v7  ;;  %v2508_v3 = vld [vmem:[%s3903_s0 + $0x1a0] sm:$0xff]  ;;  %v2509_v7 = vld [vmem:[%s3903_s0 + $0x1a8] sm:$0xff] }
 0x951   :  { %2191 = vmatpush.bf16.msrb.mxu2 %v2894_v21  ;;  %2204 = vmatpush.bf16.msrb.mxu3 %v2856_v8 }
 0x954   :  { %2166 = vmatpush.bf16.msrb.mxu0 %v2868_v12  ;;  %2179 = vmatpush.bf16.msrb.mxu1 %v2881_v16 }
 0x955   :  { %2192 = vmatpush.bf16.msrb.mxu2 %v2933_v34  ;;  %2205 = vmatpush.bf16.msrb.mxu3 %v2883_v17 }
 0x958   :  { %2167 = vmatpush.bf16.msrb.mxu0 %v2916_v28  ;;  %2180 = vmatpush.bf16.msrb.mxu1 %v2929_v32  ;;  %v2511_v32 = vld [vmem:[%s3903_s0 + $0x1b8] sm:$0xff] }
 0x959   :  { %2193 = vmatpush.bf16.msrb.mxu2 %v2957_v42  ;;  %2206 = vmatpush.bf16.msrb.mxu3 %v2931_v33 }
 0x95c   :  { %2168 = vmatpush.bf16.msrb.mxu0 %v2955_v41  ;;  %2181 = vmatpush.bf16.msrb.mxu1 %v2967_v45 }
 0x95d   :  { %2194 = vmatpush.bf16.msrb.mxu2 %v2993_v54  ;;  %2207 = vmatpush.bf16.msrb.mxu3 %v2969_v46 }
 0x960   :  { %2169 = vmatpush.bf16.msrb.mxu0 %v2991_v53  ;;  %2182 = vmatpush.bf16.msrb.mxu1 %v3003_v57 }
 0x961   :  { %2195 = vmatpush.bf16.msrb.mxu2 %v3029_v2  ;;  %2208 = vmatpush.bf16.msrb.mxu3 %v3005_v58 }
 0x964   :  { %2170 = vmatpush.bf16.msrb.mxu0 %v3027_v1  ;;  %2183 = vmatpush.bf16.msrb.mxu1 %v3042_v9  ;;  %v2510_v9 = vld [vmem:[%s3903_s0 + $0x1b0] sm:$0xff] }
 0x965   :  { %2196 = vmatpush.bf16.msrb.mxu2 %v3065_v22  ;;  %2209 = vmatpush.bf16.msrb.mxu3 %v3044_v10 }
 0x968   :  { %2171 = vmatpush.bf16.msrb.mxu0 %v3063_v20  ;;  %2184 = vmatpush.bf16.msrb.mxu1 %v3075_v25 }
 0x969   :  { %2197 = vmatpush.bf16.msrb.mxu2 %v3101_v38  ;;  %2210 = vmatpush.bf16.msrb.mxu3 %v3077_v26 }
 0x96c   :  { %2172 = vmatpush.bf16.msrb.mxu0 %v3099_v37  ;;  %2185 = vmatpush.bf16.msrb.mxu1 %v3105_v39 }
 0x96d   :  { %2198 = vmatpush.bf16.msrb.mxu2 %v3119_v48  ;;  %2211 = vmatpush.bf16.msrb.mxu3 %v3107_v40 }
 0x9cb   :  { %v1914_v8 = vpop.f32.mrf.mxu0  ;;  %v1927_v12 = vpop.f32.mrf.mxu1 }
 0x9cc   :  { %v1957_v16 = vadd.f32 %v2508_v3, %v1914_v8  ;;  %v1958_v17 = vadd.f32 %v2509_v7, %v1927_v12  ;;  %v2516_v3 = vld [vmem:[%s3903_s0 + $0x1c8] sm:$0xff] }
 0x9ce   :  { %v2512_v21 = vmul.f32 -1.442695, %v1957_v16  ;;  %v2513_v28 = vmul.f32 -1.442695, %v1958_v17 }
 0x9d0   :  { %2770 = vpow2.f32 %v2512_v21 }
 0x9d1   :  { %2772 = vpow2.f32 %v2513_v28  ;;  %v2518_v28 = vld [vmem:[%s3903_s0 + $0x1d8] sm:$0xff] }
 0x9d2   :  { %v1940_v33 = vpop.f32.mrf.mxu2  ;;  %v1953_v34 = vpop.f32.mrf.mxu3 }
 0x9d3   :  { %v1960_v41 = vadd.f32 %v2511_v32, %v1953_v34  ;;  %v1916_v42 = vpop.f32.mrf.mxu0  ;;  %v1929_v45 = vpop.f32.mrf.mxu1  ;;  %v1959_v25 = vadd.f32 %v2510_v9, %v1940_v33 }
 0x9d5   :  { %v2514_v46 = vmul.f32 -1.442695, %v1960_v41 }
 0x9d6   :  { %v2771_v53 = vpop.eup %2770 }
 0x9d7   :  { %v2773_v54 = vpop.eup %2772  ;;  %v1964_v57 = vadd.f32 1.0, %v2771_v53  ;;  %2774 = vpow2.f32 %v2514_v46 }
 0x9d8   :  { %v1983_v58 = vadd.f32 1.0, %v2773_v54 }
 0x9d9   :  { %2776 = vrcp.f32 %v1964_v57  ;;  %v1976_v48 = vand.u32 2147483648, %v1964_v57  ;;  %v1974_v50 = vand.u32 2147483647, %v1964_v57  ;;  %vm1970_vm14 = vweird.f32 %v1964_v57 }
 0x9da   :  { %2778 = vrcp.f32 %v1983_v58  ;;  %v1942_v1 = vpop.f32.mrf.mxu2  ;;  %v1955_v2 = vpop.f32.mrf.mxu3  ;;  %v1995_v30 = vand.u32 2147483648, %v1983_v58  ;;  %v1993_v52 = vand.u32 2147483647, %v1983_v58  ;;  %vm1989_vm15 = vweird.f32 %v1983_v58 }
 0x9db   :  { %v1977_v59 = vor.u32 1.1754944e-38, %v1976_v48  ;;  %vm1975_vm2 = vcmp.eq.f32.partialorder %v1974_v50, 8.507059e+37  ;;  %v2517_v2 = vld [vmem:[%s3903_s0 + $0x1d0] sm:$0xff] }
 0x9dc   :  { %v1996_v62 = vor.u32 1.1754944e-38, %v1995_v30  ;;  %vm1994_vm3 = vcmp.eq.f32.partialorder %v1993_v52, 8.507059e+37 }
 0x9dd   :  { %v2775_v10 = vpop.eup %2774 }
 0x9de   :  { %v2003_v20 = vadd.f32 1.0, %v2775_v10 }
 0x9df   :  { %v2777_v22 = vpop.eup %2776 }
 0x9e0   :  { %v2779_v26 = vpop.eup %2778  ;;  %v1966_v37 = vmul.f32 %v2777_v22, %v1964_v57  ;;  %2780 = vrcp.f32 %v2003_v20  ;;  %vm1971_vm12 = vweird.f32 %v2777_v22  ;;  %v2015_v43 = vand.u32 2147483648, %v2003_v20 }
 0x9e1   :  { %v1985_v38 = vmul.f32 %v2779_v26, %v1983_v58  ;;  %2782 = vtanh.f32 %v1959_v25  ;;  %vm1990_vm13 = vweird.f32 %v2779_v26  ;;  %vm1972_vm0 = vmor %vm1970_vm14, %vm1971_vm12  ;;  %vm2009_vm5 = vweird.f32 %v2003_v20 }
 0x9e2   :  { %v1967_v39 = vsub.f32 1.0, %v1966_v37  ;;  %vm1991_vm1 = vmor %vm1989_vm15, %vm1990_vm13  ;;  %v2013_v31 = vand.u32 2147483647, %v2003_v20  ;;  %v2016_v47 = vor.u32 1.1754944e-38, %v2015_v43 }
 0x9e3   :  { %v1986_v40 = vsub.f32 1.0, %v1985_v38 }
 0x9e4   :  { %v1968_v49 = vmul.f32 %v2777_v22, %v1967_v39  ;;  %vm2014_vm7 = vcmp.eq.f32.partialorder %v2013_v31, 8.507059e+37 }
 0x9e5   :  { %v1987_v51 = vmul.f32 %v2779_v26, %v1986_v40 }
 0x9e6   :  { %v2781_v55 = vpop.eup %2780  ;;  %v1969_v56 = vadd.f32 %v2777_v22, %v1968_v49 }
 0x9e7   :  { %v1988_v60 = vadd.f32 %v2779_v26, %v1987_v51  ;;  %v2005_v61 = vmul.f32 %v2781_v55, %v2003_v20  ;;  %v2783_v0 = vpop.eup %2782  ;;  %vm2010_vm4 = vweird.f32 %v2781_v55 }
 0x9e8   :  { %v1973_v63 = vsel %vm1972_vm0, %v2777_v22, %v1969_v56  ;;  %vm2011_vm6 = vmor %vm2009_vm5, %vm2010_vm4 }
 0x9e9   :  { %v1978_v4 = vsel %vm1975_vm2, %v1977_v59, %v1973_v63  ;;  %v1992_v5 = vsel %vm1991_vm1, %v2779_v26, %v1988_v60  ;;  %v2006_v6 = vsub.f32 1.0, %v2005_v61 }
 0x9ea   :  { %v1997_v11 = vsel %vm1994_vm3, %v1996_v62, %v1992_v5  ;;  %v2021_v14 = vmul.f32 %v2783_v0, %v1978_v4 }
 0x9eb   :  { %v2020_v15 = vmul.f32 %v1997_v11, %v3810_v19  ;;  %v2007_v18 = vmul.f32 %v2781_v55, %v2006_v6 }
 0x9ed   :  { %v3861_v35 = vadd.f32 %v2021_v14, %v2020_v15  ;;  %v2008_v23 = vadd.f32 %v2781_v55, %v2007_v18 }
 0x9ef   :  { %2784 = vtanh.f32 %v3861_v35  ;;  %v2012_v44 = vsel %vm2011_vm6, %v2781_v55, %v2008_v23 }
 0x9f0   :  { %v2017_v27 = vsel %vm2014_vm7, %v2016_v47, %v2012_v44 }
 0x9f5   :  { %v2785_v36 = vpop.eup %2784 }
 0x9f6   :  { %v2024_v24 = vmul.f32 %v2785_v36, %v2017_v27 }
 0x9f8   :  { %v2025_v29 = vpack.c.bf16 %v2024_v24, %v2024_v24 }
 0x9fa   :  { %2028 = vst [vmem:[%s3904_s2 + $0x34] sm:$0xf] %v2025_v29 }
 0x9fb   :  { %2027 = vst [vmem:[#allocation2] sm:$0xf] %v2025_v29 }
 0xa02   :  { %v2034_v19 = vld [vmem:[#allocation2] sm:$0xf] }
 0xa03   :  { %2043 = vmatmul.bf16.vlgmr.msra.gmra.mxu0 %v2034_v19  ;;  %2056 = vmatmul.bf16.vlgmr.msra.gmra.mxu1 %v2034_v19 }
 0xa04   :  { %2069 = vmatmul.bf16.vlgmr.msra.gmra.mxu2 %v2034_v19  ;;  %2082 = vmatmul.bf16.vlgmr.msra.gmra.mxu3 %v2034_v19  ;;  %v2522_v19 = vld [vmem:[%s3903_s0 + $0x1e0] sm:$0xff] }
 0xa80   :  { %v2044_v7 = vpop.f32.mrf.mxu0  ;;  %v2057_v8 = vpop.f32.mrf.mxu1 }
 0xa81   :  { %v2087_v12 = vadd.f32 %v2515_v13, %v2044_v7  ;;  %v2088_v16 = vadd.f32 %v2516_v3, %v2057_v8  ;;  %v2523_v13 = vld [vmem:[%s3903_s0 + $0x1e8] sm:$0xff] }
 0xa83   :  { %v2519_v17 = vmul.f32 -1.442695, %v2087_v12  ;;  %v2520_v21 = vmul.f32 -1.442695, %v2088_v16 }
 0xa85   :  { %2786 = vpow2.f32 %v2519_v17 }
 0xa86   :  { %2788 = vpow2.f32 %v2520_v21  ;;  %v2525_v21 = vld [vmem:[%s3903_s0 + $0x1f8] sm:$0xff] }
 0xa87   :  { %v2070_v32 = vpop.f32.mrf.mxu2  ;;  %v2083_v33 = vpop.f32.mrf.mxu3 }
 0xa88   :  { %v2090_v34 = vadd.f32 %v2518_v28, %v2083_v33  ;;  %v2046_v41 = vpop.f32.mrf.mxu0  ;;  %v2059_v42 = vpop.f32.mrf.mxu1  ;;  %v2089_v22 = vadd.f32 %v2517_v2, %v2070_v32 }
 0xa8a   :  { %v2521_v45 = vmul.f32 -1.442695, %v2090_v34 }
 0xa8b   :  { %v2787_v46 = vpop.eup %2786 }
 0xa8c   :  { %v2789_v53 = vpop.eup %2788  ;;  %v2094_v54 = vadd.f32 1.0, %v2787_v46  ;;  %2790 = vpow2.f32 %v2521_v45 }
 0xa8d   :  { %v2113_v57 = vadd.f32 1.0, %v2789_v53 }
 0xa8e   :  { %2792 = vrcp.f32 %v2094_v54  ;;  %v2106_v40 = vand.u32 2147483648, %v2094_v54  ;;  %v2104_v49 = vand.u32 2147483647, %v2094_v54  ;;  %vm2100_vm10 = vweird.f32 %v2094_v54 }
 0xa8f   :  { %2794 = vrcp.f32 %v2113_v57  ;;  %v2072_v58 = vpop.f32.mrf.mxu2  ;;  %v2085_v1 = vpop.f32.mrf.mxu3  ;;  %v2125_v48 = vand.u32 2147483648, %v2113_v57  ;;  %v2123_v51 = vand.u32 2147483647, %v2113_v57  ;;  %vm2119_vm11 = vweird.f32 %v2113_v57 }
 0xa90   :  { %v2107_v56 = vor.u32 1.1754944e-38, %v2106_v40  ;;  %vm2105_vm14 = vcmp.eq.f32.partialorder %v2104_v49, 8.507059e+37  ;;  %v2524_v1 = vld [vmem:[%s3903_s0 + $0x1f0] sm:$0xff] }
 0xa91   :  { %v2126_v61 = vor.u32 1.1754944e-38, %v2125_v48  ;;  %vm2124_vm15 = vcmp.eq.f32.partialorder %v2123_v51, 8.507059e+37 }
 0xa92   :  { %v2791_v9 = vpop.eup %2790 }
 0xa93   :  { %v2133_v10 = vadd.f32 1.0, %v2791_v9 }
 0xa94   :  { %v2793_v20 = vpop.eup %2792 }
 0xa95   :  { %v2795_v25 = vpop.eup %2794  ;;  %v2096_v26 = vmul.f32 %v2793_v20, %v2094_v54  ;;  %2796 = vrcp.f32 %v2133_v10  ;;  %vm2101_vm8 = vweird.f32 %v2793_v20  ;;  %v2145_v43 = vand.u32 2147483648, %v2133_v10 }
 0xa96   :  { %v2115_v37 = vmul.f32 %v2795_v25, %v2113_v57  ;;  %2798 = vtanh.f32 %v2089_v22  ;;  %vm2120_vm9 = vweird.f32 %v2795_v25  ;;  %vm2102_vm12 = vmor %vm2100_vm10, %vm2101_vm8  ;;  %vm2139_vm1 = vweird.f32 %v2133_v10 }
 0xa97   :  { %v2097_v38 = vsub.f32 1.0, %v2096_v26  ;;  %vm2121_vm13 = vmor %vm2119_vm11, %vm2120_vm9  ;;  %v2143_v31 = vand.u32 2147483647, %v2133_v10  ;;  %v2146_v47 = vor.u32 1.1754944e-38, %v2145_v43 }
 0xa98   :  { %v2116_v39 = vsub.f32 1.0, %v2115_v37 }
 0xa99   :  { %v2098_v30 = vmul.f32 %v2793_v20, %v2097_v38  ;;  %vm2144_vm3 = vcmp.eq.f32.partialorder %v2143_v31, 8.507059e+37 }
 0xa9a   :  { %v2117_v50 = vmul.f32 %v2795_v25, %v2116_v39 }
 0xa9b   :  { %v2797_v52 = vpop.eup %2796  ;;  %v2099_v55 = vadd.f32 %v2793_v20, %v2098_v30 }
 0xa9c   :  { %v2118_v59 = vadd.f32 %v2795_v25, %v2117_v50  ;;  %v2135_v60 = vmul.f32 %v2797_v52, %v2133_v10  ;;  %v2799_v63 = vpop.eup %2798  ;;  %vm2140_vm0 = vweird.f32 %v2797_v52 }
 0xa9d   :  { %v2103_v62 = vsel %vm2102_vm12, %v2793_v20, %v2099_v55  ;;  %vm2141_vm2 = vmor %vm2139_vm1, %vm2140_vm0 }
 0xa9e   :  { %v2108_v0 = vsel %vm2105_vm14, %v2107_v56, %v2103_v62  ;;  %v2122_v4 = vsel %vm2121_vm13, %v2795_v25, %v2118_v59  ;;  %v2136_v5 = vsub.f32 1.0, %v2135_v60 }
 0xa9f   :  { %v2127_v6 = vsel %vm2124_vm15, %v2126_v61, %v2122_v4  ;;  %v2151_v11 = vmul.f32 %v2799_v63, %v2108_v0 }
 0xaa0   :  { %v2150_v14 = vmul.f32 %v2127_v6, %v3861_v35  ;;  %v2137_v15 = vmul.f32 %v2797_v52, %v2136_v5 }
 0xaa2   :  { %v3880_v18 = vadd.f32 %v2151_v11, %v2150_v14  ;;  %v2138_v23 = vadd.f32 %v2797_v52, %v2137_v15 }
 0xaa4   :  { %2800 = vtanh.f32 %v3880_v18  ;;  %v2142_v44 = vsel %vm2141_vm2, %v2797_v52, %v2138_v23 }
 0xaa5   :  { %v2147_v27 = vsel %vm2144_vm3, %v2146_v47, %v2142_v44 }
 0xaaa   :  { %v2801_v36 = vpop.eup %2800 }
 0xaab   :  { %v2154_v24 = vmul.f32 %v2801_v36, %v2147_v27 }
 0xaad   :  { %v2155_v29 = vpack.c.bf16 %v2154_v24, %v2154_v24 }
 0xaaf   :  { %2158 = vst [vmem:[%s3904_s2 + $0x38] sm:$0xf] %v2155_v29 }
 0xab0   :  { %2157 = vst [vmem:[#allocation2] sm:$0xf] %v2155_v29 }
 0xab7   :  { %v2164_v35 = vld [vmem:[#allocation2] sm:$0xf] }
 0xab8   :  { %2173 = vmatmul.bf16.vlgmr.msrb.gmra.mxu0 %v2164_v35  ;;  %2186 = vmatmul.bf16.vlgmr.msrb.gmra.mxu1 %v2164_v35 }
 0xab9   :  { %2199 = vmatmul.bf16.vlgmr.msrb.gmra.mxu2 %v2164_v35  ;;  %2212 = vmatmul.bf16.vlgmr.msrb.gmra.mxu3 %v2164_v35 }
 0xb35   :  { %v2174_v3 = vpop.f32.mrf.mxu0  ;;  %v2187_v7 = vpop.f32.mrf.mxu1 }
 0xb36   :  { %v2217_v8 = vadd.f32 %v2522_v19, %v2174_v3  ;;  %v2218_v12 = vadd.f32 %v2523_v13, %v2187_v7 }
 0xb38   :  { %v2526_v16 = vmul.f32 -1.442695, %v2217_v8  ;;  %v2527_v17 = vmul.f32 -1.442695, %v2218_v12 }
 0xb3a   :  { %2802 = vpow2.f32 %v2526_v16 }
 0xb3b   :  { %2804 = vpow2.f32 %v2527_v17 }
 0xb3c   :  { %v2200_v28 = vpop.f32.mrf.mxu2  ;;  %v2213_v32 = vpop.f32.mrf.mxu3 }
 0xb3d   :  { %v2220_v33 = vadd.f32 %v2525_v21, %v2213_v32  ;;  %v2176_v34 = vpop.f32.mrf.mxu0  ;;  %v2189_v41 = vpop.f32.mrf.mxu1  ;;  %v2219_v20 = vadd.f32 %v2524_v1, %v2200_v28 }
 0xb3f   :  { %v2528_v42 = vmul.f32 -1.442695, %v2220_v33 }
 0xb40   :  { %v2803_v45 = vpop.eup %2802 }
 0xb41   :  { %v2805_v46 = vpop.eup %2804  ;;  %v2224_v53 = vadd.f32 1.0, %v2803_v45  ;;  %2806 = vpow2.f32 %v2528_v42 }
 0xb42   :  { %v2243_v54 = vadd.f32 1.0, %v2805_v46 }
 0xb43   :  { %2808 = vrcp.f32 %v2224_v53  ;;  %v2236_v39 = vand.u32 2147483648, %v2224_v53  ;;  %v2234_v30 = vand.u32 2147483647, %v2224_v53  ;;  %vm2230_vm6 = vweird.f32 %v2224_v53 }
 0xb44   :  { %2810 = vrcp.f32 %v2243_v54  ;;  %v2202_v57 = vpop.f32.mrf.mxu2  ;;  %v2215_v58 = vpop.f32.mrf.mxu3  ;;  %v2255_v40 = vand.u32 2147483648, %v2243_v54  ;;  %v2253_v50 = vand.u32 2147483647, %v2243_v54  ;;  %vm2249_vm7 = vweird.f32 %v2243_v54 }
 0xb45   :  { %v2237_v55 = vor.u32 1.1754944e-38, %v2236_v39  ;;  %vm2235_vm10 = vcmp.eq.f32.partialorder %v2234_v30, 8.507059e+37 }
 0xb46   :  { %v2256_v60 = vor.u32 1.1754944e-38, %v2255_v40  ;;  %vm2254_vm11 = vcmp.eq.f32.partialorder %v2253_v50, 8.507059e+37 }
 0xb47   :  { %v2807_v2 = vpop.eup %2806 }
 0xb48   :  { %v2263_v9 = vadd.f32 1.0, %v2807_v2 }
 0xb49   :  { %v2809_v10 = vpop.eup %2808 }
 0xb4a   :  { %v2811_v22 = vpop.eup %2810  ;;  %v2226_v25 = vmul.f32 %v2809_v10, %v2224_v53  ;;  %2812 = vrcp.f32 %v2263_v9  ;;  %vm2231_vm4 = vweird.f32 %v2809_v10  ;;  %v2275_v43 = vand.u32 2147483648, %v2263_v9 }
 0xb4b   :  { %v2245_v26 = vmul.f32 %v2811_v22, %v2243_v54  ;;  %2814 = vtanh.f32 %v2219_v20  ;;  %vm2250_vm5 = vweird.f32 %v2811_v22  ;;  %vm2232_vm8 = vmor %vm2230_vm6, %vm2231_vm4  ;;  %vm2269_vm13 = vweird.f32 %v2263_v9 }
 0xb4c   :  { %v2227_v37 = vsub.f32 1.0, %v2226_v25  ;;  %vm2251_vm9 = vmor %vm2249_vm7, %vm2250_vm5  ;;  %v2273_v31 = vand.u32 2147483647, %v2263_v9  ;;  %v2276_v47 = vor.u32 1.1754944e-38, %v2275_v43 }
 0xb4d   :  { %v2246_v38 = vsub.f32 1.0, %v2245_v26 }
 0xb4e   :  { %v2228_v48 = vmul.f32 %v2809_v10, %v2227_v37  ;;  %vm2274_vm15 = vcmp.eq.f32.partialorder %v2273_v31, 8.507059e+37 }
 0xb4f   :  { %v2247_v49 = vmul.f32 %v2811_v22, %v2246_v38 }
 0xb50   :  { %v2813_v51 = vpop.eup %2812  ;;  %v2229_v52 = vadd.f32 %v2809_v10, %v2228_v48 }
 0xb51   :  { %v2248_v56 = vadd.f32 %v2811_v22, %v2247_v49  ;;  %v2265_v59 = vmul.f32 %v2813_v51, %v2263_v9  ;;  %v2815_v62 = vpop.eup %2814  ;;  %vm2270_vm12 = vweird.f32 %v2813_v51 }
 0xb52   :  { %v2233_v61 = vsel %vm2232_vm8, %v2809_v10, %v2229_v52  ;;  %vm2271_vm14 = vmor %vm2269_vm13, %vm2270_vm12 }
 0xb53   :  { %v2238_v63 = vsel %vm2235_vm10, %v2237_v55, %v2233_v61  ;;  %v2252_v0 = vsel %vm2251_vm9, %v2811_v22, %v2248_v56  ;;  %v2266_v4 = vsub.f32 1.0, %v2265_v59 }
 0xb54   :  { %v2257_v5 = vsel %vm2254_vm11, %v2256_v60, %v2252_v0  ;;  %v2281_v6 = vmul.f32 %v2815_v62, %v2238_v63 }
 0xb55   :  { %v2280_v11 = vmul.f32 %v2257_v5, %v3880_v18  ;;  %v2267_v14 = vmul.f32 %v2813_v51, %v2266_v4 }
 0xb57   :  { %v2282_v15 = vadd.f32 %v2281_v6, %v2280_v11  ;;  %v2268_v23 = vadd.f32 %v2813_v51, %v2267_v14 }
 0xb59   :  { %2816 = vtanh.f32 %v2282_v15  ;;  %v2272_v44 = vsel %vm2271_vm14, %v2813_v51, %v2268_v23 }
 0xb5a   :  { %v2277_v27 = vsel %vm2274_vm15, %v2276_v47, %v2272_v44 }
 0xb5f   :  { %v2817_v36 = vpop.eup %2816 }
 0xb60   :  { %v2284_v24 = vmul.f32 %v2817_v36, %v2277_v27 }
 0xb62   :  { %v2285_v29 = vpack.c.bf16 %v2284_v24, %v2284_v24 }
 0xb64   :  { %2287 = vst [vmem:[#allocation2] sm:$0xf] %v2285_v29 }
 0xb65   :  { %2288 = vst [vmem:[%s3904_s2 + $0x3c] sm:$0xf] %v2285_v29 }

</bundles_post_ra>
